<compile_context>
chip_gen: v6e
topology: v6e:2x2x1
jax: 0.10.0
libtpu: 0.0.40
codegen_flags: <defaults>
</compile_context>

<pallas_src>
import functools
from typing import NamedTuple

import jax
import jax.numpy as jnp
from jax.experimental import pallas as pl
from jax.experimental.pallas import tpu as pltpu

_LANE = 128        # fused-head output padded to a lane-dense multiple of 128
_SUBLANE = 8
_MAX_TILE_B = 2048  # ~3 MiB live VMEM w/ double buffering at this tile; plenty of headroom


class QNetPrepared(NamedTuple):
    """Pre-fused, pre-cast weights (built once, off the hot path)."""
    w1: jax.Array   # (X_dim, H8)      matmul dtype (bf16 by default)
    b1: jax.Array   # (1, H8)          f32
    w2: jax.Array   # (H8, H2)         matmul dtype
    b2: jax.Array   # (1, H2)          f32
    wh: jax.Array   # (H2, head_pad)   fused [gauss | cat | 0-pad], matmul dtype
    bh: jax.Array   # (1, head_pad)    f32


def prepare_q_net_params(params, *, use_bf16=True):
    """One-time: fuse the two tiny heads into a lane-dense (H2, 128) matmul and cast
    matmul operands to bf16.  Hoisted out of the per-call path."""
    w1, b1, w2, b2, wg, bg, wc, bc = params
    H2 = w2.shape[1]
    z_dim = wg.shape[1]
    cat_dim = wc.shape[1]
    n_head = z_dim + cat_dim
    head_pad = max(_LANE, ((n_head + _LANE - 1) // _LANE) * _LANE)

    wh = (jnp.zeros((H2, head_pad), jnp.float32)
          .at[:, :z_dim].set(wg).at[:, z_dim:n_head].set(wc))
    bh = (jnp.zeros((1, head_pad), jnp.float32)
          .at[:, :z_dim].set(bg).at[:, z_dim:n_head].set(bc))

    mm_dtype = jnp.bfloat16 if use_bf16 else jnp.float32
    prepared = QNetPrepared(
        w1=w1.astype(mm_dtype), b1=b1.astype(jnp.float32),
        w2=w2.astype(mm_dtype), b2=b2.astype(jnp.float32),
        wh=wh.astype(mm_dtype), bh=bh.astype(jnp.float32),
    )
    return jax.block_until_ready(prepared)


def _qnet_kernel(x_ref, w1_ref, b1_ref, w2_ref, b2_ref, wh_ref, bh_ref, out_ref):
    """Fused MLP: (lin1 -> relu) -> (lin2 -> relu) -> fused {gauss|cat} head."""
    # Cast x to the matmul dtype in-kernel: avoids one standalone HLO cast fusion
    # (an extra HBM round trip) in the wrapper on this op-count-bound path.
    x = x_ref[...].astype(w1_ref.dtype)                                # (TB, X_dim)

    # lin1 + (eval-mode dropout = identity) + relu; f32 accumulation on the MXU.
    h1 = jnp.dot(x, w1_ref[...], preferred_element_type=jnp.float32) + b1_ref[...]
    h1 = jnp.maximum(h1, 0.0).astype(w2_ref.dtype)                     # (TB, H8)

    # lin2 + (eval-mode dropout = identity) + relu.
    h2 = jnp.dot(h1, w2_ref[...], preferred_element_type=jnp.float32) + b2_ref[...]
    h2 = jnp.maximum(h2, 0.0).astype(wh_ref.dtype)                     # (TB, H2)

    # Fused gauss+cat head -> single lane-dense (TB, 128) output slab.
    out_ref[...] = (jnp.dot(h2, wh_ref[...], preferred_element_type=jnp.float32)
                    + bh_ref[...]).astype(out_ref.dtype)


def _tensorcores_per_chip():
    """Crude per-chip TensorCore count: 2 on v7x-family / megacore chips, else 1."""
    try:
        kind = jax.devices()[0].device_kind.lower()
    except Exception:
        return 1
    return 2 if any(t in kind for t in ("v7", "v5p", "v4")) else 1


def _pick_tile_b(B, tile_b):
    """Per-generation tile choice: single step on single-TC chips for small B,
    >=1 step per TensorCore on dual-TC chips, capped at _MAX_TILE_B rows."""
    if tile_b is None:
        n_tc = _tensorcores_per_chip()
        if n_tc <= 1:
            tile_b = min(B, _MAX_TILE_B)
        else:
            tile_b = min(-(-B // n_tc), _MAX_TILE_B)   # >=1 grid step per core
    if tile_b >= B:
        return B                                        # full-dim block: always legal
    return max(_SUBLANE, (tile_b // _SUBLANE) * _SUBLANE)


@functools.partial(jax.jit, static_argnames=("tile_b", "out_dtype"))
def _q_net_slab(x, prep: QNetPrepared, *, tile_b, out_dtype):
    """Hot path: one pallas_call, returns the padded (B, head_pad) output slab."""
    B, X_dim = x.shape
    H8 = prep.w1.shape[1]
    H2 = prep.w2.shape[1]
    head_pad = prep.wh.shape[1]

    grid = (pl.cdiv(B, tile_b),)
    full = lambda r, c: pl.BlockSpec((r, c), lambda i: (0, 0))  # resident weight blocks

    return pl.pallas_call(
        _qnet_kernel,
        grid_spec=pltpu.PrefetchScalarGridSpec(
            num_scalar_prefetch=0,
            grid=grid,
            in_specs=[
                pl.BlockSpec((tile_b, X_dim), lambda i: (i, 0)),
                full(X_dim, H8), full(1, H8),
                full(H8, H2),    full(1, H2),
                full(H2, head_pad), full(1, head_pad),
            ],
            out_specs=pl.BlockSpec((tile_b, head_pad), lambda i: (i, 0)),
        ),
        out_shape=jax.ShapeDtypeStruct((B, head_pad), out_dtype),
        compiler_params=pltpu.CompilerParams(
            dimension_semantics=("parallel",)),
    )(x, prep.w1, prep.b1, prep.w2, prep.b2, prep.wh, prep.bh)


def q_net_forward(x, prepared, z_dim, cat_dim, *, tile_b=None, out_dtype=jnp.float32):
    """Q_net forward (eval mode). Returns (xgauss, xcat).
    Latency-critical callers can instead consume the slab from _q_net_slab directly
    (or slab[:, :z_dim+cat_dim]) to avoid materializing two narrow slice copies."""
    tile_b = _pick_tile_b(x.shape[0], tile_b)
    slab = _q_net_slab(x, prepared, tile_b=tile_b, out_dtype=out_dtype)
    return slab[:, :z_dim], slab[:, z_dim:z_dim + cat_dim]


def init_q_net_params(key, X_dim, hidden_size, z_dim, cat_dim):
    """Deterministic PyTorch-style (uniform +-1/sqrt(fan_in)) init, (in, out) layout."""
    H8 = hidden_size * 8
    H2 = hidden_size * 2
    dims = [(X_dim, H8), (H8, H2), (H2, z_dim), (H2, cat_dim)]
    params = []
    for fan_in, fan_out in dims:
        key, kw, kb = jax.random.split(key, 3)
        bound = 1.0 / jnp.sqrt(jnp.float32(fan_in))
        w = jax.random.uniform(kw, (fan_in, fan_out), jnp.float32, -bound, bound)
        b = jax.random.uniform(kb, (1, fan_out), jnp.float32, -bound, bound)
        params.extend([w, b])
    return tuple(params)


def q_net_reference(x, params, mm_dtype=None):
    """Plain-JAX reference. With mm_dtype set, mirrors the kernel's cast chain
    (bf16 matmul operands, f32 accumulation) so the check can stay tight."""
    w1, b1, w2, b2, wg, bg, wc, bc = params
    if mm_dtype is not None:
        x, w1, w2, wg, wc = (a.astype(mm_dtype) for a in (x, w1, w2, wg, wc))
    h1 = jnp.maximum(jnp.dot(x, w1, preferred_element_type=jnp.float32) + b1, 0.0)
    if mm_dtype is not None:
        h1 = h1.astype(mm_dtype)
    h2 = jnp.maximum(jnp.dot(h1, w2, preferred_element_type=jnp.float32) + b2, 0.0)
    if mm_dtype is not None:
        h2 = h2.astype(mm_dtype)
    return (jnp.dot(h2, wg, preferred_element_type=jnp.float32) + bg,
            jnp.dot(h2, wc, preferred_element_type=jnp.float32) + bc)


if __name__ == "__main__":
    # Matches the module constants: hidden_size=64 -> H8=512, H2=128; cat_dim=12.
    B, X_dim, hidden_size, z_dim, cat_dim = 512, 64, 64, 8, 12

    key = jax.random.PRNGKey(0)
    key, kx = jax.random.split(key)
    x = jax.random.normal(kx, (B, X_dim), jnp.float32)
    params = init_q_net_params(key, X_dim, hidden_size, z_dim, cat_dim)

    # One-time prep (head fusion + bf16 weight casts) hoisted off the hot path.
    prepared = prepare_q_net_params(params, use_bf16=True)

    xgauss, xcat = q_net_forward(x, prepared, z_dim, cat_dim)
    jax.block_until_ready((xgauss, xcat))
    assert xgauss.shape == (B, z_dim) and xcat.shape == (B, cat_dim)

    # Tight check vs. a reference using the same bf16 operands / f32 accumulation.
    ref_g, ref_c = q_net_reference(x, params, mm_dtype=jnp.bfloat16)
    assert jnp.allclose(xgauss, ref_g, atol=1e-2, rtol=1e-2)
    assert jnp.allclose(xcat, ref_c, atol=1e-2, rtol=1e-2)

    # Loose sanity check vs. the pure-f32 reference (only bf16 operand rounding apart).
    f32_g, f32_c = q_net_reference(x, params)
    assert jnp.allclose(xgauss, f32_g, atol=5e-2, rtol=5e-2)
    assert jnp.allclose(xcat, f32_c, atol=5e-2, rtol=5e-2)

    # Non-divisible batch: last grid step reads past the end of x, but Pallas masks
    # the OOB writes, so every valid row must still match the reference.
    Bo = 500
    og, oc = q_net_forward(x[:Bo], prepared, z_dim, cat_dim, tile_b=192)
    jax.block_until_ready((og, oc))
    assert jnp.allclose(og, ref_g[:Bo], atol=1e-2, rtol=1e-2)
    assert jnp.allclose(oc, ref_c[:Bo], atol=1e-2, rtol=1e-2)

    print("KERNEL_OK")
</pallas_src>

<mosaic_0001>
module attributes {stable_mosaic.version = 11 : i64} {
  func.func @_qnet_kernel(%arg0: i32, %arg1: memref<512x64xf32, #tpu.memory_space<vmem>>, %arg2: memref<64x512xbf16, #tpu.memory_space<vmem>>, %arg3: memref<1x512xf32, #tpu.memory_space<vmem>>, %arg4: memref<512x128xbf16, #tpu.memory_space<vmem>>, %arg5: memref<1x128xf32, #tpu.memory_space<vmem>>, %arg6: memref<128x128xbf16, #tpu.memory_space<vmem>>, %arg7: memref<1x128xf32, #tpu.memory_space<vmem>>, %arg8: memref<512x128xf32, #tpu.memory_space<vmem>>) attributes {dimension_semantics = [#tpu.dimension_semantics<parallel>], iteration_bounds = array<i64: 1>, scalar_prefetch = 0 : i64, scratch_operands = 0 : i64, tpu.core_type = #tpu.core_type<tc>, window_params = [{transform_indices = @transform_0, window_bounds = array<i64: 512, 64>}, {pipeline_mode = #tpu.pipeline_mode<synchronous>, transform_indices = @transform_1, window_bounds = array<i64: 64, 512>}, {pipeline_mode = #tpu.pipeline_mode<synchronous>, transform_indices = @transform_2, window_bounds = array<i64: 1, 512>}, {pipeline_mode = #tpu.pipeline_mode<synchronous>, transform_indices = @transform_3, window_bounds = array<i64: 512, 128>}, {pipeline_mode = #tpu.pipeline_mode<synchronous>, transform_indices = @transform_4, window_bounds = array<i64: 1, 128>}, {pipeline_mode = #tpu.pipeline_mode<synchronous>, transform_indices = @transform_5, window_bounds = array<i64: 128, 128>}, {pipeline_mode = #tpu.pipeline_mode<synchronous>, transform_indices = @transform_6, window_bounds = array<i64: 1, 128>}, {transform_indices = @transform_7, window_bounds = array<i64: 512, 128>}]} {
    %c0 = arith.constant 0 : index
    %c0_0 = arith.constant 0 : index
    %0 = vector.load %arg1[%c0, %c0_0] : memref<512x64xf32, #tpu.memory_space<vmem>>, vector<512x64xf32>
    %1 = arith.truncf %0 : vector<512x64xf32> to vector<512x64xbf16>
    %c0_1 = arith.constant 0 : index
    %c0_2 = arith.constant 0 : index
    %2 = vector.load %arg2[%c0_1, %c0_2] : memref<64x512xbf16, #tpu.memory_space<vmem>>, vector<64x512xbf16>
    %cst = arith.constant dense<0.000000e+00> : vector<512x512xf32>
    %3 = tpu.matmul %1, %2, %cst {dimension_numbers = #tpu.dot_dimension_numbers<[1], [0], [0], [1], [0, 0, 1, 1], [], []>} : vector<512x64xbf16>, vector<64x512xbf16>, vector<512x512xf32> -> vector<512x512xf32>
    %c0_3 = arith.constant 0 : index
    %c0_4 = arith.constant 0 : index
    %4 = vector.load %arg3[%c0_3, %c0_4] : memref<1x512xf32, #tpu.memory_space<vmem>>, vector<1x512xf32>
    %5 = vector.broadcast %4 : vector<1x512xf32> to vector<512x512xf32>
    %6 = arith.addf %3, %5 : vector<512x512xf32>
    %cst_5 = arith.constant 0.000000e+00 : f32
    %7 = vector.broadcast %cst_5 : f32 to vector<512x512xf32>
    %8 = arith.maximumf %6, %7 : vector<512x512xf32>
    %9 = arith.truncf %8 : vector<512x512xf32> to vector<512x512xbf16>
    %c0_6 = arith.constant 0 : index
    %c0_7 = arith.constant 0 : index
    %10 = vector.load %arg4[%c0_6, %c0_7] : memref<512x128xbf16, #tpu.memory_space<vmem>>, vector<512x128xbf16>
    %cst_8 = arith.constant dense<0.000000e+00> : vector<512x128xf32>
    %11 = tpu.matmul %9, %10, %cst_8 {dimension_numbers = #tpu.dot_dimension_numbers<[1], [0], [0], [1], [0, 0, 1, 1], [], []>} : vector<512x512xbf16>, vector<512x128xbf16>, vector<512x128xf32> -> vector<512x128xf32>
    %c0_9 = arith.constant 0 : index
    %c0_10 = arith.constant 0 : index
    %12 = vector.load %arg5[%c0_9, %c0_10] : memref<1x128xf32, #tpu.memory_space<vmem>>, vector<1x128xf32>
    %13 = vector.broadcast %12 : vector<1x128xf32> to vector<512x128xf32>
    %14 = arith.addf %11, %13 : vector<512x128xf32>
    %cst_11 = arith.constant 0.000000e+00 : f32
    %15 = vector.broadcast %cst_11 : f32 to vector<512x128xf32>
    %16 = arith.maximumf %14, %15 : vector<512x128xf32>
    %17 = arith.truncf %16 : vector<512x128xf32> to vector<512x128xbf16>
    %c0_12 = arith.constant 0 : index
    %c0_13 = arith.constant 0 : index
    %18 = vector.load %arg6[%c0_12, %c0_13] : memref<128x128xbf16, #tpu.memory_space<vmem>>, vector<128x128xbf16>
    %cst_14 = arith.constant dense<0.000000e+00> : vector<512x128xf32>
    %19 = tpu.matmul %17, %18, %cst_14 {dimension_numbers = #tpu.dot_dimension_numbers<[1], [0], [0], [1], [0, 0, 1, 1], [], []>} : vector<512x128xbf16>, vector<128x128xbf16>, vector<512x128xf32> -> vector<512x128xf32>
    %c0_15 = arith.constant 0 : index
    %c0_16 = arith.constant 0 : index
    %20 = vector.load %arg7[%c0_15, %c0_16] : memref<1x128xf32, #tpu.memory_space<vmem>>, vector<1x128xf32>
    %21 = vector.broadcast %20 : vector<1x128xf32> to vector<512x128xf32>
    %22 = arith.addf %19, %21 : vector<512x128xf32>
    %c0_17 = arith.constant 0 : index
    %c0_18 = arith.constant 0 : index
    %23 = vector.load %arg8[%c0_17, %c0_18] : memref<512x128xf32, #tpu.memory_space<vmem>>, vector<512x128xf32>
    tpu.vector_store %arg8[%c0_17, %c0_18], %22 {strides = array<i32>} : memref<512x128xf32, #tpu.memory_space<vmem>>, vector<512x128xf32>,
    return
  }
  func.func @transform_0(%arg0: i32) -> (i32, i32) {
    %c0_i32 = arith.constant 0 : i32
    %c0_i32_0 = arith.constant 0 : i32
    return %arg0, %c0_i32 : i32, i32
  }
  func.func @transform_1(%arg0: i32) -> (i32, i32) {
    %c0_i32 = arith.constant 0 : i32
    %c0_i32_0 = arith.constant 0 : i32
    %c0_i32_1 = arith.constant 0 : i32
    return %c0_i32, %c0_i32_0 : i32, i32
  }
  func.func @transform_2(%arg0: i32) -> (i32, i32) {
    %c0_i32 = arith.constant 0 : i32
    %c0_i32_0 = arith.constant 0 : i32
    %c0_i32_1 = arith.constant 0 : i32
    return %c0_i32, %c0_i32_0 : i32, i32
  }
  func.func @transform_3(%arg0: i32) -> (i32, i32) {
    %c0_i32 = arith.constant 0 : i32
    %c0_i32_0 = arith.constant 0 : i32
    %c0_i32_1 = arith.constant 0 : i32
    return %c0_i32, %c0_i32_0 : i32, i32
  }
  func.func @transform_4(%arg0: i32) -> (i32, i32) {
    %c0_i32 = arith.constant 0 : i32
    %c0_i32_0 = arith.constant 0 : i32
    %c0_i32_1 = arith.constant 0 : i32
    return %c0_i32, %c0_i32_0 : i32, i32
  }
  func.func @transform_5(%arg0: i32) -> (i32, i32) {
    %c0_i32 = arith.constant 0 : i32
    %c0_i32_0 = arith.constant 0 : i32
    %c0_i32_1 = arith.constant 0 : i32
    return %c0_i32, %c0_i32_0 : i32, i32
  }
  func.func @transform_6(%arg0: i32) -> (i32, i32) {
    %c0_i32 = arith.constant 0 : i32
    %c0_i32_0 = arith.constant 0 : i32
    %c0_i32_1 = arith.constant 0 : i32
    return %c0_i32, %c0_i32_0 : i32, i32
  }
  func.func @transform_7(%arg0: i32) -> (i32, i32) {
    %c0_i32 = arith.constant 0 : i32
    %c0_i32_0 = arith.constant 0 : i32
    return %arg0, %c0_i32 : i32, i32
  }
}

</mosaic_0001>

<bundles_post_ra>
// kernel: _q_net_slab.1
= control target key start
LH: loop header
LB: loop body
LE: loop exit
PB: predicated region body
PF: predicated region fallthrough
CT: control target
= control target key end

     0   :  { %v3147_v2 = vmov 0   ;;  %vm242_vm0 = vcmask 523264   ;;  %s4880_s0 = inlined_call_operand.vmem [shape: f32[512,64], index: 0, kind: input, shape index: {}]   ;;  %s4881_s1 = inlined_call_operand.vmem [shape: bf16[64,512], index: 1, kind: input, shape index: {}]   ;;  %s4882_s2 = inlined_call_operand.vmem [shape: f32[1,512], index: 2, kind: input, shape index: {}]   ;;  %s4883_s3 = inlined_call_operand.vmem [shape: bf16[512,128], index: 3, kind: input, shape index: {}]   ;;  %s4884_s4 = inlined_call_operand.vmem [shape: f32[1,128], index: 4, kind: input, shape index: {}]   ;;  %s4885_s5 = inlined_call_operand.vmem [shape: bf16[128,128], index: 5, kind: input, shape index: {}]   ;;  %s4886_s6 = inlined_call_operand.vmem [shape: f32[1,128], index: 6, kind: input, shape index: {}]   ;;  %s4887_s7 = inlined_call_operand.hbm [shape: f32[512,128], index: 7, kind: output, shape index: {}]  }
   0x1   :  { %v3060_v0 = vld [vmem:[%s4881_s1 + $0x64] ss:$16 sps:$4 sm:$0xff]   ;;  %v3062_v1 = vld [vmem:[%s4881_s1 + $0x60] ss:$16 sps:$4 sm:$0xff]   ;;  %371 = vmatprep.mubr.bf16.mxu0 %v3147_v2  ;;  %611 = vmatprep.mubr.bf16.mxu1 %v3147_v2  ;;  %v29_v10 = vld [vmem:[%s4880_s0 + $0x8] sm:$0xff] }
   0x2   :  { %347 = vmatprep.subr.bf16.mxu0 %v3060_v0  ;;  %3048 = vmatprep.subr.bf16.mxu1 %v3060_v0  ;;  %v3063_v3 = vld [vmem:[%s4881_s1 + $0x44] ss:$16 sps:$4 sm:$0xff]   ;;  %v3065_v4 = vld [vmem:[%s4881_s1 + $0x40] ss:$16 sps:$4 sm:$0xff]   ;;  %v77_v12 = vld [vmem:[%s4880_s0 + $0x188] sm:$0xff] }
   0x3   :  { %348 = vmatpush1.bf16.msra.mxu0 %v3062_v1  ;;  %3052 = vmatpush1.bf16.msra.mxu1 %v3062_v1  ;;  %v3066_v5 = vld [vmem:[%s4881_s1 + $0x24] ss:$16 sps:$4 sm:$0xff]   ;;  %v3068_v6 = vld [vmem:[%s4881_s1 + $0x20] ss:$16 sps:$4 sm:$0xff]   ;;  %v3074_v13 = vld [vmem:[%s4881_s1 + $0x6c] ss:$16 sps:$4 sm:$0xff]  }
   0x4   :  { %349 = vmatprep.subr.bf16.mxu0 %v3063_v3  ;;  %3049 = vmatprep.subr.bf16.mxu1 %v3063_v3  ;;  %v3069_v7 = vld [vmem:[%s4881_s1 + $0x4] ss:$16 sps:$4 sm:$0xff]   ;;  %v3071_v8 = vld [vmem:[%s4881_s1] ss:$16 sps:$4 sm:$0xff]   ;;  %v3072_v16 = vld [vmem:[%s4881_s1 + $0x68] ss:$16 sps:$4 sm:$0xff]  }
   0x5   :  { %v28_v9 = vld [vmem:[%s4880_s0] sm:$0xff]  ;;  %v3077_v17 = vld [vmem:[%s4881_s1 + $0x4c] ss:$16 sps:$4 sm:$0xff]   ;;  %v30_v18 = vld [vmem:[%s4880_s0 + $0x10] sm:$0xff] }
   0x6   :  { %v76_v11 = vld [vmem:[%s4880_s0 + $0x180] sm:$0xff]  ;;  %v3232_v14 = vpack.c.bf16 %v29_v10, %v28_v9  ;;  %v31_v19 = vld [vmem:[%s4880_s0 + $0x18] sm:$0xff]  ;;  %v78_v20 = vld [vmem:[%s4880_s0 + $0x190] sm:$0xff] }
   0x7   :  { %350 = vmatpush1.bf16.msra.mxu0 %v3065_v4  ;;  %3053 = vmatpush1.bf16.msra.mxu1 %v3065_v4  ;;  %v3234_v15 = vpack.c.bf16 %v77_v12, %v76_v11  ;;  %v79_v21 = vld [vmem:[%s4880_s0 + $0x198] sm:$0xff]  ;;  %v3267_v24 = vpack.c.bf16 %v31_v19, %v30_v18  ;;  %v32_v28 = vld [vmem:[%s4880_s0 + $0x20] sm:$0xff]  ;;  %v33_v29 = vld [vmem:[%s4880_s0 + $0x28] sm:$0xff] }
   0x8   :  { %351 = vmatprep.subr.bf16.mxu0 %v3066_v5  ;;  %3050 = vmatprep.subr.bf16.mxu1 %v3066_v5  ;;  %v3075_v22 = vld [vmem:[%s4881_s1 + $0x48] ss:$16 sps:$4 sm:$0xff]   ;;  %v3080_v23 = vld [vmem:[%s4881_s1 + $0x2c] ss:$16 sps:$4 sm:$0xff]   ;;  %v3269_v25 = vpack.c.bf16 %v79_v21, %v78_v20  ;;  %v80_v30 = vld [vmem:[%s4880_s0 + $0x1a0] sm:$0xff]  ;;  %v3298_v33 = vpack.c.bf16 %v33_v29, %v32_v28 }
   0x9   :  { %v3078_v26 = vld [vmem:[%s4881_s1 + $0x28] ss:$16 sps:$4 sm:$0xff]   ;;  %v3083_v27 = vld [vmem:[%s4881_s1 + $0xc] ss:$16 sps:$4 sm:$0xff]   ;;  %v34_v36 = vld [vmem:[%s4880_s0 + $0x30] sm:$0xff] }
   0xa   :  { %v81_v31 = vld [vmem:[%s4880_s0 + $0x1a8] sm:$0xff]  ;;  %v3088_v35 = vld [vmem:[%s4883_s3 + $0x38] sm:$0xff]   ;;  %v3090_v38 = vld [vmem:[%s4883_s3 + $0x30] sm:$0xff]  }
   0xb   :  { %352 = vmatpush1.bf16.msra.mxu0 %v3068_v6  ;;  %3054 = vmatpush1.bf16.msra.mxu1 %v3068_v6  ;;  %v3081_v32 = vld [vmem:[%s4881_s1 + $0x8] ss:$16 sps:$4 sm:$0xff]   ;;  %v3300_v34 = vpack.c.bf16 %v81_v31, %v80_v30  ;;  %v82_v39 = vld [vmem:[%s4880_s0 + $0x1b0] sm:$0xff]  ;;  %v36_v44 = vld [vmem:[%s4880_s0 + $0x40] sm:$0xff] }
   0xc   :  { %353 = vmatprep.subr.bf16.mxu0 %v3069_v7  ;;  %3051 = vmatprep.subr.bf16.mxu1 %v3069_v7  ;;  %v35_v37 = vld [vmem:[%s4880_s0 + $0x38] sm:$0xff]  ;;  %v3092_v41 = vld [vmem:[%s4883_s3 + $0x28] sm:$0xff]   ;;  %v3093_v46 = vld [vmem:[%s4883_s3 + $0x20] sm:$0xff]  }
   0xd   :  { %v83_v40 = vld [vmem:[%s4880_s0 + $0x1b8] sm:$0xff]  ;;  %v3331_v42 = vpack.c.bf16 %v35_v37, %v34_v36  ;;  %v37_v45 = vld [vmem:[%s4880_s0 + $0x48] sm:$0xff]  ;;  %v84_v47 = vld [vmem:[%s4880_s0 + $0x1c0] sm:$0xff] }
   0xe   :  { %v3333_v43 = vpack.c.bf16 %v83_v40, %v82_v39  ;;  %v85_v48 = vld [vmem:[%s4880_s0 + $0x1c8] sm:$0xff]  ;;  %v3094_v49 = vld [vmem:[%s4883_s3 + $0x18] sm:$0xff]   ;;  %v3361_v50 = vpack.c.bf16 %v37_v45, %v36_v44  ;;  %v38_v52 = vld [vmem:[%s4880_s0 + $0x50] sm:$0xff] }
   0xf   :  { %354 = vmatpush1.bf16.msra.mxu0 %v3071_v8  ;;  %3055 = vmatpush1.bf16.msra.mxu1 %v3071_v8  ;;  %v3363_v51 = vpack.c.bf16 %v85_v48, %v84_v47  ;;  %v39_v53 = vld [vmem:[%s4880_s0 + $0x58] sm:$0xff]  ;;  %v3096_v54 = vld [vmem:[%s4883_s3 + $0x10] sm:$0xff]   ;;  %v3097_v57 = vld [vmem:[%s4883_s3 + $0x8] sm:$0xff]  }
  0x10   :  { %700 = vmatprep.subr.bf16.mxu1 %v3074_v13  ;;  %1692 = vmatprep.subr.bf16.mxu0 %v3147_v2  ;;  %v86_v55 = vld [vmem:[%s4880_s0 + $0x1d0] sm:$0xff]  ;;  %v87_v56 = vld [vmem:[%s4880_s0 + $0x1d8] sm:$0xff]  ;;  %v3391_v58 = vpack.c.bf16 %v39_v53, %v38_v52  ;;  %v40_v60 = vld [vmem:[%s4880_s0 + $0x60] sm:$0xff] }
  0x11   :  { %v3393_v59 = vpack.c.bf16 %v87_v56, %v86_v55  ;;  %v41_v61 = vld [vmem:[%s4880_s0 + $0x68] sm:$0xff]  ;;  %v3098_v62 = vld [vmem:[%s4883_s3] sm:$0xff]   ;;  %v3099_v1 = vld [vmem:[%s4883_s3 + $0x78] sm:$0xff]  }
  0x12   :  { %2822 = vmatmul.mubr.msk.bf16.vlgmr.msra.gmra.mxu0 %vm242_vm0, %v3232_v14  ;;  %2846 = vmatmul.mubr.msk.bf16.vlgmr.msra.gmra.mxu1 %vm242_vm0, %v3234_v15  ;;  %v88_v63 = vld [vmem:[%s4880_s0 + $0x1e0] sm:$0xff]  ;;  %v89_v0 = vld [vmem:[%s4880_s0 + $0x1e8] sm:$0xff]  ;;  %v3421_v3 = vpack.c.bf16 %v41_v61, %v40_v60 }
  0x13   :  { %701 = vmatpush1.bf16.msra.mxu1 %v3072_v16  ;;  %381 = vmatprep.mubr.bf16.mxu0 %v3147_v2  ;;  %v3423_v4 = vpack.c.bf16 %v89_v0, %v88_v63 }
  0x14   :  { %621 = vmatprep.mubr.bf16.mxu1 %v3147_v2  ;;  %702 = vmatprep.subr.bf16.mxu1 %v3077_v17 }
  0x15   :  { %1693 = vmatpush1.bf16.msra.mxu0 %v3088_v35 }
  0x16   :  { %1694 = vmatprep.subr.bf16.mxu0 %v3147_v2 }
  0x17   :  { %703 = vmatpush1.bf16.msra.mxu1 %v3075_v22 }
  0x18   :  { %704 = vmatprep.subr.bf16.mxu1 %v3080_v23 }
  0x19   :  { %1695 = vmatpush1.bf16.msra.mxu0 %v3090_v38 }
  0x1a   :  { %2823 = vmatmul.mubr.msk.bf16.gmra.mxu0 %vm242_vm0, %v3267_v24  ;;  %2847 = vmatmul.mubr.msk.bf16.gmra.mxu1 %vm242_vm0, %v3269_v25 }
  0x1b   :  { %391 = vmatprep.mubr.bf16.mxu0 %v3147_v2  ;;  %631 = vmatprep.mubr.bf16.mxu1 %v3147_v2 }
  0x1c   :  { %705 = vmatpush1.bf16.msra.mxu1 %v3078_v26  ;;  %1696 = vmatprep.subr.bf16.mxu0 %v3147_v2 }
  0x1d   :  { %706 = vmatprep.subr.bf16.mxu1 %v3083_v27  ;;  %1697 = vmatpush1.bf16.msra.mxu0 %v3092_v41 }
  0x1e   :  { %1698 = vmatprep.subr.bf16.mxu0 %v3147_v2 }
  0x20   :  { %707 = vmatpush1.bf16.msra.mxu1 %v3081_v32 }
  0x21   :  { %1981 = vmatprep.subr.bf16.mxu1 %v3147_v2  ;;  %1699 = vmatpush1.bf16.msra.mxu0 %v3093_v46 }
  0x22   :  { %2824 = vmatmul.mubr.msk.bf16.gmra.mxu0 %vm242_vm0, %v3298_v33  ;;  %2848 = vmatmul.mubr.msk.bf16.gmra.mxu1 %vm242_vm0, %v3300_v34 }
  0x23   :  { %401 = vmatprep.mubr.bf16.mxu0 %v3147_v2  ;;  %641 = vmatprep.mubr.bf16.mxu1 %v3147_v2 }
  0x24   :  { %1700 = vmatprep.subr.bf16.mxu0 %v3147_v2 }
  0x25   :  { %1701 = vmatpush1.bf16.msra.mxu0 %v3094_v49 }
  0x26   :  { %1702 = vmatprep.subr.bf16.mxu0 %v3147_v2 }
  0x29   :  { %1703 = vmatpush1.bf16.msra.mxu0 %v3096_v54 }
  0x2a   :  { %2825 = vmatmul.mubr.msk.bf16.gmra.mxu0 %vm242_vm0, %v3331_v42  ;;  %2849 = vmatmul.mubr.msk.bf16.gmra.mxu1 %vm242_vm0, %v3333_v43 }
  0x2b   :  { %411 = vmatprep.mubr.bf16.mxu0 %v3147_v2  ;;  %651 = vmatprep.mubr.bf16.mxu1 %v3147_v2 }
  0x2c   :  { %1704 = vmatprep.subr.bf16.mxu0 %v3147_v2 }
  0x2d   :  { %1705 = vmatpush1.bf16.msra.mxu0 %v3097_v57 }
  0x2e   :  { %1706 = vmatprep.subr.bf16.mxu0 %v3147_v2 }
  0x31   :  { %1707 = vmatpush1.bf16.msra.mxu0 %v3098_v62 }
  0x32   :  { %2826 = vmatmul.mubr.msk.bf16.gmra.mxu0 %vm242_vm0, %v3361_v50  ;;  %2850 = vmatmul.mubr.msk.bf16.gmra.mxu1 %vm242_vm0, %v3363_v51 }
  0x33   :  { %421 = vmatprep.mubr.bf16.mxu0 %v3147_v2  ;;  %661 = vmatprep.mubr.bf16.mxu1 %v3147_v2 }
  0x34   :  { %1708 = vmatprep.subr.bf16.mxu0 %v3147_v2 }
  0x3a   :  { %2827 = vmatmul.mubr.msk.bf16.gmra.mxu0 %vm242_vm0, %v3391_v58  ;;  %2851 = vmatmul.mubr.msk.bf16.gmra.mxu1 %vm242_vm0, %v3393_v59 }
  0x3b   :  { %431 = vmatprep.mubr.bf16.mxu0 %v3147_v2  ;;  %671 = vmatprep.mubr.bf16.mxu1 %v3147_v2 }
  0x3c   :  { %12 = vsyncpa [#allocation3], 0  ;;  %1709 = vmatpush2.bf16.msra.mxu0 %v3099_v1  ;;  %v42_v5 = vld [vmem:[%s4880_s0 + $0x70] sm:$0xff]  ;;  %v43_v7 = vld [vmem:[%s4880_s0 + $0x78] sm:$0xff] }
  0x3d   :  { %v3101_v6 = vld [vmem:[%s4883_s3 + $0x70] sm:$0xff]   ;;  %v91_v9 = vld [vmem:[%s4880_s0 + $0x1f8] sm:$0xff]  ;;  %1710 = vmatprep.subr.bf16.mxu0 %v3147_v2  ;;  %v3102_v10 = vld [vmem:[%s4883_s3 + $0x68] sm:$0xff]   ;;  %v3451_v11 = vpack.c.bf16 %v43_v7, %v42_v5 }
  0x3e   :  { %v90_v8 = vld [vmem:[%s4880_s0 + $0x1f0] sm:$0xff]  ;;  %v3103_v13 = vld [vmem:[%s4883_s3 + $0x60] sm:$0xff]   ;;  %v45_v17 = vld [vmem:[%s4880_s0 + $0x88] sm:$0xff] }
  0x3f   :  { %v3453_v12 = vpack.c.bf16 %v91_v9, %v90_v8  ;;  %v44_v16 = vld [vmem:[%s4880_s0 + $0x80] sm:$0xff]  ;;  %v3104_v18 = vld [vmem:[%s4883_s3 + $0x58] sm:$0xff]   ;;  %v46_v21 = vld [vmem:[%s4880_s0 + $0x90] sm:$0xff] }
  0x40   :  { %1711 = vmatpush2.bf16.msra.mxu0 %v3101_v6  ;;  %v3475_v19 = vpack.c.bf16 %v45_v17, %v44_v16  ;;  %v3084_v20 = vld [vmem:[%s4883_s3 + $0xb8] sm:$0xff]   ;;  %v3085_v23 = vld [vmem:[%s4883_s3 + $0xb0] sm:$0xff]   ;;  %v3086_v27 = vld [vmem:[%s4883_s3 + $0xa8] sm:$0xff]  }
  0x41   :  { %1712 = vmatprep.subr.bf16.mxu0 %v3147_v2  ;;  %v47_v22 = vld [vmem:[%s4880_s0 + $0x98] sm:$0xff]  ;;  %v3106_v26 = vld [vmem:[%s4883_s3 + $0x50] sm:$0xff]   ;;  %v3107_v28 = vld [vmem:[%s4883_s3 + $0x48] sm:$0xff]  }
  0x42   :  { %2828 = vmatmul.mubr.msk.bf16.gmra.mxu0 %vm242_vm0, %v3421_v3  ;;  %2852 = vmatmul.mubr.msk.bf16.gmra.mxu1 %vm242_vm0, %v3423_v4  ;;  %v48_v29 = vld [vmem:[%s4880_s0 + $0xa0] sm:$0xff]  ;;  %v49_v30 = vld [vmem:[%s4880_s0 + $0xa8] sm:$0xff]  ;;  %v3089_v35 = vld [vmem:[%s4883_s3 + $0x98] sm:$0xff]  }
  0x43   :  { %441 = vmatprep.mubr.bf16.mxu0 %v3147_v2  ;;  %681 = vmatprep.mubr.bf16.mxu1 %v3147_v2  ;;  %v3087_v31 = vld [vmem:[%s4883_s3 + $0xa0] sm:$0xff]   ;;  %v3531_v32 = vpack.c.bf16 %v49_v30, %v48_v29  ;;  %v50_v36 = vld [vmem:[%s4880_s0 + $0xb0] sm:$0xff]  ;;  %v51_v37 = vld [vmem:[%s4880_s0 + $0xb8] sm:$0xff] }
  0x44   :  { %1713 = vmatpush2.bf16.msra.mxu0 %v3102_v10  ;;  %v3091_v38 = vld [vmem:[%s4883_s3 + $0x90] sm:$0xff]   ;;  %v3095_v39 = vld [vmem:[%s4883_s3 + $0x88] sm:$0xff]   ;;  %v52_v40 = vld [vmem:[%s4880_s0 + $0xc0] sm:$0xff] }
  0x45   :  { %1714 = vmatprep.subr.bf16.mxu0 %v3147_v2  ;;  %v53_v41 = vld [vmem:[%s4880_s0 + $0xc8] sm:$0xff]  ;;  %v3100_v44 = vld [vmem:[%s4883_s3 + $0x80] sm:$0xff]   ;;  %v3105_v45 = vld [vmem:[%s4883_s3 + $0xf8] sm:$0xff]  }
  0x46   :  { %v54_v46 = vld [vmem:[%s4880_s0 + $0xd0] sm:$0xff]  ;;  %v55_v47 = vld [vmem:[%s4880_s0 + $0xd8] sm:$0xff]  ;;  %v56_v52 = vld [vmem:[%s4880_s0 + $0xe0] sm:$0xff] }
  0x47   :  { %v3109_v48 = vld [vmem:[%s4883_s3 + $0xf0] sm:$0xff]   ;;  %v3597_v49 = vpack.c.bf16 %v55_v47, %v54_v46  ;;  %v57_v53 = vld [vmem:[%s4880_s0 + $0xe8] sm:$0xff]  ;;  %v59_v56 = vld [vmem:[%s4880_s0 + $0xf8] sm:$0xff] }
  0x48   :  { %1715 = vmatpush2.bf16.msra.mxu0 %v3103_v13  ;;  %v3616_v54 = vpack.c.bf16 %v57_v53, %v56_v52  ;;  %v58_v55 = vld [vmem:[%s4880_s0 + $0xf0] sm:$0xff]  ;;  %v60_v60 = vld [vmem:[%s4880_s0 + $0x100] sm:$0xff]  ;;  %v61_v61 = vld [vmem:[%s4880_s0 + $0x108] sm:$0xff] }
  0x49   :  { %1716 = vmatprep.subr.bf16.mxu0 %v3147_v2  ;;  %v3630_v57 = vpack.c.bf16 %v59_v56, %v58_v55  ;;  %v3648_v62 = vpack.c.bf16 %v61_v61, %v60_v60  ;;  %v62_v63 = vld [vmem:[%s4880_s0 + $0x110] sm:$0xff]  ;;  %v63_v0 = vld [vmem:[%s4880_s0 + $0x118] sm:$0xff]  ;;  %v64_v5 = vld [vmem:[%s4880_s0 + $0x120] sm:$0xff] }
  0x4a   :  { %2829 = vmatmul.mubr.msk.bf16.gmra.mxu0 %vm242_vm0, %v3451_v11  ;;  %2853 = vmatmul.mubr.msk.bf16.gmra.mxu1 %vm242_vm0, %v3453_v12  ;;  %v3662_v1 = vpack.c.bf16 %v63_v0, %v62_v63  ;;  %v65_v6 = vld [vmem:[%s4880_s0 + $0x128] sm:$0xff]  ;;  %v66_v8 = vld [vmem:[%s4880_s0 + $0x130] sm:$0xff]  ;;  %v67_v9 = vld [vmem:[%s4880_s0 + $0x138] sm:$0xff] }
  0x4b   :  { %451 = vmatprep.mubr.bf16.mxu0 %v3147_v2  ;;  %724 = vmatprep.mubr.bf16.mxu1 %v3147_v2  ;;  %v3680_v7 = vpack.c.bf16 %v65_v6, %v64_v5  ;;  %v3694_v10 = vpack.c.bf16 %v67_v9, %v66_v8  ;;  %v68_v13 = vld [vmem:[%s4880_s0 + $0x140] sm:$0xff]  ;;  %v69_v16 = vld [vmem:[%s4880_s0 + $0x148] sm:$0xff] }
  0x4c   :  { %1717 = vmatpush2.bf16.msra.mxu0 %v3104_v18  ;;  %v3712_v17 = vpack.c.bf16 %v69_v16, %v68_v13  ;;  %v70_v18 = vld [vmem:[%s4880_s0 + $0x150] sm:$0xff]  ;;  %v3115_v30 = vld [vmem:[%s4883_s3 + $0xc0] sm:$0xff]  }
  0x4d   :  { %1718 = vmatprep.subr.bf16.mxu0 %v3147_v2 }
  0x50   :  { %1719 = vmatpush2.bf16.msra.mxu0 %v3106_v26 }
  0x51   :  { %1720 = vmatprep.subr.bf16.mxu0 %v3147_v2 }
  0x52   :  { %2830 = vmatmul.mubr.msk.bf16.gmra.mxu0 %vm242_vm0, %v3475_v19  ;;  %2854 = vmatmul.mubr.msk.bf16.vlgmr.msra.gmra.mxu1 %vm242_vm0, %v3232_v14  ;;  %v3501_v14 = vpack.c.bf16 %v47_v22, %v46_v21  ;;  %v3114_v21 = vld [vmem:[%s4883_s3 + $0xc8] sm:$0xff]   ;;  %v72_v22 = vld [vmem:[%s4880_s0 + $0x160] sm:$0xff] }
  0x53   :  { %1982 = vmatpush1.bf16.msra.mxu1 %v3084_v20  ;;  %461 = vmatprep.mubr.bf16.mxu0 %v3147_v2 }
  0x54   :  { %734 = vmatprep.mubr.bf16.mxu1 %v3147_v2  ;;  %1983 = vmatprep.subr.bf16.mxu1 %v3147_v2 }
  0x55   :  { %1721 = vmatpush2.bf16.msra.mxu0 %v3107_v28  ;;  %v142_v28 = vlaneseq }
  0x56   :  { %1722 = vmatprep.subr.bf16.mxu0 %v3147_v2 }
  0x57   :  { %1984 = vmatpush1.bf16.msra.mxu1 %v3085_v23  ;;  %v73_v23 = vld [vmem:[%s4880_s0 + $0x168] sm:$0xff] }
  0x58   :  { %1985 = vmatprep.subr.bf16.mxu1 %v3147_v2  ;;  %v3744_v26 = vpack.c.bf16 %v73_v23, %v72_v22 }
  0x5a   :  { %2831 = vmatmul.mubr.msk.bf16.gmra.mxu0 %vm242_vm0, %v3501_v14  ;;  %2855 = vmatmul.mubr.msk.bf16.gmra.mxu1 %vm242_vm0, %v3267_v24  ;;  %v3108_v24 = vld [vmem:[%s4883_s3 + $0x40] sm:$0xff]  }
  0x5b   :  { %471 = vmatprep.mubr.bf16.mxu0 %v3147_v2  ;;  %744 = vmatprep.mubr.bf16.mxu1 %v3147_v2 }
  0x5c   :  { %1986 = vmatpush1.bf16.msra.mxu1 %v3086_v27  ;;  %1723 = vmatpush2.bf16.msra.mxu0 %v3108_v24  ;;  %v75_v27 = vld [vmem:[%s4880_s0 + $0x178] sm:$0xff] }
  0x5d   :  { %1987 = vmatprep.subr.bf16.mxu1 %v3147_v2 }
  0x60   :  { %1988 = vmatpush1.bf16.msra.mxu1 %v3087_v31  ;;  %v3763_v31 = vshrl.u32 %v142_v28, 7 }
  0x61   :  { %1989 = vmatprep.subr.bf16.mxu1 %v3147_v2 }
  0x62   :  { %2832 = vmatmul.mubr.msk.bf16.gmra.mxu0 %vm242_vm0, %v3531_v32  ;;  %2856 = vmatmul.mubr.msk.bf16.gmra.mxu1 %vm242_vm0, %v3298_v33  ;;  %v3553_v33 = vpack.c.bf16 %v51_v37, %v50_v36  ;;  %v144_v24 = vsub.s32 0, %v3763_v31 }
  0x63   :  { %481 = vmatprep.mubr.bf16.mxu0 %v3147_v2  ;;  %754 = vmatprep.mubr.bf16.mxu1 %v3147_v2 }
  0x64   :  { %1990 = vmatpush1.bf16.msra.mxu1 %v3089_v35  ;;  %v148_v35 = vsub.s32 1, %v3763_v31 }
  0x65   :  { %1991 = vmatprep.subr.bf16.mxu1 %v3147_v2 }
  0x68   :  { %1992 = vmatpush1.bf16.msra.mxu1 %v3091_v38 }
  0x69   :  { %1993 = vmatprep.subr.bf16.mxu1 %v3147_v2 }
  0x6a   :  { %2833 = vmatmul.mubr.msk.bf16.gmra.mxu0 %vm242_vm0, %v3553_v33  ;;  %2857 = vmatmul.mubr.msk.bf16.gmra.mxu1 %vm242_vm0, %v3331_v42  ;;  %v3575_v42 = vpack.c.bf16 %v53_v41, %v52_v40 }
  0x6b   :  { %491 = vmatprep.mubr.bf16.mxu0 %v3147_v2  ;;  %764 = vmatprep.mubr.bf16.mxu1 %v3147_v2 }
  0x6c   :  { %1994 = vmatpush1.bf16.msra.mxu1 %v3095_v39 }
  0x6d   :  { %1995 = vmatprep.subr.bf16.mxu1 %v3147_v2 }
  0x70   :  { %1996 = vmatpush1.bf16.msra.mxu1 %v3100_v44 }
  0x71   :  { %1997 = vmatprep.subr.bf16.mxu1 %v3147_v2 }
  0x72   :  { %2834 = vmatmul.mubr.msk.bf16.gmra.mxu0 %vm242_vm0, %v3575_v42  ;;  %2858 = vmatmul.mubr.msk.bf16.gmra.mxu1 %vm242_vm0, %v3361_v50  ;;  %v3110_v50 = vld [vmem:[%s4883_s3 + $0xe8] sm:$0xff]  }
  0x73   :  { %501 = vmatprep.mubr.bf16.mxu0 %v3147_v2  ;;  %774 = vmatprep.mubr.bf16.mxu1 %v3147_v2 }
  0x74   :  { %1998 = vmatpush2.bf16.msra.mxu1 %v3105_v45 }
  0x75   :  { %1999 = vmatprep.subr.bf16.mxu1 %v3147_v2 }
  0x78   :  { %2000 = vmatpush2.bf16.msra.mxu1 %v3109_v48 }
  0x79   :  { %2001 = vmatprep.subr.bf16.mxu1 %v3147_v2 }
  0x7a   :  { %2835 = vmatmul.mubr.msk.bf16.gmra.mxu0 %vm242_vm0, %v3597_v49  ;;  %2859 = vmatmul.mubr.msk.bf16.gmra.mxu1 %vm242_vm0, %v3391_v58  ;;  %v3111_v58 = vld [vmem:[%s4883_s3 + $0xe0] sm:$0xff]  }
  0x7b   :  { %511 = vmatprep.mubr.bf16.mxu0 %v3147_v2  ;;  %784 = vmatprep.mubr.bf16.mxu1 %v3147_v2 }
  0x7c   :  { %2002 = vmatpush2.bf16.msra.mxu1 %v3110_v50 }
  0x7d   :  { %2003 = vmatprep.subr.bf16.mxu1 %v3147_v2 }
  0x80   :  { %2004 = vmatpush2.bf16.msra.mxu1 %v3111_v58 }
  0x81   :  { %2005 = vmatprep.subr.bf16.mxu1 %v3147_v2 }
  0x82   :  { %2836 = vmatmul.mubr.msk.bf16.gmra.mxu0 %vm242_vm0, %v3616_v54  ;;  %2860 = vmatmul.mubr.msk.bf16.gmra.mxu1 %vm242_vm0, %v3421_v3  ;;  %v3112_v3 = vld [vmem:[%s4883_s3 + $0xd8] sm:$0xff]  }
  0x83   :  { %521 = vmatprep.mubr.bf16.mxu0 %v3147_v2  ;;  %794 = vmatprep.mubr.bf16.mxu1 %v3147_v2 }
  0x84   :  { %2006 = vmatpush2.bf16.msra.mxu1 %v3112_v3 }
  0x85   :  { %2007 = vmatprep.subr.bf16.mxu1 %v3147_v2 }
  0x8a   :  { %2837 = vmatmul.mubr.msk.bf16.gmra.mxu0 %vm242_vm0, %v3630_v57  ;;  %2861 = vmatmul.mubr.msk.bf16.gmra.mxu1 %vm242_vm0, %v3451_v11  ;;  %v3113_v11 = vld [vmem:[%s4883_s3 + $0xd0] sm:$0xff]  }
  0x8b   :  { %531 = vmatprep.mubr.bf16.mxu0 %v3147_v2  ;;  %804 = vmatprep.mubr.bf16.mxu1 %v3147_v2 }
  0x8c   :  { %2008 = vmatpush2.bf16.msra.mxu1 %v3113_v11 }
  0x8d   :  { %2009 = vmatprep.subr.bf16.mxu1 %v3147_v2 }
  0x90   :  { %2010 = vmatpush2.bf16.msra.mxu1 %v3114_v21 }
  0x91   :  { %2011 = vmatprep.subr.bf16.mxu1 %v3147_v2 }
  0x92   :  { %2838 = vmatmul.mubr.msk.bf16.gmra.mxu0 %vm242_vm0, %v3648_v62  ;;  %2862 = vmatmul.mubr.msk.bf16.gmra.mxu1 %vm242_vm0, %v3475_v19  ;;  %v71_v19 = vld [vmem:[%s4880_s0 + $0x158] sm:$0xff] }
  0x93   :  { %541 = vmatprep.mubr.bf16.mxu0 %v3147_v2  ;;  %814 = vmatprep.mubr.bf16.mxu1 %v3147_v2  ;;  %v3726_v20 = vpack.c.bf16 %v71_v19, %v70_v18 }
  0x94   :  { %2012 = vmatpush2.bf16.msra.mxu1 %v3115_v30 }
  0x9a   :  { %2839 = vmatmul.mubr.msk.bf16.gmra.mxu0 %vm242_vm0, %v3662_v1  ;;  %2863 = vmatmul.mubr.msk.bf16.gmra.mxu1 %vm242_vm0, %v3501_v14  ;;  %v74_v14 = vld [vmem:[%s4880_s0 + $0x170] sm:$0xff] }
  0x9b   :  { %551 = vmatprep.mubr.bf16.mxu0 %v3147_v2  ;;  %824 = vmatprep.mubr.bf16.mxu1 %v3147_v2  ;;  %v3758_v29 = vpack.c.bf16 %v75_v27, %v74_v14 }
  0xa2   :  { %2840 = vmatmul.mubr.msk.bf16.gmra.mxu0 %vm242_vm0, %v3680_v7  ;;  %2864 = vmatmul.mubr.msk.bf16.gmra.mxu1 %vm242_vm0, %v3531_v32  ;;  %v3774_v32 = vld [vmem:[%s4882_s2] sm:$0xf] }
  0xa3   :  { %561 = vmatprep.mubr.bf16.mxu0 %v3147_v2  ;;  %834 = vmatprep.mubr.bf16.mxu1 %v3147_v2  ;;  %v3778_v36 = vrot.slane %v3774_v32, %v144_v24 }
  0xaa   :  { %2841 = vmatmul.mubr.msk.bf16.gmra.mxu0 %vm242_vm0, %v3694_v10  ;;  %2865 = vmatmul.mubr.msk.bf16.gmra.mxu1 %vm242_vm0, %v3553_v33  ;;  %v3783_v33 = vrot.slane %v3774_v32, %v148_v35 }
  0xab   :  { %571 = vmatprep.mubr.bf16.mxu0 %v3147_v2  ;;  %844 = vmatprep.mubr.bf16.mxu1 %v3147_v2 }
  0xb2   :  { %2842 = vmatmul.mubr.msk.bf16.gmra.mxu0 %vm242_vm0, %v3712_v17  ;;  %2866 = vmatmul.mubr.msk.bf16.gmra.mxu1 %vm242_vm0, %v3575_v42 }
  0xb3   :  { %581 = vmatprep.mubr.bf16.mxu0 %v3147_v2  ;;  %854 = vmatprep.mubr.bf16.mxu1 %v3147_v2 }
  0xba   :  { %2843 = vmatmul.mubr.msk.bf16.gmra.mxu0 %vm242_vm0, %v3726_v20  ;;  %2867 = vmatmul.mubr.msk.bf16.gmra.mxu1 %vm242_vm0, %v3597_v49 }
  0xbb   :  { %591 = vmatprep.mubr.bf16.mxu0 %v3147_v2  ;;  %864 = vmatprep.mubr.bf16.mxu1 %v3147_v2 }
  0xc2   :  { %2844 = vmatmul.mubr.msk.bf16.gmra.mxu0 %vm242_vm0, %v3744_v26  ;;  %2868 = vmatmul.mubr.msk.bf16.gmra.mxu1 %vm242_vm0, %v3616_v54 }
  0xc3   :  { %601 = vmatprep.mubr.bf16.mxu0 %v3147_v2  ;;  %874 = vmatprep.mubr.bf16.mxu1 %v3147_v2 }
  0xca   :  { %2845 = vmatmul.mubr.msk.bf16.gmra.mxu0 %vm242_vm0, %v3758_v29  ;;  %2869 = vmatmul.mubr.msk.bf16.gmra.mxu1 %vm242_vm0, %v3630_v57 }
  0xcb   :  { %884 = vmatprep.mubr.bf16.mxu1 %v3147_v2 }
  0xd2   :  { %v373_v37 = vpop.f32.mrf.mxu0  ;;  %v613_v38 = vpop.f32.mrf.mxu1  ;;  %2870 = vmatmul.mubr.msk.bf16.gmra.mxu1 %vm242_vm0, %v3648_v62 }
  0xd3   :  { %894 = vmatprep.mubr.bf16.mxu1 %v3147_v2  ;;  %v374_v39 = vadd.f32 %v373_v37, %v3778_v36  ;;  %v614_v40 = vadd.f32 %v613_v38, %v3778_v36 }
  0xd4   :  { %v375_v41 = vpop.f32.mrf.mxu0  ;;  %v615_v44 = vpop.f32.mrf.mxu1 }
  0xd5   :  { %v376_v42 = vadd.f32 %v375_v41, %v3783_v33  ;;  %v616_v47 = vadd.f32 %v615_v44, %v3783_v33  ;;  %v1045_v50 = vmax.f32 %v374_v39, 0.0  ;;  %v1237_v52 = vmax.f32 %v614_v40, 0.0 }
  0xd6   :  { %v377_v45 = vpop.f32.mrf.mxu0  ;;  %v617_v46 = vpop.f32.mrf.mxu1 }
  0xd7   :  { %v378_v48 = vadd.f32 %v377_v45, %v3778_v36  ;;  %v618_v49 = vadd.f32 %v617_v46, %v3778_v36  ;;  %v1046_v53 = vmax.f32 %v376_v42, 0.0  ;;  %v1238_v63 = vmax.f32 %v616_v47, 0.0 }
  0xd8   :  { %v379_v54 = vpop.f32.mrf.mxu0  ;;  %v619_v55 = vpop.f32.mrf.mxu1 }
  0xd9   :  { %v1049_v56 = vmax.f32 %v378_v48, 0.0  ;;  %v1241_v57 = vmax.f32 %v618_v49, 0.0  ;;  %v380_v58 = vadd.f32 %v379_v54, %v3783_v33  ;;  %v620_v60 = vadd.f32 %v619_v55, %v3783_v33 }
  0xda   :  { %v383_v61 = vpop.f32.mrf.mxu0  ;;  %v623_v62 = vpop.f32.mrf.mxu1  ;;  %2871 = vmatmul.mubr.msk.bf16.gmra.mxu1 %vm242_vm0, %v3662_v1 }
  0xdb   :  { %v3796_v0 = vpack.c.bf16 %v1241_v57, %v1237_v52  ;;  %v1050_v3 = vmax.f32 %v380_v58, 0.0  ;;  %v1242_v5 = vmax.f32 %v620_v60, 0.0  ;;  %904 = vmatprep.mubr.bf16.mxu1 %v3147_v2  ;;  %v1301_v6 = vpack.c.bf16 %v1049_v56, %v1045_v50 }
  0xdc   :  { %v384_v8 = vadd.f32 %v383_v61, %v3778_v36  ;;  %v624_v9 = vadd.f32 %v623_v62, %v3778_v36  ;;  %v385_v11 = vpop.f32.mrf.mxu0  ;;  %v625_v13 = vpop.f32.mrf.mxu1 }
  0xdd   :  { %v386_v16 = vadd.f32 %v385_v11, %v3783_v33  ;;  %v1302_v18 = vpack.c.bf16 %v1050_v3, %v1046_v53  ;;  %v3802_v19 = vpack.c.bf16 %v1242_v5, %v1238_v63  ;;  %v626_v22 = vadd.f32 %v625_v13, %v3783_v33 }
  0xde   :  { %v387_v1 = vpop.f32.mrf.mxu0  ;;  %v627_v21 = vpop.f32.mrf.mxu1  ;;  %v1053_v27 = vmax.f32 %v384_v8, 0.0  ;;  %v1245_v28 = vmax.f32 %v624_v9, 0.0 }
  0xdf   :  { %v388_v23 = vadd.f32 %v387_v1, %v3778_v36  ;;  %v628_v14 = vadd.f32 %v627_v21, %v3778_v36  ;;  %1724 = vmatprep.mubr.bf16.mxu0 %v1302_v18  ;;  %v1054_v30 = vmax.f32 %v386_v16, 0.0  ;;  %v1246_v42 = vmax.f32 %v626_v22, 0.0 }
  0xe0   :  { %v389_v24 = vpop.f32.mrf.mxu0  ;;  %v629_v35 = vpop.f32.mrf.mxu1  ;;  %1725 = vmatmul.mubr.bf16.vlgmr.msra.gmra.mxu0 %v1301_v6 }
  0xe1   :  { %v1057_v37 = vmax.f32 %v388_v23, 0.0  ;;  %v1249_v38 = vmax.f32 %v628_v14, 0.0  ;;  %v390_v39 = vadd.f32 %v389_v24, %v3783_v33  ;;  %v630_v40 = vadd.f32 %v629_v35, %v3783_v33 }
  0xe2   :  { %v393_v41 = vpop.f32.mrf.mxu0  ;;  %v633_v44 = vpop.f32.mrf.mxu1  ;;  %2872 = vmatmul.mubr.msk.bf16.gmra.mxu1 %vm242_vm0, %v3680_v7 }
  0xe3   :  { %v3811_v45 = vpack.c.bf16 %v1249_v38, %v1245_v28  ;;  %v1058_v46 = vmax.f32 %v390_v39, 0.0  ;;  %v1250_v47 = vmax.f32 %v630_v40, 0.0  ;;  %914 = vmatprep.mubr.bf16.mxu1 %v3147_v2  ;;  %v1305_v48 = vpack.c.bf16 %v1057_v37, %v1053_v27 }
  0xe4   :  { %v394_v49 = vadd.f32 %v393_v41, %v3778_v36  ;;  %v634_v50 = vadd.f32 %v633_v44, %v3778_v36  ;;  %v395_v52 = vpop.f32.mrf.mxu0  ;;  %v635_v53 = vpop.f32.mrf.mxu1 }
  0xe5   :  { %v396_v54 = vadd.f32 %v395_v52, %v3783_v33  ;;  %v1306_v55 = vpack.c.bf16 %v1058_v46, %v1054_v30  ;;  %v3817_v56 = vpack.c.bf16 %v1250_v47, %v1246_v42  ;;  %v636_v58 = vadd.f32 %v635_v53, %v3783_v33 }
  0xe6   :  { %v397_v7 = vpop.f32.mrf.mxu0  ;;  %v637_v57 = vpop.f32.mrf.mxu1  ;;  %v1061_v62 = vmax.f32 %v394_v49, 0.0  ;;  %v1253_v63 = vmax.f32 %v634_v50, 0.0 }
  0xe7   :  { %v398_v60 = vadd.f32 %v397_v7, %v3778_v36  ;;  %v638_v61 = vadd.f32 %v637_v57, %v3778_v36  ;;  %1732 = vmatprep.mubr.bf16.mxu0 %v1306_v55  ;;  %v1062_v3 = vmax.f32 %v396_v54, 0.0  ;;  %v1254_v1 = vmax.f32 %v636_v58, 0.0 }
  0xe8   :  { %v399_v5 = vpop.f32.mrf.mxu0  ;;  %v639_v6 = vpop.f32.mrf.mxu1  ;;  %1733 = vmatmul.mubr.bf16.gmra.mxu0 %v1305_v48 }
  0xe9   :  { %v1065_v8 = vmax.f32 %v398_v60, 0.0  ;;  %v1257_v9 = vmax.f32 %v638_v61, 0.0  ;;  %v400_v11 = vadd.f32 %v399_v5, %v3783_v33  ;;  %v640_v13 = vadd.f32 %v639_v6, %v3783_v33 }
  0xea   :  { %v403_v16 = vpop.f32.mrf.mxu0  ;;  %v643_v18 = vpop.f32.mrf.mxu1  ;;  %2873 = vmatmul.mubr.msk.bf16.gmra.mxu1 %vm242_vm0, %v3694_v10 }
  0xeb   :  { %v3826_v21 = vpack.c.bf16 %v1257_v9, %v1253_v63  ;;  %v1066_v22 = vmax.f32 %v400_v11, 0.0  ;;  %v1258_v23 = vmax.f32 %v640_v13, 0.0  ;;  %924 = vmatprep.mubr.bf16.mxu1 %v3147_v2  ;;  %v1309_v14 = vpack.c.bf16 %v1065_v8, %v1061_v62 }
  0xec   :  { %v404_v27 = vadd.f32 %v403_v16, %v3778_v36  ;;  %v644_v28 = vadd.f32 %v643_v18, %v3778_v36  ;;  %v405_v30 = vpop.f32.mrf.mxu0  ;;  %v645_v24 = vpop.f32.mrf.mxu1 }
  0xed   :  { %v406_v35 = vadd.f32 %v405_v30, %v3783_v33  ;;  %v1310_v37 = vpack.c.bf16 %v1066_v22, %v1062_v3  ;;  %v3832_v38 = vpack.c.bf16 %v1258_v23, %v1254_v1  ;;  %v646_v40 = vadd.f32 %v645_v24, %v3783_v33 }
  0xee   :  { %v407_v10 = vpop.f32.mrf.mxu0  ;;  %v647_v39 = vpop.f32.mrf.mxu1  ;;  %v1069_v42 = vmax.f32 %v404_v27, 0.0  ;;  %v1261_v46 = vmax.f32 %v644_v28, 0.0 }
  0xef   :  { %v408_v41 = vadd.f32 %v407_v10, %v3778_v36  ;;  %v648_v44 = vadd.f32 %v647_v39, %v3778_v36  ;;  %1740 = vmatprep.mubr.bf16.mxu0 %v1310_v37  ;;  %v1070_v47 = vmax.f32 %v406_v35, 0.0  ;;  %v1262_v57 = vmax.f32 %v646_v40, 0.0 }
  0xf0   :  { %v409_v48 = vpop.f32.mrf.mxu0  ;;  %v649_v49 = vpop.f32.mrf.mxu1  ;;  %1741 = vmatmul.mubr.bf16.gmra.mxu0 %v1309_v14 }
  0xf1   :  { %v1073_v50 = vmax.f32 %v408_v41, 0.0  ;;  %v1265_v52 = vmax.f32 %v648_v44, 0.0  ;;  %v410_v53 = vadd.f32 %v409_v48, %v3783_v33  ;;  %v650_v54 = vadd.f32 %v649_v49, %v3783_v33 }
  0xf2   :  { %v413_v55 = vpop.f32.mrf.mxu0  ;;  %v653_v7 = vpop.f32.mrf.mxu1  ;;  %2874 = vmatmul.mubr.msk.bf16.gmra.mxu1 %vm242_vm0, %v3712_v17 }
  0xf3   :  { %v3841_v58 = vpack.c.bf16 %v1265_v52, %v1261_v46  ;;  %v1074_v60 = vmax.f32 %v410_v53, 0.0  ;;  %v1266_v61 = vmax.f32 %v650_v54, 0.0  ;;  %934 = vmatprep.mubr.bf16.mxu1 %v3147_v2  ;;  %v1313_v62 = vpack.c.bf16 %v1073_v50, %v1069_v42 }
  0xf4   :  { %v414_v63 = vadd.f32 %v413_v55, %v3778_v36  ;;  %v654_v3 = vadd.f32 %v653_v7, %v3778_v36  ;;  %v415_v5 = vpop.f32.mrf.mxu0  ;;  %v655_v6 = vpop.f32.mrf.mxu1 }
  0xf5   :  { %v416_v8 = vadd.f32 %v415_v5, %v3783_v33  ;;  %v1314_v9 = vpack.c.bf16 %v1074_v60, %v1070_v47  ;;  %v3847_v11 = vpack.c.bf16 %v1266_v61, %v1262_v57  ;;  %v656_v16 = vadd.f32 %v655_v6, %v3783_v33 }
  0xf6   :  { %v417_v17 = vpop.f32.mrf.mxu0  ;;  %v657_v13 = vpop.f32.mrf.mxu1  ;;  %v1077_v22 = vmax.f32 %v414_v63, 0.0  ;;  %v1269_v23 = vmax.f32 %v654_v3, 0.0 }
  0xf7   :  { %v418_v18 = vadd.f32 %v417_v17, %v3778_v36  ;;  %v658_v1 = vadd.f32 %v657_v13, %v3778_v36  ;;  %1748 = vmatprep.mubr.bf16.mxu0 %v1314_v9  ;;  %v1078_v14 = vmax.f32 %v416_v8, 0.0  ;;  %v1270_v40 = vmax.f32 %v656_v16, 0.0 }
  0xf8   :  { %v419_v27 = vpop.f32.mrf.mxu0  ;;  %v659_v28 = vpop.f32.mrf.mxu1  ;;  %1749 = vmatmul.mubr.bf16.gmra.mxu0 %v1313_v62 }
  0xf9   :  { %v1081_v30 = vmax.f32 %v418_v18, 0.0  ;;  %v1273_v24 = vmax.f32 %v658_v1, 0.0  ;;  %v420_v35 = vadd.f32 %v419_v27, %v3783_v33  ;;  %v660_v37 = vadd.f32 %v659_v28, %v3783_v33 }
  0xfa   :  { %v423_v10 = vpop.f32.mrf.mxu0  ;;  %v663_v39 = vpop.f32.mrf.mxu1  ;;  %2875 = vmatmul.mubr.msk.bf16.gmra.mxu1 %vm242_vm0, %v3726_v20 }
  0xfb   :  { %v3856_v41 = vpack.c.bf16 %v1273_v24, %v1269_v23  ;;  %v1082_v44 = vmax.f32 %v420_v35, 0.0  ;;  %v1274_v42 = vmax.f32 %v660_v37, 0.0  ;;  %944 = vmatprep.mubr.bf16.mxu1 %v3147_v2  ;;  %v1317_v46 = vpack.c.bf16 %v1081_v30, %v1077_v22 }
  0xfc   :  { %v424_v47 = vadd.f32 %v423_v10, %v3778_v36  ;;  %v664_v48 = vadd.f32 %v663_v39, %v3778_v36  ;;  %v425_v49 = vpop.f32.mrf.mxu0  ;;  %v665_v50 = vpop.f32.mrf.mxu1 }
  0xfd   :  { %v426_v52 = vadd.f32 %v425_v49, %v3783_v33  ;;  %v1318_v53 = vpack.c.bf16 %v1082_v44, %v1078_v14  ;;  %v3862_v54 = vpack.c.bf16 %v1274_v42, %v1270_v40  ;;  %v666_v7 = vadd.f32 %v665_v50, %v3783_v33 }
  0xfe   :  { %v427_v20 = vpop.f32.mrf.mxu0  ;;  %v667_v55 = vpop.f32.mrf.mxu1  ;;  %v1085_v61 = vmax.f32 %v424_v47, 0.0  ;;  %v1277_v62 = vmax.f32 %v664_v48, 0.0 }
  0xff   :  { %v428_v57 = vadd.f32 %v427_v20, %v3778_v36  ;;  %v668_v60 = vadd.f32 %v667_v55, %v3778_v36  ;;  %1756 = vmatprep.mubr.bf16.mxu0 %v1318_v53  ;;  %v1086_v63 = vmax.f32 %v426_v52, 0.0  ;;  %v1278_v18 = vmax.f32 %v666_v7, 0.0 }
 0x100   :  { %v429_v3 = vpop.f32.mrf.mxu0  ;;  %v669_v5 = vpop.f32.mrf.mxu1  ;;  %1757 = vmatmul.mubr.bf16.gmra.mxu0 %v1317_v46 }
 0x101   :  { %v1089_v6 = vmax.f32 %v428_v57, 0.0  ;;  %v1281_v8 = vmax.f32 %v668_v60, 0.0  ;;  %v430_v9 = vadd.f32 %v429_v3, %v3783_v33  ;;  %v670_v17 = vadd.f32 %v669_v5, %v3783_v33 }
 0x102   :  { %v433_v13 = vpop.f32.mrf.mxu0  ;;  %v673_v16 = vpop.f32.mrf.mxu1  ;;  %2876 = vmatmul.mubr.msk.bf16.gmra.mxu1 %vm242_vm0, %v3744_v26 }
 0x103   :  { %v3871_v1 = vpack.c.bf16 %v1281_v8, %v1277_v62  ;;  %v1090_v22 = vmax.f32 %v430_v9, 0.0  ;;  %v1282_v23 = vmax.f32 %v670_v17, 0.0  ;;  %954 = vmatprep.mubr.bf16.mxu1 %v3147_v2  ;;  %v1321_v14 = vpack.c.bf16 %v1089_v6, %v1085_v61 }
 0x104   :  { %v434_v27 = vadd.f32 %v433_v13, %v3778_v36  ;;  %v674_v28 = vadd.f32 %v673_v16, %v3778_v36  ;;  %v435_v30 = vpop.f32.mrf.mxu0  ;;  %v675_v24 = vpop.f32.mrf.mxu1 }
 0x105   :  { %v436_v35 = vadd.f32 %v435_v30, %v3783_v33  ;;  %v1322_v37 = vpack.c.bf16 %v1090_v22, %v1086_v63  ;;  %v3877_v10 = vpack.c.bf16 %v1282_v23, %v1278_v18  ;;  %v676_v40 = vadd.f32 %v675_v24, %v3783_v33 }
 0x106   :  { %v437_v26 = vpop.f32.mrf.mxu0  ;;  %v677_v39 = vpop.f32.mrf.mxu1  ;;  %v1093_v46 = vmax.f32 %v434_v27, 0.0  ;;  %v1285_v47 = vmax.f32 %v674_v28, 0.0 }
 0x107   :  { %v438_v44 = vadd.f32 %v437_v26, %v3778_v36  ;;  %v678_v42 = vadd.f32 %v677_v39, %v3778_v36  ;;  %1764 = vmatprep.mubr.bf16.mxu0 %v1322_v37  ;;  %v1094_v48 = vmax.f32 %v436_v35, 0.0  ;;  %v1286_v60 = vmax.f32 %v676_v40, 0.0 }
 0x108   :  { %v439_v49 = vpop.f32.mrf.mxu0  ;;  %v679_v50 = vpop.f32.mrf.mxu1  ;;  %1765 = vmatmul.mubr.bf16.gmra.mxu0 %v1321_v14 }
 0x109   :  { %v1097_v52 = vmax.f32 %v438_v44, 0.0  ;;  %v1289_v53 = vmax.f32 %v678_v42, 0.0  ;;  %v440_v20 = vadd.f32 %v439_v49, %v3783_v33  ;;  %v680_v55 = vadd.f32 %v679_v50, %v3783_v33 }
 0x10a   :  { %v443_v7 = vpop.f32.mrf.mxu0  ;;  %v683_v57 = vpop.f32.mrf.mxu1  ;;  %2877 = vmatmul.mubr.msk.bf16.gmra.mxu1 %vm242_vm0, %v3758_v29 }
 0x10b   :  { %v3886_v61 = vpack.c.bf16 %v1289_v53, %v1285_v47  ;;  %v1098_v62 = vmax.f32 %v440_v20, 0.0  ;;  %v1290_v63 = vmax.f32 %v680_v55, 0.0  ;;  %964 = vmatprep.mubr.bf16.mxu1 %v3147_v2  ;;  %v1325_v3 = vpack.c.bf16 %v1097_v52, %v1093_v46 }
 0x10c   :  { %v444_v5 = vadd.f32 %v443_v7, %v3778_v36  ;;  %v684_v6 = vadd.f32 %v683_v57, %v3778_v36  ;;  %v445_v8 = vpop.f32.mrf.mxu0  ;;  %v685_v9 = vpop.f32.mrf.mxu1 }
 0x10d   :  { %4888 = vst [vmem:[#allocation5_spill] sm:$0xff] %v3886_v61  ;;  %v446_v17 = vadd.f32 %v445_v8, %v3783_v33  ;;  %v1326_v13 = vpack.c.bf16 %v1098_v62, %v1094_v48  ;;  %v3892_v16 = vpack.c.bf16 %v1290_v63, %v1286_v60  ;;  %v686_v22 = vadd.f32 %v685_v9, %v3783_v33 }
 0x10e   :  { %v447_v29 = vpop.f32.mrf.mxu0  ;;  %v687_v18 = vpop.f32.mrf.mxu1  ;;  %v1101_v27 = vmax.f32 %v444_v5, 0.0  ;;  %v1293_v28 = vmax.f32 %v684_v6, 0.0 }
 0x10f   :  { %v448_v23 = vadd.f32 %v447_v29, %v3778_v36  ;;  %v688_v14 = vadd.f32 %v687_v18, %v3778_v36  ;;  %1772 = vmatprep.mubr.bf16.mxu0 %v1326_v13  ;;  %v1102_v30 = vmax.f32 %v446_v17, 0.0  ;;  %v1294_v46 = vmax.f32 %v686_v22, 0.0 }
 0x110   :  { %v449_v24 = vpop.f32.mrf.mxu0  ;;  %v689_v35 = vpop.f32.mrf.mxu1  ;;  %1773 = vmatmul.mubr.bf16.gmra.mxu0 %v1325_v3 }
 0x111   :  { %v1105_v37 = vmax.f32 %v448_v23, 0.0  ;;  %v1297_v26 = vmax.f32 %v688_v14, 0.0  ;;  %v450_v39 = vadd.f32 %v449_v24, %v3783_v33  ;;  %v690_v40 = vadd.f32 %v689_v35, %v3783_v33 }
 0x112   :  { %v453_v44 = vpop.f32.mrf.mxu0  ;;  %v3899_v42 = vpop.f32.mrf.mxu1  ;;  %2878 = vmatmul.mubr.msk.bf16.gmra.mxu1 %vm242_vm0, %v3234_v15 }
 0x113   :  { %v3903_v47 = vpack.c.bf16 %v1297_v26, %v1293_v28  ;;  %v1106_v48 = vmax.f32 %v450_v39, 0.0  ;;  %v1298_v49 = vmax.f32 %v690_v40, 0.0  ;;  %974 = vmatprep.mubr.bf16.mxu1 %v3147_v2  ;;  %v1329_v50 = vpack.c.bf16 %v1105_v37, %v1101_v27 }
 0x114   :  { %v454_v52 = vadd.f32 %v453_v44, %v3778_v36  ;;  %v455_v53 = vpop.f32.mrf.mxu0  ;;  %v3907_v20 = vpop.f32.mrf.mxu1 }
 0x115   :  { %4889 = vst [vmem:[#allocation6_spill] sm:$0xff] %v3903_v47  ;;  %v456_v55 = vadd.f32 %v455_v53, %v3783_v33  ;;  %v1330_v7 = vpack.c.bf16 %v1106_v48, %v1102_v30  ;;  %v3910_v57 = vpack.c.bf16 %v1298_v49, %v1294_v46 }
 0x116   :  { %v457_v60 = vpop.f32.mrf.mxu0  ;;  %v3912_v15 = vpop.f32.mrf.mxu1  ;;  %v1109_v63 = vmax.f32 %v454_v52, 0.0 }
 0x117   :  { %4890 = vst [vmem:[#allocation7_spill] sm:$0xff] %v3910_v57  ;;  %v458_v62 = vadd.f32 %v457_v60, %v3778_v36  ;;  %1780 = vmatprep.mubr.bf16.mxu0 %v1330_v7  ;;  %v1110_v6 = vmax.f32 %v456_v55, 0.0 }
 0x118   :  { %v459_v3 = vpop.f32.mrf.mxu0  ;;  %v3915_v5 = vpop.f32.mrf.mxu1  ;;  %1781 = vmatmul.mubr.bf16.gmra.mxu0 %v1329_v50 }
 0x119   :  { %v1113_v8 = vmax.f32 %v458_v62, 0.0  ;;  %v460_v9 = vadd.f32 %v459_v3, %v3783_v33 }
 0x11a   :  { %v463_v17 = vpop.f32.mrf.mxu0  ;;  %v3918_v13 = vpop.f32.mrf.mxu1  ;;  %2879 = vmatmul.mubr.msk.bf16.gmra.mxu1 %vm242_vm0, %v3269_v25  ;;  %v3116_v25 = vld [vmem:[%s4885_s5 + $0x38] sm:$0xff]  }
 0x11b   :  { %v1114_v29 = vmax.f32 %v460_v9, 0.0  ;;  %984 = vmatprep.mubr.bf16.mxu1 %v3147_v2  ;;  %v1333_v18 = vpack.c.bf16 %v1113_v8, %v1109_v63  ;;  %v464_v22 = vadd.f32 %v463_v17, %v3778_v36  ;;  %2968 = vmatprep.subr.bf16.mxu0 %v3116_v25 }
 0x11c   :  { %v465_v23 = vpop.f32.mrf.mxu0  ;;  %v3924_v14 = vpop.f32.mrf.mxu1  ;;  %2969 = vmatpush3.bf16.msra.mxu0 %v3116_v25 }
 0x11d   :  { %v466_v27 = vadd.f32 %v465_v23, %v3783_v33  ;;  %v1334_v28 = vpack.c.bf16 %v1114_v29, %v1110_v6  ;;  %v1117_v37 = vmax.f32 %v464_v22, 0.0 }
 0x11e   :  { %v467_v30 = vpop.f32.mrf.mxu0  ;;  %v3927_v24 = vpop.f32.mrf.mxu1 }
 0x11f   :  { %v468_v35 = vadd.f32 %v467_v30, %v3778_v36  ;;  %1788 = vmatprep.mubr.bf16.mxu0 %v1334_v28  ;;  %v1118_v40 = vmax.f32 %v466_v27, 0.0 }
 0x120   :  { %v469_v26 = vpop.f32.mrf.mxu0  ;;  %v3933_v39 = vpop.f32.mrf.mxu1  ;;  %1789 = vmatmul.mubr.bf16.gmra.mxu0 %v1333_v18 }
 0x121   :  { %v1121_v44 = vmax.f32 %v468_v35, 0.0  ;;  %v470_v46 = vadd.f32 %v469_v26, %v3783_v33 }
 0x122   :  { %v473_v48 = vpop.f32.mrf.mxu0  ;;  %v3936_v49 = vpop.f32.mrf.mxu1  ;;  %2880 = vmatmul.mubr.msk.bf16.gmra.mxu1 %vm242_vm0, %v3300_v34 }
 0x123   :  { %v1122_v50 = vmax.f32 %v470_v46, 0.0  ;;  %994 = vmatprep.mubr.bf16.mxu1 %v3147_v2  ;;  %v1337_v52 = vpack.c.bf16 %v1121_v44, %v1117_v37  ;;  %v474_v53 = vadd.f32 %v473_v48, %v3778_v36 }
 0x124   :  { %v475_v55 = vpop.f32.mrf.mxu0  ;;  %v3942_v7 = vpop.f32.mrf.mxu1 }
 0x125   :  { %v476_v60 = vadd.f32 %v475_v55, %v3783_v33  ;;  %v1338_v62 = vpack.c.bf16 %v1122_v50, %v1118_v40  ;;  %v1125_v34 = vmax.f32 %v474_v53, 0.0 }
 0x126   :  { %v477_v63 = vpop.f32.mrf.mxu0  ;;  %v3945_v3 = vpop.f32.mrf.mxu1 }
 0x127   :  { %v478_v6 = vadd.f32 %v477_v63, %v3778_v36  ;;  %1796 = vmatprep.mubr.bf16.mxu0 %v1338_v62  ;;  %v1126_v17 = vmax.f32 %v476_v60, 0.0 }
 0x128   :  { %v479_v8 = vpop.f32.mrf.mxu0  ;;  %v3948_v9 = vpop.f32.mrf.mxu1  ;;  %1797 = vmatmul.mubr.bf16.gmra.mxu0 %v1337_v52 }
 0x129   :  { %v1129_v29 = vmax.f32 %v478_v6, 0.0  ;;  %v480_v18 = vadd.f32 %v479_v8, %v3783_v33 }
 0x12a   :  { %v483_v22 = vpop.f32.mrf.mxu0  ;;  %v3951_v23 = vpop.f32.mrf.mxu1  ;;  %2881 = vmatmul.mubr.msk.bf16.gmra.mxu1 %vm242_vm0, %v3333_v43 }
 0x12b   :  { %v1130_v27 = vmax.f32 %v480_v18, 0.0  ;;  %1004 = vmatprep.mubr.bf16.mxu1 %v3147_v2  ;;  %v1341_v28 = vpack.c.bf16 %v1129_v29, %v1125_v34  ;;  %v484_v30 = vadd.f32 %v483_v22, %v3778_v36 }
 0x12c   :  { %v485_v35 = vpop.f32.mrf.mxu0  ;;  %v3957_v25 = vpop.f32.mrf.mxu1 }
 0x12d   :  { %v486_v37 = vadd.f32 %v485_v35, %v3783_v33  ;;  %v1342_v26 = vpack.c.bf16 %v1130_v27, %v1126_v17  ;;  %v1133_v48 = vmax.f32 %v484_v30, 0.0 }
 0x12e   :  { %v487_v40 = vpop.f32.mrf.mxu0  ;;  %v3960_v44 = vpop.f32.mrf.mxu1 }
 0x12f   :  { %v488_v46 = vadd.f32 %v487_v40, %v3778_v36  ;;  %1804 = vmatprep.mubr.bf16.mxu0 %v1342_v26  ;;  %v1134_v52 = vmax.f32 %v486_v37, 0.0 }
 0x130   :  { %v489_v43 = vpop.f32.mrf.mxu0  ;;  %v3963_v50 = vpop.f32.mrf.mxu1  ;;  %1805 = vmatmul.mubr.bf16.gmra.mxu0 %v1341_v28 }
 0x131   :  { %v1137_v53 = vmax.f32 %v488_v46, 0.0  ;;  %v490_v55 = vadd.f32 %v489_v43, %v3783_v33  ;;  %v156_v43 = vsub.s32 3, %v3763_v31 }
 0x132   :  { %v493_v60 = vpop.f32.mrf.mxu0  ;;  %v3966_v62 = vpop.f32.mrf.mxu1  ;;  %2882 = vmatmul.mubr.msk.bf16.gmra.mxu1 %vm242_vm0, %v3363_v51 }
 0x133   :  { %v1138_v63 = vmax.f32 %v490_v55, 0.0  ;;  %1014 = vmatprep.mubr.bf16.mxu1 %v3147_v2  ;;  %v1345_v6 = vpack.c.bf16 %v1137_v53, %v1133_v48  ;;  %v494_v34 = vadd.f32 %v493_v60, %v3778_v36 }
 0x134   :  { %v495_v8 = vpop.f32.mrf.mxu0  ;;  %v3972_v17 = vpop.f32.mrf.mxu1 }
 0x135   :  { %v496_v29 = vadd.f32 %v495_v8, %v3783_v33  ;;  %v1346_v18 = vpack.c.bf16 %v1138_v63, %v1134_v52  ;;  %v1141_v30 = vmax.f32 %v494_v34, 0.0 }
 0x136   :  { %v497_v22 = vpop.f32.mrf.mxu0  ;;  %v3975_v27 = vpop.f32.mrf.mxu1 }
 0x137   :  { %v498_v28 = vadd.f32 %v497_v22, %v3778_v36  ;;  %1812 = vmatprep.mubr.bf16.mxu0 %v1346_v18  ;;  %v1142_v37 = vmax.f32 %v496_v29, 0.0  ;;  %v3994_v18 = vrot.slane %v3774_v32, %v156_v43  ;;  %v3117_v22 = vld [vmem:[%s4885_s5 + $0x30] sm:$0xff]   ;;  %v152_v43 = vsub.s32 2, %v3763_v31 }
 0x138   :  { %v499_v51 = vpop.f32.mrf.mxu0  ;;  %v3978_v35 = vpop.f32.mrf.mxu1  ;;  %1813 = vmatmul.mubr.bf16.gmra.mxu0 %v1345_v6  ;;  %2970 = vmatprep.subr.bf16.mxu0 %v3117_v22 }
 0x139   :  { %v1145_v26 = vmax.f32 %v498_v28, 0.0  ;;  %v500_v40 = vadd.f32 %v499_v51, %v3783_v33  ;;  %2971 = vmatpush3.bf16.msra.mxu0 %v3117_v22  ;;  %v4018_v47 = vrot.slane %v3774_v32, %v152_v43 }
 0x13a   :  { %v503_v46 = vpop.f32.mrf.mxu0  ;;  %v3981_v48 = vpop.f32.mrf.mxu1  ;;  %2883 = vmatmul.mubr.msk.bf16.gmra.mxu1 %vm242_vm0, %v3393_v59 }
 0x13b   :  { %v1146_v52 = vmax.f32 %v500_v40, 0.0  ;;  %1024 = vmatprep.mubr.bf16.mxu1 %v3147_v2  ;;  %v1349_v53 = vpack.c.bf16 %v1145_v26, %v1141_v30  ;;  %v504_v55 = vadd.f32 %v503_v46, %v3778_v36 }
 0x13c   :  { %v505_v60 = vpop.f32.mrf.mxu0  ;;  %v3988_v63 = vpop.f32.mrf.mxu1 }
 0x13d   :  { %v506_v6 = vadd.f32 %v505_v60, %v3783_v33  ;;  %v1350_v34 = vpack.c.bf16 %v1146_v52, %v1142_v37  ;;  %v1149_v28 = vmax.f32 %v504_v55, 0.0  ;;  %v733_v37 = vadd.f32 %v3915_v5, %v3994_v18 }
 0x13e   :  { %v507_v8 = vpop.f32.mrf.mxu0  ;;  %v3991_v29 = vpop.f32.mrf.mxu1 }
 0x13f   :  { %v508_v59 = vadd.f32 %v507_v8, %v3778_v36  ;;  %1820 = vmatprep.mubr.bf16.mxu0 %v1350_v34  ;;  %v1150_v26 = vmax.f32 %v506_v6, 0.0  ;;  %v1052_v31 = vmax.f32 %v733_v37, 0.0 }
 0x140   :  { %v509_v30 = vpop.f32.mrf.mxu0  ;;  %v4000_v51 = vpop.f32.mrf.mxu1  ;;  %1821 = vmatmul.mubr.bf16.gmra.mxu0 %v1349_v53  ;;  %v729_v53 = vadd.f32 %v3907_v20, %v3994_v18 }
 0x141   :  { %v1153_v40 = vmax.f32 %v508_v59, 0.0  ;;  %v510_v46 = vadd.f32 %v509_v30, %v3783_v33 }
 0x142   :  { %v513_v52 = vpop.f32.mrf.mxu0  ;;  %v4006_v60 = vpop.f32.mrf.mxu1  ;;  %2884 = vmatmul.mubr.msk.bf16.gmra.mxu1 %vm242_vm0, %v3423_v4  ;;  %v1048_v20 = vmax.f32 %v729_v53, 0.0  ;;  %v727_v53 = vadd.f32 %v3899_v42, %v4018_v47 }
 0x143   :  { %v1154_v55 = vmax.f32 %v510_v46, 0.0  ;;  %1034 = vmatprep.mubr.bf16.mxu1 %v3147_v2  ;;  %v1353_v5 = vpack.c.bf16 %v1153_v40, %v1149_v28  ;;  %v514_v6 = vadd.f32 %v513_v52, %v3778_v36  ;;  %v731_v2 = vadd.f32 %v3912_v15, %v4018_v47 }
 0x144   :  { %v515_v34 = vpop.f32.mrf.mxu0  ;;  %v4014_v8 = vpop.f32.mrf.mxu1  ;;  %v743_v28 = vadd.f32 %v3933_v39, %v3994_v18 }
 0x145   :  { %v516_v59 = vadd.f32 %v515_v34, %v3783_v33  ;;  %v1354_v30 = vpack.c.bf16 %v1154_v55, %v1150_v26  ;;  %v1157_v37 = vmax.f32 %v514_v6, 0.0  ;;  %v1304_v55 = vpack.c.bf16 %v1052_v31, %v1048_v20 }
 0x146   :  { %v517_v4 = vpop.f32.mrf.mxu0  ;;  %v4020_v22 = vpop.f32.mrf.mxu1  ;;  %v739_v34 = vadd.f32 %v3924_v14, %v3994_v18  ;;  %v1060_v6 = vmax.f32 %v743_v28, 0.0  ;;  %v1047_v14 = vmax.f32 %v727_v53, 0.0 }
 0x147   :  { %v518_v46 = vadd.f32 %v517_v4, %v3778_v36  ;;  %1828 = vmatprep.mubr.bf16.mxu0 %v1354_v30  ;;  %v1158_v32 = vmax.f32 %v516_v59, 0.0 }
 0x148   :  { %v519_v40 = vpop.f32.mrf.mxu0  ;;  %v4027_v52 = vpop.f32.mrf.mxu1  ;;  %1829 = vmatmul.mubr.bf16.gmra.mxu0 %v1353_v5  ;;  %v1051_v5 = vmax.f32 %v731_v2, 0.0  ;;  %v741_v2 = vadd.f32 %v3927_v24, %v4018_v47  ;;  %v749_v24 = vadd.f32 %v3942_v7, %v3994_v18 }
 0x149   :  { %v1161_v26 = vmax.f32 %v518_v46, 0.0  ;;  %v520_v43 = vadd.f32 %v519_v40, %v3783_v33  ;;  %v1056_v40 = vmax.f32 %v739_v34, 0.0 }
 0x14a   :  { %v523_v15 = vpop.f32.mrf.mxu0  ;;  %v4034_v30 = vpop.f32.mrf.mxu1  ;;  %2885 = vmatmul.mubr.msk.bf16.gmra.mxu1 %vm242_vm0, %v3453_v12 }
 0x14b   :  { %v1162_v39 = vmax.f32 %v520_v43, 0.0  ;;  %2013 = vmatprep.mubr.bf16.mxu1 %v1304_v55  ;;  %v1357_v59 = vpack.c.bf16 %v1161_v26, %v1157_v37  ;;  %v524_v4 = vadd.f32 %v523_v15, %v3778_v36  ;;  %v1303_v43 = vpack.c.bf16 %v1051_v5, %v1047_v14 }
 0x14c   :  { %v525_v31 = vpop.f32.mrf.mxu0  ;;  %v4039_v20 = vpop.f32.mrf.mxu1  ;;  %v1308_v55 = vpack.c.bf16 %v1060_v6, %v1056_v40  ;;  %v1059_v6 = vmax.f32 %v741_v2, 0.0  ;;  %v751_v2 = vadd.f32 %v3945_v3, %v4018_v47 }
 0x14d   :  { %v526_v42 = vadd.f32 %v525_v31, %v3783_v33  ;;  %v1358_v46 = vpack.c.bf16 %v1162_v39, %v1158_v32  ;;  %v1165_v28 = vmax.f32 %v524_v4, 0.0  ;;  %v753_v32 = vadd.f32 %v3948_v9, %v3994_v18 }
 0x14e   :  { %v527_v57 = vpop.f32.mrf.mxu0  ;;  %v4042_v61 = vpop.f32.mrf.mxu1 }
 0x14f   :  { %v528_v12 = vadd.f32 %v527_v57, %v3778_v36  ;;  %1836 = vmatprep.mubr.bf16.mxu0 %v1358_v46  ;;  %v1166_v53 = vmax.f32 %v526_v42, 0.0  ;;  %v737_v57 = vadd.f32 %v3918_v13, %v4018_v47  ;;  %v1068_v46 = vmax.f32 %v753_v32, 0.0 }
 0x150   :  { %v529_v37 = vpop.f32.mrf.mxu0  ;;  %v4047_v26 = vpop.f32.mrf.mxu1  ;;  %1837 = vmatmul.mubr.bf16.gmra.mxu0 %v1357_v59 }
 0x151   :  { %v1169_v34 = vmax.f32 %v528_v12, 0.0  ;;  %v530_v15 = vadd.f32 %v529_v37, %v3783_v33  ;;  %v1055_v40 = vmax.f32 %v737_v57, 0.0 }
 0x152   :  { %v533_v39 = vpop.f32.mrf.mxu0  ;;  %v4054_v5 = vpop.f32.mrf.mxu1  ;;  %2014 = vmatmul.mubr.bf16.vlgmr.msra.gmra.mxu1 %v1303_v43  ;;  %v1064_v43 = vmax.f32 %v749_v24, 0.0 }
 0x153   :  { %v1170_v4 = vmax.f32 %v530_v15, 0.0  ;;  %2021 = vmatprep.mubr.bf16.mxu1 %v1308_v55  ;;  %v1361_v59 = vpack.c.bf16 %v1169_v34, %v1165_v28  ;;  %v534_v9 = vadd.f32 %v533_v39, %v3778_v36  ;;  %v1307_v55 = vpack.c.bf16 %v1059_v6, %v1055_v40 }
 0x154   :  { %v535_v31 = vpop.f32.mrf.mxu0  ;;  %v4059_v42 = vpop.f32.mrf.mxu1  ;;  %v763_v28 = vadd.f32 %v3963_v50, %v3994_v18  ;;  %v1312_v24 = vpack.c.bf16 %v1068_v46, %v1064_v43  ;;  %v759_v6 = vadd.f32 %v3957_v25, %v3994_v18 }
 0x155   :  { %v536_v14 = vadd.f32 %v535_v31, %v3783_v33  ;;  %v1362_v13 = vpack.c.bf16 %v1170_v4, %v1166_v53  ;;  %v1173_v34 = vmax.f32 %v534_v9, 0.0  ;;  %v747_v4 = vadd.f32 %v3936_v49, %v4018_v47 }
 0x156   :  { %v537_v12 = vpop.f32.mrf.mxu0  ;;  %v4062_v37 = vpop.f32.mrf.mxu1  ;;  %v1067_v9 = vmax.f32 %v751_v2, 0.0  ;;  %v3118_v2 = vld [vmem:[%s4885_s5 + $0x28] sm:$0xff]  }
 0x157   :  { %v538_v7 = vadd.f32 %v537_v12, %v3778_v36  ;;  %1844 = vmatprep.mubr.bf16.mxu0 %v1362_v13  ;;  %v1174_v53 = vmax.f32 %v536_v14, 0.0  ;;  %v1076_v13 = vmax.f32 %v763_v28, 0.0  ;;  %v1063_v43 = vmax.f32 %v747_v4, 0.0  ;;  %2972 = vmatprep.subr.bf16.mxu0 %v3118_v2 }
 0x158   :  { %v539_v32 = vpop.f32.mrf.mxu0  ;;  %v4069_v15 = vpop.f32.mrf.mxu1  ;;  %1845 = vmatmul.mubr.bf16.gmra.mxu0 %v1361_v59  ;;  %v773_v4 = vadd.f32 %v3978_v35, %v3994_v18 }
 0x159   :  { %v1177_v57 = vmax.f32 %v538_v7, 0.0  ;;  %v540_v39 = vadd.f32 %v539_v32, %v3783_v33  ;;  %v1072_v7 = vmax.f32 %v759_v6, 0.0  ;;  %v1311_v28 = vpack.c.bf16 %v1067_v9, %v1063_v43  ;;  %2973 = vmatpush3.bf16.msra.mxu0 %v3118_v2 }
 0x15a   :  { %v543_v3 = vpop.f32.mrf.mxu0  ;;  %v4076_v31 = vpop.f32.mrf.mxu1  ;;  %2022 = vmatmul.mubr.bf16.gmra.mxu1 %v1307_v55  ;;  %v757_v9 = vadd.f32 %v3951_v23, %v4018_v47 }
 0x15b   :  { %v1178_v50 = vmax.f32 %v540_v39, 0.0  ;;  %2029 = vmatprep.mubr.bf16.mxu1 %v1312_v24  ;;  %v1365_v59 = vpack.c.bf16 %v1177_v57, %v1173_v34  ;;  %v544_v14 = vadd.f32 %v543_v3, %v3778_v36  ;;  %v761_v34 = vadd.f32 %v3960_v44, %v4018_v47 }
 0x15c   :  { %v545_v40 = vpop.f32.mrf.mxu0  ;;  %v4079_v12 = vpop.f32.mrf.mxu1  ;;  %v769_v44 = vadd.f32 %v3972_v17, %v3994_v18 }
 0x15d   :  { %v546_v46 = vadd.f32 %v545_v40, %v3783_v33  ;;  %v1366_v49 = vpack.c.bf16 %v1178_v50, %v1174_v53  ;;  %v1181_v57 = vmax.f32 %v544_v14, 0.0  ;;  %v1316_v53 = vpack.c.bf16 %v1076_v13, %v1072_v7 }
 0x15e   :  { %v547_v25 = vpop.f32.mrf.mxu0  ;;  %v4082_v32 = vpop.f32.mrf.mxu1  ;;  %v1084_v7 = vmax.f32 %v773_v4, 0.0  ;;  %v1080_v2 = vmax.f32 %v769_v44, 0.0 }
 0x15f   :  { %v548_v55 = vadd.f32 %v547_v25, %v3778_v36  ;;  %1852 = vmatprep.mubr.bf16.mxu0 %v1366_v49  ;;  %v1182_v6 = vmax.f32 %v546_v46, 0.0 }
 0x160   :  { %v549_v39 = vpop.f32.mrf.mxu0  ;;  %v4090_v24 = vpop.f32.mrf.mxu1  ;;  %1853 = vmatmul.mubr.bf16.gmra.mxu0 %v1365_v59  ;;  %v1075_v59 = vmax.f32 %v761_v34, 0.0  ;;  %v771_v34 = vadd.f32 %v3975_v27, %v4018_v47  ;;  %v1320_v44 = vpack.c.bf16 %v1084_v7, %v1080_v2 }
 0x161   :  { %v1185_v3 = vmax.f32 %v548_v55, 0.0  ;;  %v550_v50 = vadd.f32 %v549_v39, %v3783_v33  ;;  %v1071_v55 = vmax.f32 %v757_v9, 0.0 }
 0x162   :  { %v553_v40 = vpop.f32.mrf.mxu0  ;;  %v4097_v49 = vpop.f32.mrf.mxu1  ;;  %2030 = vmatmul.mubr.bf16.gmra.mxu1 %v1311_v28 }
 0x163   :  { %v1186_v13 = vmax.f32 %v550_v50, 0.0  ;;  %2037 = vmatprep.mubr.bf16.mxu1 %v1316_v53  ;;  %v1369_v35 = vpack.c.bf16 %v1185_v3, %v1181_v57  ;;  %v554_v14 = vadd.f32 %v553_v40, %v3778_v36  ;;  %v1315_v53 = vpack.c.bf16 %v1075_v59, %v1071_v55 }
 0x164   :  { %v555_v46 = vpop.f32.mrf.mxu0  ;;  %v4102_v43 = vpop.f32.mrf.mxu1  ;;  %v783_v57 = vadd.f32 %v4000_v51, %v3994_v18  ;;  %v779_v59 = vadd.f32 %v3988_v63, %v3994_v18 }
 0x165   :  { %v556_v23 = vadd.f32 %v555_v46, %v3783_v33  ;;  %v1370_v25 = vpack.c.bf16 %v1186_v13, %v1182_v6  ;;  %v1189_v3 = vmax.f32 %v554_v14, 0.0  ;;  %v767_v13 = vadd.f32 %v3966_v62, %v4018_v47 }
 0x166   :  { %v557_v39 = vpop.f32.mrf.mxu0  ;;  %v4105_v28 = vpop.f32.mrf.mxu1  ;;  %v1083_v14 = vmax.f32 %v771_v34, 0.0  ;;  %v781_v34 = vadd.f32 %v3991_v29, %v4018_v47  ;;  %v789_v29 = vadd.f32 %v4014_v8, %v3994_v18 }
 0x167   :  { %v558_v17 = vadd.f32 %v557_v39, %v3778_v36  ;;  %1860 = vmatprep.mubr.bf16.mxu0 %v1370_v25  ;;  %v1190_v6 = vmax.f32 %v556_v23, 0.0  ;;  %v1092_v25 = vmax.f32 %v783_v57, 0.0  ;;  %v1079_v2 = vmax.f32 %v767_v13, 0.0 }
 0x168   :  { %v559_v4 = vpop.f32.mrf.mxu0  ;;  %v4112_v50 = vpop.f32.mrf.mxu1  ;;  %1861 = vmatmul.mubr.bf16.gmra.mxu0 %v1369_v35 }
 0x169   :  { %v1193_v9 = vmax.f32 %v558_v17, 0.0  ;;  %v560_v40 = vadd.f32 %v559_v4, %v3783_v33  ;;  %v1088_v17 = vmax.f32 %v779_v59, 0.0 }
 0x16a   :  { %v563_v27 = vpop.f32.mrf.mxu0  ;;  %v4119_v46 = vpop.f32.mrf.mxu1  ;;  %2038 = vmatmul.mubr.bf16.gmra.mxu1 %v1315_v53 }
 0x16b   :  { %v1194_v51 = vmax.f32 %v560_v40, 0.0  ;;  %2045 = vmatprep.mubr.bf16.mxu1 %v1320_v44  ;;  %v1373_v35 = vpack.c.bf16 %v1193_v9, %v1189_v3  ;;  %v564_v23 = vadd.f32 %v563_v27, %v3778_v36  ;;  %v1319_v40 = vpack.c.bf16 %v1083_v14, %v1079_v2 }
 0x16c   :  { %v565_v55 = vpop.f32.mrf.mxu0  ;;  %v4122_v39 = vpop.f32.mrf.mxu1  ;;  %v1324_v44 = vpack.c.bf16 %v1092_v25, %v1088_v17  ;;  %v1091_v25 = vmax.f32 %v781_v34, 0.0  ;;  %v791_v34 = vadd.f32 %v4020_v22, %v4018_v47 }
 0x16d   :  { %v566_v7 = vadd.f32 %v565_v55, %v3783_v33  ;;  %v1374_v62 = vpack.c.bf16 %v1194_v51, %v1190_v6  ;;  %v1197_v57 = vmax.f32 %v564_v23, 0.0  ;;  %v793_v6 = vadd.f32 %v4027_v52, %v3994_v18 }
 0x16e   :  { %v567_v63 = vpop.f32.mrf.mxu0  ;;  %v4125_v4 = vpop.f32.mrf.mxu1  ;;  %v777_v51 = vadd.f32 %v3981_v48, %v4018_v47 }
 0x16f   :  { %v568_v53 = vadd.f32 %v567_v63, %v3778_v36  ;;  %1868 = vmatprep.mubr.bf16.mxu0 %v1374_v62  ;;  %v1198_v13 = vmax.f32 %v566_v7, 0.0  ;;  %v1100_v2 = vmax.f32 %v793_v6, 0.0 }
 0x170   :  { %v569_v3 = vpop.f32.mrf.mxu0  ;;  %v4130_v9 = vpop.f32.mrf.mxu1  ;;  %1869 = vmatmul.mubr.bf16.gmra.mxu0 %v1373_v35  ;;  %v1087_v63 = vmax.f32 %v777_v51, 0.0 }
 0x171   :  { %v1201_v59 = vmax.f32 %v568_v53, 0.0  ;;  %v570_v27 = vadd.f32 %v569_v3, %v3783_v33 }
 0x172   :  { %v573_v14 = vpop.f32.mrf.mxu0  ;;  %v4137_v55 = vpop.f32.mrf.mxu1  ;;  %2046 = vmatmul.mubr.bf16.gmra.mxu1 %v1319_v40  ;;  %v1096_v40 = vmax.f32 %v789_v29, 0.0 }
 0x173   :  { %v1202_v23 = vmax.f32 %v570_v27, 0.0  ;;  %2053 = vmatprep.mubr.bf16.mxu1 %v1324_v44  ;;  %v1377_v35 = vpack.c.bf16 %v1201_v59, %v1197_v57  ;;  %v574_v52 = vadd.f32 %v573_v14, %v3778_v36  ;;  %v1323_v44 = vpack.c.bf16 %v1091_v25, %v1087_v63 }
 0x174   :  { %v575_v7 = vpop.f32.mrf.mxu0  ;;  %v4142_v62 = vpop.f32.mrf.mxu1  ;;  %v803_v57 = vadd.f32 %v4047_v26, %v3994_v18  ;;  %v1328_v29 = vpack.c.bf16 %v1100_v2, %v1096_v40  ;;  %v799_v25 = vadd.f32 %v4039_v20, %v3994_v18 }
 0x175   :  { %v576_v17 = vadd.f32 %v575_v7, %v3783_v33  ;;  %v1378_v48 = vpack.c.bf16 %v1202_v23, %v1198_v13  ;;  %v1205_v59 = vmax.f32 %v574_v52, 0.0  ;;  %v787_v23 = vadd.f32 %v4006_v60, %v4018_v47 }
 0x176   :  { %v577_v53 = vpop.f32.mrf.mxu0  ;;  %v4145_v3 = vpop.f32.mrf.mxu1  ;;  %v1099_v52 = vmax.f32 %v791_v34, 0.0  ;;  %v3119_v34 = vld [vmem:[%s4885_s5 + $0x20] sm:$0xff]  }
 0x177   :  { %v578_v8 = vadd.f32 %v577_v53, %v3778_v36  ;;  %1876 = vmatprep.mubr.bf16.mxu0 %v1378_v48  ;;  %v1206_v13 = vmax.f32 %v576_v17, 0.0  ;;  %v1108_v48 = vmax.f32 %v803_v57, 0.0  ;;  %v1095_v40 = vmax.f32 %v787_v23, 0.0  ;;  %2974 = vmatprep.subr.bf16.mxu0 %v3119_v34 }
 0x178   :  { %v579_v6 = vpop.f32.mrf.mxu0  ;;  %v4152_v27 = vpop.f32.mrf.mxu1  ;;  %1877 = vmatmul.mubr.bf16.gmra.mxu0 %v1377_v35  ;;  %v813_v23 = vadd.f32 %v4069_v15, %v3994_v18 }
 0x179   :  { %v1209_v51 = vmax.f32 %v578_v8, 0.0  ;;  %v580_v14 = vadd.f32 %v579_v6, %v3783_v33  ;;  %v1104_v8 = vmax.f32 %v799_v25, 0.0  ;;  %v1327_v57 = vpack.c.bf16 %v1099_v52, %v1095_v40  ;;  %2975 = vmatpush3.bf16.msra.mxu0 %v3119_v34 }
 0x17a   :  { %v583_v22 = vpop.f32.mrf.mxu0  ;;  %v4159_v7 = vpop.f32.mrf.mxu1  ;;  %2054 = vmatmul.mubr.bf16.gmra.mxu1 %v1323_v44  ;;  %v797_v52 = vadd.f32 %v4034_v30, %v4018_v47 }
 0x17b   :  { %v1210_v26 = vmax.f32 %v580_v14, 0.0  ;;  %2061 = vmatprep.mubr.bf16.mxu1 %v1328_v29  ;;  %v1381_v35 = vpack.c.bf16 %v1209_v51, %v1205_v59  ;;  %v584_v17 = vadd.f32 %v583_v22, %v3778_v36  ;;  %v801_v59 = vadd.f32 %v4042_v61, %v4018_v47 }
 0x17c   :  { %v585_v63 = vpop.f32.mrf.mxu0  ;;  %v4162_v53 = vpop.f32.mrf.mxu1  ;;  %v809_v61 = vadd.f32 %v4059_v42, %v3994_v18 }
 0x17d   :  { %v586_v2 = vadd.f32 %v585_v63, %v3783_v33  ;;  %v1382_v60 = vpack.c.bf16 %v1210_v26, %v1206_v13  ;;  %v1213_v51 = vmax.f32 %v584_v17, 0.0  ;;  %v1332_v13 = vpack.c.bf16 %v1108_v48, %v1104_v8 }
 0x17e   :  { %v587_v20 = vpop.f32.mrf.mxu0  ;;  %v4165_v6 = vpop.f32.mrf.mxu1  ;;  %v1116_v8 = vmax.f32 %v813_v23, 0.0  ;;  %v1112_v34 = vmax.f32 %v809_v61, 0.0 }
 0x17f   :  { %v588_v44 = vadd.f32 %v587_v20, %v3778_v36  ;;  %1884 = vmatprep.mubr.bf16.mxu0 %v1382_v60  ;;  %v1214_v25 = vmax.f32 %v586_v2, 0.0 }
 0x180   :  { %v589_v14 = vpop.f32.mrf.mxu0  ;;  %v4173_v29 = vpop.f32.mrf.mxu1  ;;  %1885 = vmatmul.mubr.bf16.gmra.mxu0 %v1381_v35  ;;  %v1107_v35 = vmax.f32 %v801_v59, 0.0  ;;  %v811_v59 = vadd.f32 %v4062_v37, %v4018_v47  ;;  %v1336_v61 = vpack.c.bf16 %v1116_v8, %v1112_v34 }
 0x181   :  { %v1217_v22 = vmax.f32 %v588_v44, 0.0  ;;  %v590_v26 = vadd.f32 %v589_v14, %v3783_v33  ;;  %v1103_v44 = vmax.f32 %v797_v52, 0.0 }
 0x182   :  { %v593_v63 = vpop.f32.mrf.mxu0  ;;  %v4180_v60 = vpop.f32.mrf.mxu1  ;;  %2062 = vmatmul.mubr.bf16.gmra.mxu1 %v1327_v57 }
 0x183   :  { %v1218_v48 = vmax.f32 %v590_v26, 0.0  ;;  %2069 = vmatprep.mubr.bf16.mxu1 %v1332_v13  ;;  %v1385_v15 = vpack.c.bf16 %v1217_v22, %v1213_v51  ;;  %v594_v17 = vadd.f32 %v593_v63, %v3778_v36  ;;  %v1331_v13 = vpack.c.bf16 %v1107_v35, %v1103_v44 }
 0x184   :  { %v595_v2 = vpop.f32.mrf.mxu0  ;;  %v4185_v40 = vpop.f32.mrf.mxu1  ;;  %v823_v51 = vadd.f32 %v4090_v24, %v3994_v18  ;;  %v819_v35 = vadd.f32 %v4079_v12, %v3994_v18 }
 0x185   :  { %v596_v30 = vadd.f32 %v595_v2, %v3783_v33  ;;  %v1386_v20 = vpack.c.bf16 %v1218_v48, %v1214_v25  ;;  %v1221_v22 = vmax.f32 %v594_v17, 0.0  ;;  %v807_v48 = vadd.f32 %v4054_v5, %v4018_v47 }
 0x186   :  { %v597_v14 = vpop.f32.mrf.mxu0  ;;  %v4188_v57 = vpop.f32.mrf.mxu1  ;;  %v1115_v17 = vmax.f32 %v811_v59, 0.0  ;;  %v821_v59 = vadd.f32 %v4082_v32, %v4018_v47  ;;  %v829_v32 = vadd.f32 %v4102_v43, %v3994_v18 }
 0x187   :  { %v598_v42 = vadd.f32 %v597_v14, %v3778_v36  ;;  %1892 = vmatprep.mubr.bf16.mxu0 %v1386_v20  ;;  %v1222_v25 = vmax.f32 %v596_v30, 0.0  ;;  %v1124_v20 = vmax.f32 %v823_v51, 0.0  ;;  %v1111_v34 = vmax.f32 %v807_v48, 0.0 }
 0x188   :  { %v599_v23 = vpop.f32.mrf.mxu0  ;;  %v4195_v26 = vpop.f32.mrf.mxu1  ;;  %1893 = vmatmul.mubr.bf16.gmra.mxu0 %v1385_v15 }
 0x189   :  { %v1225_v52 = vmax.f32 %v598_v42, 0.0  ;;  %v600_v63 = vadd.f32 %v599_v23, %v3783_v33  ;;  %v1120_v42 = vmax.f32 %v819_v35, 0.0 }
 0x18a   :  { %v603_v37 = vpop.f32.mrf.mxu0  ;;  %v4202_v2 = vpop.f32.mrf.mxu1  ;;  %2070 = vmatmul.mubr.bf16.gmra.mxu1 %v1331_v13 }
 0x18b   :  { %v1226_v24 = vmax.f32 %v600_v63, 0.0  ;;  %2077 = vmatprep.mubr.bf16.mxu1 %v1336_v61  ;;  %v1389_v15 = vpack.c.bf16 %v1225_v52, %v1221_v22  ;;  %v604_v30 = vadd.f32 %v603_v37, %v3778_v36  ;;  %v1335_v63 = vpack.c.bf16 %v1115_v17, %v1111_v34 }
 0x18c   :  { %v605_v44 = vpop.f32.mrf.mxu0  ;;  %v4205_v14 = vpop.f32.mrf.mxu1  ;;  %v1340_v61 = vpack.c.bf16 %v1124_v20, %v1120_v42  ;;  %v831_v34 = vadd.f32 %v4105_v28, %v4018_v47  ;;  %v839_v28 = vadd.f32 %v4122_v39, %v3994_v18  ;;  %v841_v39 = vadd.f32 %v4125_v4, %v4018_v47 }
 0x18d   :  { %v606_v8 = vadd.f32 %v605_v44, %v3783_v33  ;;  %v1390_v5 = vpack.c.bf16 %v1226_v24, %v1222_v25  ;;  %v1229_v51 = vmax.f32 %v604_v30, 0.0  ;;  %v833_v25 = vadd.f32 %v4112_v50, %v3994_v18  ;;  %v3120_v50 = vld [vmem:[%s4885_s5 + $0x18] sm:$0xff]  }
 0x18e   :  { %v607_v12 = vpop.f32.mrf.mxu0  ;;  %v4208_v23 = vpop.f32.mrf.mxu1  ;;  %2976 = vmatprep.subr.bf16.mxu0 %v3120_v50 }
 0x18f   :  { %v608_v13 = vadd.f32 %v607_v12, %v3778_v36  ;;  %1900 = vmatprep.mubr.bf16.mxu0 %v1390_v5  ;;  %v1230_v48 = vmax.f32 %v606_v8, 0.0  ;;  %v817_v36 = vadd.f32 %v4076_v31, %v4018_v47  ;;  %v1128_v5 = vmax.f32 %v829_v32, 0.0  ;;  %2977 = vmatpush3.bf16.msra.mxu0 %v3120_v50  ;;  %v3121_v12 = vld [vmem:[%s4885_s5 + $0x10] sm:$0xff]   ;;  %v3123_v32 = vld [vmem:[%s4885_s5] sm:$0xff]  }
 0x190   :  { %v609_v22 = vpop.f32.mrf.mxu0  ;;  %v4213_v52 = vpop.f32.mrf.mxu1  ;;  %1901 = vmatmul.mubr.bf16.gmra.mxu0 %v1389_v15  ;;  %v1123_v15 = vmax.f32 %v821_v59, 0.0  ;;  %v827_v59 = vadd.f32 %v4097_v49, %v4018_v47  ;;  %2978 = vmatprep.subr.bf16.mxu0 %v3121_v12  ;;  %v1136_v49 = vmax.f32 %v839_v28, 0.0  ;;  %v847_v28 = vadd.f32 %v4137_v55, %v4018_v47 }
 0x191   :  { %v1233_v35 = vmax.f32 %v608_v13, 0.0  ;;  %v610_v37 = vadd.f32 %v609_v22, %v3783_v33  ;;  %v1132_v33 = vmax.f32 %v833_v25, 0.0  ;;  %v1119_v8 = vmax.f32 %v817_v36, 0.0 }
 0x192   :  { %v4220_v24 = vpop.f32.mrf.mxu1  ;;  %2078 = vmatmul.mubr.bf16.gmra.mxu1 %v1335_v63  ;;  %v843_v13 = vadd.f32 %v4130_v9, %v3994_v18  ;;  %v1131_v22 = vmax.f32 %v831_v34, 0.0  ;;  %v1127_v25 = vmax.f32 %v827_v59, 0.0 }
 0x193   :  { %v1234_v17 = vmax.f32 %v610_v37, 0.0  ;;  %2085 = vmatprep.mubr.bf16.mxu1 %v1340_v61  ;;  %v1393_v20 = vpack.c.bf16 %v1233_v35, %v1229_v51  ;;  %v1339_v43 = vpack.c.bf16 %v1123_v15, %v1119_v8  ;;  %v1344_v63 = vpack.c.bf16 %v1132_v33, %v1128_v5  ;;  %2979 = vmatpush3.bf16.msra.mxu0 %v3121_v12 }
 0x194   :  { %v4224_v30 = vpop.f32.mrf.mxu1  ;;  %v1140_v9 = vmax.f32 %v843_v13, 0.0  ;;  %v1343_v35 = vpack.c.bf16 %v1131_v22, %v1127_v25  ;;  %v1139_v33 = vmax.f32 %v841_v39, 0.0  ;;  %v851_v12 = vadd.f32 %v4145_v3, %v4018_v47 }
 0x195   :  { %v1394_v44 = vpack.c.bf16 %v1234_v17, %v1230_v48  ;;  %v853_v17 = vadd.f32 %v4152_v27, %v3994_v18  ;;  %v859_v3 = vadd.f32 %v4162_v53, %v3994_v18  ;;  %v873_v53 = vadd.f32 %v4195_v26, %v3994_v18 }
 0x196   :  { %v4229_v31 = vpop.f32.mrf.mxu1  ;;  %v1348_v15 = vpack.c.bf16 %v1140_v9, %v1136_v49  ;;  %v1147_v9 = vmax.f32 %v851_v12, 0.0  ;;  %v1143_v49 = vmax.f32 %v847_v28, 0.0  ;;  %v871_v12 = vadd.f32 %v4188_v57, %v4018_v47 }
 0x197   :  { %1908 = vmatprep.mubr.bf16.mxu0 %v1394_v44  ;;  %v1152_v39 = vmax.f32 %v859_v3, 0.0  ;;  %v1164_v26 = vmax.f32 %v873_v53, 0.0  ;;  %v879_v57 = vadd.f32 %v4205_v14, %v3994_v18 }
 0x198   :  { %v4233_v42 = vpop.f32.mrf.mxu1  ;;  %1909 = vmatmul.mubr.bf16.gmra.mxu0 %v1393_v20  ;;  %v837_v20 = vadd.f32 %v4119_v46, %v4018_v47  ;;  %v1351_v55 = vpack.c.bf16 %v1147_v9, %v1143_v49 }
 0x199   :  { %1916 = vmatprep.mubr.bf16.mxu0 %v3802_v19  ;;  %v3122_v19 = vld [vmem:[%s4885_s5 + $0x8] sm:$0xff]   ;;  %v893_v14 = vadd.f32 %v4233_v42, %v3994_v18 }
 0x19a   :  { %v4243_v51 = vpop.f32.mrf.mxu1  ;;  %2086 = vmatmul.mubr.bf16.gmra.mxu1 %v1339_v43  ;;  %2980 = vmatprep.subr.bf16.mxu0 %v3122_v19  ;;  %v1135_v8 = vmax.f32 %v837_v20, 0.0 }
 0x19b   :  { %2093 = vmatprep.mubr.bf16.mxu1 %v1344_v63  ;;  %2981 = vmatpush3.bf16.msra.mxu0 %v3122_v19  ;;  %v863_v63 = vadd.f32 %v4173_v29, %v3994_v18  ;;  %v1180_v42 = vmax.f32 %v893_v14, 0.0 }
 0x19c   :  { %v4247_v61 = vpop.f32.mrf.mxu1  ;;  %2982 = vmatprep.subr.bf16.mxu0 %v3123_v32  ;;  %v1347_v34 = vpack.c.bf16 %v1139_v33, %v1135_v8 }
 0x19d   :  { %v1156_v29 = vmax.f32 %v863_v63, 0.0 }
 0x19e   :  { %v4252_v48 = vpop.f32.mrf.mxu1 }
 0x19f   :  { %2983 = vmatpush3.bf16.msra.mxu0 %v3123_v32  ;;  %v861_v32 = vadd.f32 %v4165_v6, %v4018_v47  ;;  %v1356_v20 = vpack.c.bf16 %v1156_v29, %v1152_v39  ;;  %v869_v6 = vadd.f32 %v4185_v40, %v3994_v18  ;;  %v883_v40 = vadd.f32 %v4213_v52, %v3994_v18 }
 0x1a0   :  { %v4256_v37 = vpop.f32.mrf.mxu1  ;;  %v4258_v36 = vpop.f32.mrf.mxu0  ;;  %1917 = vmatmul.mubr.bf16.gmra.mxu0 %v3796_v0  ;;  %v849_v0 = vadd.f32 %v4142_v62, %v3994_v18  ;;  %v1163_v29 = vmax.f32 %v871_v12, 0.0  ;;  %v891_v12 = vadd.f32 %v4229_v31, %v4018_v47  ;;  %v899_v31 = vadd.f32 %v4247_v61, %v3994_v18  ;;  %v4891_v61 = vld [vmem:[#allocation5_spill] sm:$0xff] }
 0x1a1   :  { %1924 = vmatprep.mubr.bf16.mxu0 %v3817_v56  ;;  %v1148_v56 = vmax.f32 %v853_v17, 0.0  ;;  %v1172_v52 = vmax.f32 %v883_v40, 0.0 }
 0x1a2   :  { %v4269_v4 = vpop.f32.mrf.mxu1  ;;  %v1728_v50 = vpop.f32.mrf.mxu0  ;;  %2094 = vmatmul.mubr.bf16.gmra.mxu1 %v1343_v35  ;;  %v1144_v43 = vmax.f32 %v849_v0, 0.0 }
 0x1a3   :  { %2101 = vmatprep.mubr.bf16.mxu1 %v1348_v15  ;;  %v857_v50 = vadd.f32 %v4159_v7, %v4018_v47 }
 0x1a4   :  { %v4273_v44 = vpop.f32.mrf.mxu1  ;;  %v4275_v27 = vpop.f32.mrf.mxu0  ;;  %v1352_v59 = vpack.c.bf16 %v1148_v56, %v1144_v43  ;;  %v1155_v56 = vmax.f32 %v861_v32, 0.0  ;;  %v881_v32 = vadd.f32 %v4208_v23, %v4018_v47  ;;  %v889_v23 = vadd.f32 %v4224_v30, %v3994_v18 }
 0x1a5   :  { %v903_v30 = vadd.f32 %v4256_v37, %v3994_v18 }
 0x1a6   :  { %v4277_v5 = vpop.f32.mrf.mxu1  ;;  %v1731_v46 = vpop.f32.mrf.mxu0 }
 0x1a7   :  { %v1151_v46 = vmax.f32 %v857_v50, 0.0  ;;  %v1188_v37 = vmax.f32 %v903_v30, 0.0 }
 0x1a8   :  { %v4281_v13 = vpop.f32.mrf.mxu1  ;;  %v4283_v62 = vpop.f32.mrf.mxu0  ;;  %1925 = vmatmul.mubr.bf16.gmra.mxu0 %v3811_v45 }
 0x1a9   :  { %1932 = vmatprep.mubr.bf16.mxu0 %v3832_v38  ;;  %v1355_v7 = vpack.c.bf16 %v1155_v56, %v1151_v46 }
 0x1aa   :  { %v4291_v22 = vpop.f32.mrf.mxu1  ;;  %v1736_v19 = vpop.f32.mrf.mxu0  ;;  %2102 = vmatmul.mubr.bf16.gmra.mxu1 %v1347_v34  ;;  %v1160_v34 = vmax.f32 %v869_v6, 0.0 }
 0x1ab   :  { %2109 = vmatprep.mubr.bf16.mxu1 %v1352_v59  ;;  %v867_v19 = vadd.f32 %v4180_v60, %v4018_v47 }
 0x1ac   :  { %v4295_v25 = vpop.f32.mrf.mxu1  ;;  %v4297_v45 = vpop.f32.mrf.mxu0  ;;  %v1360_v28 = vpack.c.bf16 %v1164_v26, %v1160_v34  ;;  %v1171_v26 = vmax.f32 %v881_v32, 0.0  ;;  %v901_v32 = vadd.f32 %v4252_v48, %v4018_v47  ;;  %v909_v48 = vadd.f32 %v4273_v44, %v3994_v18  ;;  %v4893_v44 = vld [vmem:[#allocation6_spill] sm:$0xff] }
 0x1ae   :  { %v4299_v38 = vpop.f32.mrf.mxu1  ;;  %v1739_v35 = vpop.f32.mrf.mxu0 }
 0x1af   :  { %v1159_v35 = vmax.f32 %v867_v19, 0.0 }
 0x1b0   :  { %v4303_v17 = vpop.f32.mrf.mxu1  ;;  %v4305_v15 = vpop.f32.mrf.mxu0  ;;  %1933 = vmatmul.mubr.bf16.gmra.mxu0 %v3826_v21 }
 0x1b1   :  { %1940 = vmatprep.mubr.bf16.mxu0 %v3847_v11  ;;  %v1359_v60 = vpack.c.bf16 %v1163_v29, %v1159_v35 }
 0x1b2   :  { %v4313_v0 = vpop.f32.mrf.mxu1  ;;  %v1744_v33 = vpop.f32.mrf.mxu0  ;;  %2110 = vmatmul.mubr.bf16.gmra.mxu1 %v1351_v55  ;;  %v1168_v55 = vmax.f32 %v879_v57, 0.0 }
 0x1b3   :  { %2117 = vmatprep.mubr.bf16.mxu1 %v1356_v20  ;;  %v877_v33 = vadd.f32 %v4202_v2, %v4018_v47 }
 0x1b4   :  { %v4317_v8 = vpop.f32.mrf.mxu1  ;;  %v4319_v21 = vpop.f32.mrf.mxu0  ;;  %v1364_v50 = vpack.c.bf16 %v1172_v52, %v1168_v55  ;;  %v1179_v52 = vmax.f32 %v891_v12, 0.0 }
 0x1b6   :  { %v4321_v11 = vpop.f32.mrf.mxu1  ;;  %v1747_v43 = vpop.f32.mrf.mxu0 }
 0x1b7   :  { %v1167_v43 = vmax.f32 %v877_v33, 0.0  ;;  %v913_v33 = vadd.f32 %v4281_v13, %v3994_v18 }
 0x1b8   :  { %v4325_v63 = vpop.f32.mrf.mxu1  ;;  %v4327_v59 = vpop.f32.mrf.mxu0  ;;  %1941 = vmatmul.mubr.bf16.gmra.mxu0 %v3841_v58 }
 0x1b9   :  { %1948 = vmatprep.mubr.bf16.mxu0 %v3862_v54  ;;  %v1363_v2 = vpack.c.bf16 %v1171_v26, %v1167_v43  ;;  %v897_v26 = vadd.f32 %v4243_v51, %v4018_v47  ;;  %v1196_v13 = vmax.f32 %v913_v33, 0.0 }
 0x1ba   :  { %v4335_v3 = vpop.f32.mrf.mxu1  ;;  %v1752_v9 = vpop.f32.mrf.mxu0  ;;  %2118 = vmatmul.mubr.bf16.gmra.mxu1 %v1355_v7  ;;  %v1176_v7 = vmax.f32 %v889_v23, 0.0 }
 0x1bb   :  { %2125 = vmatprep.mubr.bf16.mxu1 %v1360_v28  ;;  %v887_v9 = vadd.f32 %v4220_v24, %v4018_v47  ;;  %v1183_v12 = vmax.f32 %v897_v26, 0.0 }
 0x1bc   :  { %v4339_v49 = vpop.f32.mrf.mxu1  ;;  %v4341_v58 = vpop.f32.mrf.mxu0  ;;  %v1368_v19 = vpack.c.bf16 %v1180_v42, %v1176_v7 }
 0x1be   :  { %v4343_v54 = vpop.f32.mrf.mxu1  ;;  %v1755_v39 = vpop.f32.mrf.mxu0 }
 0x1bf   :  { %v1175_v39 = vmax.f32 %v887_v9, 0.0  ;;  %v1192_v9 = vmax.f32 %v909_v48, 0.0  ;;  %v921_v48 = vadd.f32 %v4299_v38, %v4018_v47 }
 0x1c0   :  { %v4347_v53 = vpop.f32.mrf.mxu1  ;;  %v4349_v20 = vpop.f32.mrf.mxu0  ;;  %1949 = vmatmul.mubr.bf16.gmra.mxu0 %v3856_v41 }
 0x1c1   :  { %1956 = vmatprep.mubr.bf16.mxu0 %v3877_v10  ;;  %v1367_v24 = vpack.c.bf16 %v1179_v52, %v1175_v39  ;;  %v1376_v39 = vpack.c.bf16 %v1196_v13, %v1192_v9  ;;  %v1203_v38 = vmax.f32 %v921_v48, 0.0 }
 0x1c2   :  { %v4357_v6 = vpop.f32.mrf.mxu1  ;;  %v1760_v56 = vpop.f32.mrf.mxu0  ;;  %2126 = vmatmul.mubr.bf16.gmra.mxu1 %v1359_v60  ;;  %v1184_v60 = vmax.f32 %v899_v31, 0.0 }
 0x1c3   :  { %2133 = vmatprep.mubr.bf16.mxu1 %v1364_v50  ;;  %v4892_v56 = vld [vmem:[#allocation7_spill] sm:$0xff] }
 0x1c4   :  { %v4361_v46 = vpop.f32.mrf.mxu1  ;;  %v4363_v41 = vpop.f32.mrf.mxu0  ;;  %v1372_v23 = vpack.c.bf16 %v1188_v37, %v1184_v60  ;;  %v923_v37 = vadd.f32 %v4303_v17, %v3994_v18 }
 0x1c6   :  { %v4365_v10 = vpop.f32.mrf.mxu1  ;;  %v1763_v34 = vpop.f32.mrf.mxu0 }
 0x1c7   :  { %v1187_v34 = vmax.f32 %v901_v32, 0.0 }
 0x1c8   :  { %v4369_v40 = vpop.f32.mrf.mxu1  ;;  %v4371_v28 = vpop.f32.mrf.mxu0  ;;  %1957 = vmatmul.mubr.bf16.gmra.mxu0 %v3871_v1 }
 0x1c9   :  { %1964 = vmatprep.mubr.bf16.mxu0 %v3892_v16  ;;  %v1371_v51 = vpack.c.bf16 %v1187_v34, %v1183_v12 }
 0x1ca   :  { %v4379_v57 = vpop.f32.mrf.mxu1  ;;  %v1768_v29 = vpop.f32.mrf.mxu0  ;;  %2134 = vmatmul.mubr.bf16.gmra.mxu1 %v1363_v2 }
 0x1cb   :  { %2141 = vmatprep.mubr.bf16.mxu1 %v1368_v19  ;;  %v911_v29 = vadd.f32 %v4277_v5, %v4018_v47  ;;  %v919_v5 = vadd.f32 %v4295_v25, %v3994_v18  ;;  %v933_v25 = vadd.f32 %v4325_v63, %v3994_v18 }
 0x1cc   :  { %v4383_v35 = vpop.f32.mrf.mxu1  ;;  %v4385_v1 = vpop.f32.mrf.mxu0 }
 0x1cd   :  { %v1195_v32 = vmax.f32 %v911_v29, 0.0  ;;  %v929_v29 = vadd.f32 %v4317_v8, %v3994_v18  ;;  %v943_v8 = vadd.f32 %v4347_v53, %v3994_v18 }
 0x1ce   :  { %v4387_v16 = vpop.f32.mrf.mxu1  ;;  %v1771_v55 = vpop.f32.mrf.mxu0 }
 0x1cf   :  { %v907_v55 = vadd.f32 %v4269_v4, %v4018_v47 }
 0x1d0   :  { %v4391_v14 = vpop.f32.mrf.mxu1  ;;  %v4393_v50 = vpop.f32.mrf.mxu0  ;;  %1965 = vmatmul.mubr.bf16.gmra.mxu0 %v4891_v61 }
 0x1d1   :  { %1972 = vmatprep.mubr.bf16.mxu0 %v4892_v56  ;;  %v1204_v56 = vmax.f32 %v923_v37, 0.0 }
 0x1d2   :  { %v4401_v42 = vpop.f32.mrf.mxu1  ;;  %v1776_v43 = vpop.f32.mrf.mxu0  ;;  %2142 = vmatmul.mubr.bf16.gmra.mxu1 %v1367_v24 }
 0x1d3   :  { %2149 = vmatprep.mubr.bf16.mxu1 %v1372_v23  ;;  %v1191_v23 = vmax.f32 %v907_v55, 0.0  ;;  %v1200_v43 = vmax.f32 %v919_v5, 0.0  ;;  %v1208_v5 = vmax.f32 %v929_v29, 0.0 }
 0x1d4   :  { %v4405_v7 = vpop.f32.mrf.mxu1  ;;  %v4407_v2 = vpop.f32.mrf.mxu0 }
 0x1d5   :  { %v1375_v4 = vpack.c.bf16 %v1195_v32, %v1191_v23  ;;  %v1380_v12 = vpack.c.bf16 %v1204_v56, %v1200_v43  ;;  %v931_v32 = vadd.f32 %v4321_v11, %v4018_v47  ;;  %v927_v43 = vadd.f32 %v4313_v0, %v4018_v47 }
 0x1d6   :  { %v4409_v30 = vpop.f32.mrf.mxu1  ;;  %v1779_v19 = vpop.f32.mrf.mxu0 }
 0x1d7   :  { %v917_v19 = vadd.f32 %v4291_v22, %v4018_v47  ;;  %v1211_v11 = vmax.f32 %v931_v32, 0.0  ;;  %v1207_v29 = vmax.f32 %v927_v43, 0.0  ;;  %v937_v32 = vadd.f32 %v4335_v3, %v4018_v47 }
 0x1d8   :  { %v4413_v31 = vpop.f32.mrf.mxu1  ;;  %v4415_v52 = vpop.f32.mrf.mxu0  ;;  %1973 = vmatmul.mubr.bf16.gmra.mxu0 %v4893_v44  ;;  %v949_v43 = vadd.f32 %v4361_v46, %v3994_v18  ;;  %v963_v46 = vadd.f32 %v4391_v14, %v3994_v18 }
 0x1d9   :  { %v1199_v55 = vmax.f32 %v917_v19, 0.0  ;;  %v1383_v0 = vpack.c.bf16 %v1211_v11, %v1207_v29  ;;  %v1215_v29 = vmax.f32 %v937_v32, 0.0 }
 0x1da   :  { %v4422_v60 = vpop.f32.mrf.mxu1  ;;  %v1784_v24 = vpop.f32.mrf.mxu0  ;;  %2150 = vmatmul.mubr.bf16.gmra.mxu1 %v1371_v51 }
 0x1db   :  { %2157 = vmatprep.mubr.bf16.mxu1 %v1376_v39  ;;  %v1212_v39 = vmax.f32 %v933_v25, 0.0  ;;  %v1379_v22 = vpack.c.bf16 %v1203_v38, %v1199_v55  ;;  %v939_v25 = vadd.f32 %v4339_v49, %v3994_v18  ;;  %v941_v55 = vadd.f32 %v4343_v54, %v4018_v47 }
 0x1dc   :  { %v4426_v61 = vpop.f32.mrf.mxu1  ;;  %v4428_v33 = vpop.f32.mrf.mxu0  ;;  %v953_v49 = vadd.f32 %v4369_v40, %v3994_v18 }
 0x1dd   :  { %v1219_v54 = vmax.f32 %v941_v55, 0.0 }
 0x1de   :  { %v4430_v17 = vpop.f32.mrf.mxu1  ;;  %v1787_v26 = vpop.f32.mrf.mxu0  ;;  %v1228_v11 = vmax.f32 %v953_v49, 0.0  ;;  %v947_v49 = vadd.f32 %v4357_v6, %v4018_v47 }
 0x1df   :  { %v1384_v26 = vpack.c.bf16 %v1212_v39, %v1208_v5  ;;  %v1216_v39 = vmax.f32 %v939_v25, 0.0  ;;  %v1387_v3 = vpack.c.bf16 %v1219_v54, %v1215_v29 }
 0x1e0   :  { %v4434_v34 = vpop.f32.mrf.mxu1  ;;  %v4436_v13 = vpop.f32.mrf.mxu0 }
 0x1e2   :  { %v4442_v9 = vpop.f32.mrf.mxu1  ;;  %v1792_v51 = vpop.f32.mrf.mxu0  ;;  %2158 = vmatmul.mubr.bf16.gmra.mxu1 %v1375_v4 }
 0x1e3   :  { %2165 = vmatprep.mubr.bf16.mxu1 %v1380_v12  ;;  %v1220_v51 = vmax.f32 %v943_v8, 0.0 }
 0x1e4   :  { %v4446_v44 = vpop.f32.mrf.mxu1  ;;  %v4448_v37 = vpop.f32.mrf.mxu0 }
 0x1e6   :  { %v4450_v63 = vpop.f32.mrf.mxu1  ;;  %v1795_v24 = vpop.f32.mrf.mxu0 }
 0x1e8   :  { %v4454_v56 = vpop.f32.mrf.mxu1  ;;  %v4456_v23 = vpop.f32.mrf.mxu0 }
 0x1ea   :  { %v4462_v4 = vpop.f32.mrf.mxu1  ;;  %v1800_v48 = vpop.f32.mrf.mxu0  ;;  %2166 = vmatmul.mubr.bf16.gmra.mxu1 %v1379_v22  ;;  %v1388_v22 = vpack.c.bf16 %v1220_v51, %v1216_v39  ;;  %v951_v39 = vadd.f32 %v4365_v10, %v4018_v47 }
 0x1eb   :  { %2173 = vmatprep.mubr.bf16.mxu1 %v1384_v26 }
 0x1ec   :  { %v4466_v12 = vpop.f32.mrf.mxu1  ;;  %v4468_v19 = vpop.f32.mrf.mxu0  ;;  %v1227_v10 = vmax.f32 %v951_v39, 0.0 }
 0x1ed   :  { %4894 = vst [vmem:[#allocation5_spill] sm:$0xff] %v4468_v19 }
 0x1ee   :  { %v4470_v53 = vpop.f32.mrf.mxu1  ;;  %v1803_v38 = vpop.f32.mrf.mxu0 }
 0x1ef   :  { %v1224_v38 = vmax.f32 %v949_v43, 0.0  ;;  %v959_v43 = vadd.f32 %v4383_v35, %v3994_v18  ;;  %v973_v35 = vadd.f32 %v4413_v31, %v3994_v18 }
 0x1f0   :  { %v4474_v24 = vpop.f32.mrf.mxu1  ;;  %v4476_v5 = vpop.f32.mrf.mxu0 }
 0x1f1   :  { %4895 = vst [vmem:[#allocation7_spill] sm:$0xff] %v4476_v5  ;;  %v1392_v55 = vpack.c.bf16 %v1228_v11, %v1224_v38  ;;  %v1232_v38 = vmax.f32 %v959_v43, 0.0 }
 0x1f2   :  { %v4482_v8 = vpop.f32.mrf.mxu1  ;;  %v1808_v26 = vpop.f32.mrf.mxu0  ;;  %2174 = vmatmul.mubr.bf16.gmra.mxu1 %v1383_v0 }
 0x1f3   :  { %2181 = vmatprep.mubr.bf16.mxu1 %v1388_v22 }
 0x1f4   :  { %v4486_v48 = vpop.f32.mrf.mxu1  ;;  %v4488_v25 = vpop.f32.mrf.mxu0 }
 0x1f5   :  { %4896 = vst [vmem:[#allocation6_spill] sm:$0xff] %v4488_v25 }
 0x1f6   :  { %v4490_v40 = vpop.f32.mrf.mxu1  ;;  %v1811_v51 = vpop.f32.mrf.mxu0 }
 0x1f7   :  { %v1236_v51 = vmax.f32 %v963_v46, 0.0  ;;  %v957_v46 = vadd.f32 %v4379_v57, %v4018_v47 }
 0x1f8   :  { %v4494_v0 = vpop.f32.mrf.mxu1  ;;  %v4496_v26 = vpop.f32.mrf.mxu0 }
 0x1f9   :  { %4897 = vst [vmem:[#allocation8_spill] sm:$0xff] %v4496_v26  ;;  %v1223_v26 = vmax.f32 %v947_v49, 0.0  ;;  %v1396_v39 = vpack.c.bf16 %v1236_v51, %v1232_v38 }
 0x1fa   :  { %v4502_v22 = vpop.f32.mrf.mxu1  ;;  %v1816_v32 = vpop.f32.mrf.mxu0  ;;  %2182 = vmatmul.mubr.bf16.gmra.mxu1 %v1387_v3 }
 0x1fb   :  { %2189 = vmatprep.mubr.bf16.mxu1 %v1392_v55  ;;  %v1391_v6 = vpack.c.bf16 %v1227_v10, %v1223_v26  ;;  %v961_v32 = vadd.f32 %v4387_v16, %v4018_v47  ;;  %v969_v26 = vadd.f32 %v4405_v7, %v3994_v18  ;;  %v983_v7 = vadd.f32 %v4434_v34, %v3994_v18 }
 0x1fc   :  { %v4506_v54 = vpop.f32.mrf.mxu1  ;;  %v4508_v29 = vpop.f32.mrf.mxu0 }
 0x1fd   :  { %4898 = vst [vmem:[#allocation9_spill] sm:$0xff] %v4508_v29  ;;  %v1235_v16 = vmax.f32 %v961_v32, 0.0  ;;  %v1240_v38 = vmax.f32 %v969_v26, 0.0 }
 0x1fe   :  { %v4510_v14 = vpop.f32.mrf.mxu1  ;;  %v1819_v11 = vpop.f32.mrf.mxu0 }
 0x1ff   :  { %v1244_v11 = vmax.f32 %v973_v35, 0.0  ;;  %v967_v35 = vadd.f32 %v4401_v42, %v4018_v47  ;;  %v4555_v42 = vld [vmem:[%s4884_s4] ss:$0 sm:$0xff] }
 0x200   :  { %v4514_v3 = vpop.f32.mrf.mxu1  ;;  %v4516_v25 = vpop.f32.mrf.mxu0 }
 0x201   :  { %4899 = vst [vmem:[#allocation10_spill] sm:$0xff] %v4516_v25  ;;  %v1231_v25 = vmax.f32 %v957_v46, 0.0  ;;  %v1400_v32 = vpack.c.bf16 %v1244_v11, %v1240_v38 }
 0x202   :  { %v4522_v55 = vpop.f32.mrf.mxu1  ;;  %v1824_v49 = vpop.f32.mrf.mxu0  ;;  %2190 = vmatmul.mubr.bf16.gmra.mxu1 %v1391_v6 }
 0x203   :  { %2197 = vmatprep.mubr.bf16.mxu1 %v1396_v39  ;;  %v1395_v57 = vpack.c.bf16 %v1235_v16, %v1231_v25  ;;  %v971_v49 = vadd.f32 %v4409_v30, %v4018_v47  ;;  %v979_v25 = vadd.f32 %v4426_v61, %v3994_v18  ;;  %v981_v61 = vadd.f32 %v4430_v17, %v4018_v47 }
 0x204   :  { %v4526_v43 = vpop.f32.mrf.mxu1  ;;  %v4528_v10 = vpop.f32.mrf.mxu0  ;;  %v989_v17 = vadd.f32 %v4446_v44, %v3994_v18 }
 0x205   :  { %4900 = vst [vmem:[#allocation11_spill] sm:$0xff] %v4528_v10  ;;  %v1243_v30 = vmax.f32 %v971_v49, 0.0  ;;  %v1248_v38 = vmax.f32 %v979_v25, 0.0 }
 0x206   :  { %v4530_v31 = vpop.f32.mrf.mxu1  ;;  %v1827_v51 = vpop.f32.mrf.mxu0 }
 0x207   :  { %v1252_v51 = vmax.f32 %v983_v7, 0.0  ;;  %v993_v7 = vadd.f32 %v4454_v56, %v3994_v18  ;;  %v1730_v56 = vadd.f32 %v4555_v42, %v4275_v27 }
 0x208   :  { %v4534_v6 = vpop.f32.mrf.mxu1  ;;  %v4536_v29 = vpop.f32.mrf.mxu0 }
 0x209   :  { %4901 = vst [vmem:[#allocation12_spill] sm:$0xff] %v4536_v29  ;;  %v1239_v29 = vmax.f32 %v967_v35, 0.0  ;;  %v1404_v35 = vpack.c.bf16 %v1252_v51, %v1248_v38  ;;  %v1260_v51 = vmax.f32 %v993_v7, 0.0  ;;  %v987_v7 = vadd.f32 %v4442_v9, %v4018_v47 }
 0x20a   :  { %v4542_v39 = vpop.f32.mrf.mxu1  ;;  %v1832_v46 = vpop.f32.mrf.mxu0  ;;  %2198 = vmatmul.mubr.bf16.gmra.mxu1 %v1395_v57 }
 0x20b   :  { %2205 = vmatprep.mubr.bf16.mxu1 %v1400_v32  ;;  %v1399_v57 = vpack.c.bf16 %v1243_v30, %v1239_v29  ;;  %v977_v46 = vadd.f32 %v4422_v60, %v4018_v47  ;;  %v1727_v29 = vadd.f32 %v4555_v42, %v4258_v36  ;;  %v1251_v30 = vmax.f32 %v981_v61, 0.0 }
 0x20c   :  { %v4546_v26 = vpop.f32.mrf.mxu1  ;;  %v4548_v16 = vpop.f32.mrf.mxu0  ;;  %v991_v36 = vadd.f32 %v4450_v63, %v4018_v47  ;;  %v999_v63 = vadd.f32 %v4466_v12, %v3994_v18  ;;  %v1001_v12 = vadd.f32 %v4470_v53, %v4018_v47  ;;  %v1009_v53 = vadd.f32 %v4486_v48, %v3994_v18 }
 0x20d   :  { %4902 = vst [vmem:[#allocation13_spill] sm:$0xff] %v4548_v16  ;;  %v1247_v60 = vmax.f32 %v977_v46, 0.0  ;;  %v1011_v48 = vadd.f32 %v4490_v40, %v4018_v47  ;;  %v1019_v40 = vadd.f32 %v4506_v54, %v3994_v18  ;;  %v1021_v54 = vadd.f32 %v4510_v14, %v4018_v47 }
 0x20e   :  { %v4550_v34 = vpop.f32.mrf.mxu1  ;;  %v1835_v11 = vpop.f32.mrf.mxu0  ;;  %v1029_v14 = vadd.f32 %v4526_v43, %v3994_v18  ;;  %v1031_v43 = vadd.f32 %v4530_v31, %v4018_v47  ;;  %v1039_v31 = vadd.f32 %v4546_v26, %v3994_v18 }
 0x20f   :  { %v1403_v19 = vpack.c.bf16 %v1251_v30, %v1247_v60  ;;  %v1264_v60 = vmax.f32 %v999_v63, 0.0 }
 0x210   :  { %v4559_v49 = vpop.f32.mrf.mxu1  ;;  %v4561_v32 = vpop.f32.mrf.mxu0 }
 0x211   :  { %4903 = vst [vmem:[#allocation14_spill] sm:$0xff] %v4561_v32 }
 0x212   :  { %v1840_v25 = vpop.f32.mrf.mxu0  ;;  %v2015_v11 = vpop.f32.mrf.mxu1  ;;  %2206 = vmatmul.mubr.bf16.gmra.mxu1 %v1399_v57  ;;  %v1256_v57 = vmax.f32 %v989_v17, 0.0  ;;  %v1259_v17 = vmax.f32 %v991_v36, 0.0  ;;  %v1013_v36 = vadd.f32 %v4494_v0, %v3994_v18 }
 0x213   :  { %2213 = vmatprep.mubr.bf16.mxu1 %v1404_v35  ;;  %v2016_v38 = vadd.f32 %v2015_v11, %v1727_v29 }
 0x214   :  { %v4571_v16 = vpop.f32.mrf.mxu0  ;;  %v2017_v32 = vpop.f32.mrf.mxu1  ;;  %v1408_v27 = vpack.c.bf16 %v1260_v51, %v1256_v57  ;;  %v1255_v51 = vmax.f32 %v987_v7, 0.0 }
 0x215   :  { %4904 = vst [vmem:[#allocation15_spill] sm:$0xff] %v4571_v16  ;;  %v1003_v32 = vadd.f32 %v4474_v24, %v3994_v18  ;;  %v2270_v35 = vmax.f32 %v2016_v38, 0.0 }
 0x216   :  { %v1843_v25 = vpop.f32.mrf.mxu0  ;;  %v2018_v10 = vpop.f32.mrf.mxu1 }
 0x217   :  { %v2019_v5 = vadd.f32 %v2018_v10, %v1730_v56  ;;  %v1735_v10 = vadd.f32 %v4555_v42, %v4283_v62  ;;  %v1268_v56 = vmax.f32 %v1003_v32, 0.0  ;;  %v1407_v25 = vpack.c.bf16 %v1259_v17, %v1255_v51 }
 0x218   :  { %v4577_v44 = vpop.f32.mrf.mxu0  ;;  %v2020_v61 = vpop.f32.mrf.mxu1  ;;  %v1276_v17 = vmax.f32 %v1013_v36, 0.0 }
 0x219   :  { %v2271_v16 = vmax.f32 %v2019_v5, 0.0  ;;  %v1738_v5 = vadd.f32 %v4555_v42, %v4297_v45  ;;  %v1412_v32 = vpack.c.bf16 %v1268_v56, %v1264_v60  ;;  %v1023_v60 = vadd.f32 %v4514_v3, %v3994_v18 }
 0x21a   :  { %v1848_v46 = vpop.f32.mrf.mxu0  ;;  %v2023_v11 = vpop.f32.mrf.mxu1  ;;  %2214 = vmatmul.mubr.bf16.gmra.mxu1 %v1403_v19 }
 0x21b   :  { %v2334_v29 = vpack.c.bf16 %v2271_v16, %v2270_v35  ;;  %2221 = vmatprep.mubr.bf16.mxu1 %v1408_v27  ;;  %v2024_v9 = vadd.f32 %v2023_v11, %v1735_v10  ;;  %v997_v35 = vadd.f32 %v4462_v4, %v4018_v47  ;;  %v1743_v46 = vadd.f32 %v4555_v42, %v4305_v15 }
 0x21c   :  { %v4587_v30 = vpop.f32.mrf.mxu0  ;;  %v2025_v24 = vpop.f32.mrf.mxu1  ;;  %v1267_v10 = vmax.f32 %v1001_v12, 0.0  ;;  %v1007_v12 = vadd.f32 %v4482_v8, %v4018_v47 }
 0x21d   :  { %2984 = vmatprep.mubr.bf16.mxu0 %v2334_v29  ;;  %v2272_v61 = vmax.f32 %v2024_v9, 0.0  ;;  %v1746_v29 = vadd.f32 %v4555_v42, %v4319_v21  ;;  %v1263_v24 = vmax.f32 %v997_v35, 0.0  ;;  %v1272_v9 = vmax.f32 %v1009_v53, 0.0 }
 0x21e   :  { %v1851_v19 = vpop.f32.mrf.mxu0  ;;  %v2026_v38 = vpop.f32.mrf.mxu1 }
 0x21f   :  { %v2027_v62 = vadd.f32 %v2026_v38, %v1738_v5  ;;  %v1411_v51 = vpack.c.bf16 %v1267_v10, %v1263_v24  ;;  %v1280_v10 = vmax.f32 %v1019_v40, 0.0 }
 0x220   :  { %v4593_v16 = vpop.f32.mrf.mxu0  ;;  %v2028_v57 = vpop.f32.mrf.mxu1 }
 0x221   :  { %v2273_v45 = vmax.f32 %v2027_v62, 0.0 }
 0x222   :  { %v1856_v27 = vpop.f32.mrf.mxu0  ;;  %v2031_v7 = vpop.f32.mrf.mxu1  ;;  %2222 = vmatmul.mubr.bf16.gmra.mxu1 %v1407_v25  ;;  %v1416_v25 = vpack.c.bf16 %v1276_v17, %v1272_v9 }
 0x223   :  { %v2335_v11 = vpack.c.bf16 %v2273_v45, %v2272_v61  ;;  %2229 = vmatprep.mubr.bf16.mxu1 %v1412_v32  ;;  %v2032_v4 = vadd.f32 %v2031_v7, %v1743_v46  ;;  %v1751_v61 = vadd.f32 %v4555_v42, %v4327_v59  ;;  %v1275_v32 = vmax.f32 %v1011_v48, 0.0 }
 0x224   :  { %v4603_v63 = vpop.f32.mrf.mxu0  ;;  %v2033_v0 = vpop.f32.mrf.mxu1  ;;  %v1754_v27 = vadd.f32 %v4555_v42, %v4341_v58  ;;  %v1284_v7 = vmax.f32 %v1023_v60, 0.0  ;;  %v1271_v46 = vmax.f32 %v1007_v12, 0.0 }
 0x225   :  { %2985 = vmatmul.mubr.bf16.vlgmr.msra.gmra.mxu0 %v2335_v11  ;;  %v2274_v62 = vmax.f32 %v2032_v4, 0.0  ;;  %v1033_v4 = vadd.f32 %v4534_v6, %v3994_v18 }
 0x226   :  { %v1859_v5 = vpop.f32.mrf.mxu0  ;;  %v2034_v56 = vpop.f32.mrf.mxu1  ;;  %v1415_v0 = vpack.c.bf16 %v1275_v32, %v1271_v46  ;;  %v1043_v32 = vadd.f32 %v4559_v49, %v3994_v18  ;;  %v1041_v18 = vadd.f32 %v4550_v34, %v4018_v47 }
 0x227   :  { %v2035_v15 = vadd.f32 %v2034_v56, %v1746_v29  ;;  %v1420_v5 = vpack.c.bf16 %v1284_v7, %v1280_v10  ;;  %v1017_v56 = vadd.f32 %v4502_v22, %v4018_v47  ;;  %v1027_v7 = vadd.f32 %v4522_v55, %v4018_v47 }
 0x228   :  { %v4609_v19 = vpop.f32.mrf.mxu0  ;;  %v2036_v38 = vpop.f32.mrf.mxu1  ;;  %v1291_v10 = vmax.f32 %v1031_v43, 0.0 }
 0x229   :  { %v2275_v21 = vmax.f32 %v2035_v15, 0.0  ;;  %v1283_v38 = vmax.f32 %v1021_v54, 0.0  ;;  %v1300_v54 = vmax.f32 %v1043_v32, 0.0 }
 0x22a   :  { %v1864_v57 = vpop.f32.mrf.mxu0  ;;  %v2039_v36 = vpop.f32.mrf.mxu1  ;;  %2230 = vmatmul.mubr.bf16.gmra.mxu1 %v1411_v51  ;;  %v1759_v51 = vadd.f32 %v4555_v42, %v4349_v20 }
 0x22b   :  { %v2336_v45 = vpack.c.bf16 %v2275_v21, %v2274_v62  ;;  %2237 = vmatprep.mubr.bf16.mxu1 %v1416_v25  ;;  %v2040_v8 = vadd.f32 %v2039_v36, %v1751_v61  ;;  %v1762_v62 = vadd.f32 %v4555_v42, %v4363_v41  ;;  %v1292_v21 = vmax.f32 %v1033_v4, 0.0 }
 0x22c   :  { %v4619_v35 = vpop.f32.mrf.mxu0  ;;  %v2041_v3 = vpop.f32.mrf.mxu1  ;;  %v1279_v25 = vmax.f32 %v1017_v56, 0.0  ;;  %v1288_v36 = vmax.f32 %v1029_v14, 0.0 }
 0x22d   :  { %2988 = vmatprep.mubr.bf16.mxu0 %v2336_v45  ;;  %v2276_v24 = vmax.f32 %v2040_v8, 0.0 }
 0x22e   :  { %v1867_v53 = vpop.f32.mrf.mxu0  ;;  %v2042_v11 = vpop.f32.mrf.mxu1  ;;  %v1419_v61 = vpack.c.bf16 %v1283_v38, %v1279_v25  ;;  %v1775_v38 = vadd.f32 %v4555_v42, %v4393_v50 }
 0x22f   :  { %v2043_v59 = vadd.f32 %v2042_v11, %v1754_v27  ;;  %v1424_v27 = vpack.c.bf16 %v1292_v21, %v1288_v36  ;;  %v1767_v53 = vadd.f32 %v4555_v42, %v4371_v28 }
 0x230   :  { %v4625_v29 = vpop.f32.mrf.mxu0  ;;  %v2044_v17 = vpop.f32.mrf.mxu1 }
 0x231   :  { %v2277_v58 = vmax.f32 %v2043_v59, 0.0  ;;  %v1287_v17 = vmax.f32 %v1027_v7, 0.0  ;;  %v1786_v7 = vadd.f32 %v4555_v42, %v4428_v33  ;;  %v1794_v33 = vadd.f32 %v4555_v42, %v4448_v37  ;;  %v4905_v37 = vld [vmem:[#allocation5_spill] sm:$0xff] }
 0x232   :  { %v1872_v9 = vpop.f32.mrf.mxu0  ;;  %v2047_v15 = vpop.f32.mrf.mxu1  ;;  %2238 = vmatmul.mubr.bf16.gmra.mxu1 %v1415_v0  ;;  %v1770_v0 = vadd.f32 %v4555_v42, %v4385_v1  ;;  %v1037_v1 = vadd.f32 %v4542_v39, %v4018_v47 }
 0x233   :  { %v2337_v48 = vpack.c.bf16 %v2277_v58, %v2276_v24  ;;  %2245 = vmatprep.mubr.bf16.mxu1 %v1420_v5  ;;  %v2048_v22 = vadd.f32 %v2047_v15, %v1759_v51  ;;  %v1296_v58 = vmax.f32 %v1039_v31, 0.0  ;;  %v1423_v5 = vpack.c.bf16 %v1291_v10, %v1287_v17 }
 0x234   :  { %v4635_v60 = vpop.f32.mrf.mxu0  ;;  %v2049_v6 = vpop.f32.mrf.mxu1 }
 0x235   :  { %2989 = vmatmul.mubr.bf16.gmra.mxu0 %v2337_v48  ;;  %v2278_v3 = vmax.f32 %v2048_v22, 0.0  ;;  %v1428_v51 = vpack.c.bf16 %v1300_v54, %v1296_v58  ;;  %v1778_v22 = vadd.f32 %v4555_v42, %v4407_v2 }
 0x236   :  { %v1875_v12 = vpop.f32.mrf.mxu0  ;;  %v2050_v57 = vpop.f32.mrf.mxu1 }
 0x237   :  { %v2051_v20 = vadd.f32 %v2050_v57, %v1762_v62  ;;  %v1299_v62 = vmax.f32 %v1041_v18, 0.0  ;;  %v1295_v12 = vmax.f32 %v1037_v1, 0.0 }
 0x238   :  { %v4641_v40 = vpop.f32.mrf.mxu0  ;;  %v2052_v45 = vpop.f32.mrf.mxu1 }
 0x239   :  { %v2279_v41 = vmax.f32 %v2051_v20, 0.0  ;;  %v1427_v36 = vpack.c.bf16 %v1299_v62, %v1295_v12  ;;  %v1802_v62 = vadd.f32 %v4555_v42, %v4905_v37 }
 0x23a   :  { %v1880_v8 = vpop.f32.mrf.mxu0  ;;  %v2055_v46 = vpop.f32.mrf.mxu1  ;;  %2246 = vmatmul.mubr.bf16.gmra.mxu1 %v1419_v61 }
 0x23b   :  { %v2338_v11 = vpack.c.bf16 %v2279_v41, %v2278_v3  ;;  %2253 = vmatprep.mubr.bf16.mxu1 %v1424_v27  ;;  %v2056_v55 = vadd.f32 %v2055_v46, %v1767_v53  ;;  %v1783_v3 = vadd.f32 %v4555_v42, %v4415_v52  ;;  %v1791_v52 = vadd.f32 %v4555_v42, %v4436_v13 }
 0x23c   :  { %v4651_v59 = vpop.f32.mrf.mxu0  ;;  %v2057_v49 = vpop.f32.mrf.mxu1  ;;  %v1799_v13 = vadd.f32 %v4555_v42, %v4456_v23  ;;  %v4906_v23 = vld [vmem:[#allocation7_spill] sm:$0xff] }
 0x23d   :  { %2992 = vmatprep.mubr.bf16.mxu0 %v2338_v11  ;;  %v2280_v9 = vmax.f32 %v2056_v55, 0.0 }
 0x23e   :  { %v1883_v4 = vpop.f32.mrf.mxu0  ;;  %v2058_v24 = vpop.f32.mrf.mxu1 }
 0x23f   :  { %v2059_v28 = vadd.f32 %v2058_v24, %v1770_v0 }
 0x240   :  { %v4657_v26 = vpop.f32.mrf.mxu0  ;;  %v2060_v56 = vpop.f32.mrf.mxu1 }
 0x241   :  { %v2281_v15 = vmax.f32 %v2059_v28, 0.0 }
 0x242   :  { %v1888_v14 = vpop.f32.mrf.mxu0  ;;  %v2063_v48 = vpop.f32.mrf.mxu1  ;;  %2254 = vmatmul.mubr.bf16.gmra.mxu1 %v1423_v5 }
 0x243   :  { %v2339_v6 = vpack.c.bf16 %v2281_v15, %v2280_v9  ;;  %2261 = vmatprep.mubr.bf16.mxu1 %v1428_v51  ;;  %v2064_v25 = vadd.f32 %v2063_v48, %v1775_v38 }
 0x244   :  { %v4663_v21 = vpop.f32.mrf.mxu0  ;;  %v2065_v34 = vpop.f32.mrf.mxu1 }
 0x245   :  { %2993 = vmatmul.mubr.bf16.gmra.mxu0 %v2339_v6  ;;  %v2282_v50 = vmax.f32 %v2064_v25, 0.0 }
 0x246   :  { %v1891_v57 = vpop.f32.mrf.mxu0  ;;  %v2066_v47 = vpop.f32.mrf.mxu1 }
 0x247   :  { %v2067_v39 = vadd.f32 %v2066_v47, %v1778_v22 }
 0x248   :  { %v4667_v20 = vpop.f32.mrf.mxu0  ;;  %v2068_v61 = vpop.f32.mrf.mxu1 }
 0x249   :  { %v2283_v43 = vmax.f32 %v2067_v39, 0.0 }
 0x24a   :  { %v1896_v45 = vpop.f32.mrf.mxu0  ;;  %v2071_v32 = vpop.f32.mrf.mxu1  ;;  %2262 = vmatmul.mubr.bf16.gmra.mxu1 %v1427_v36 }
 0x24b   :  { %v2340_v41 = vpack.c.bf16 %v2283_v43, %v2282_v50  ;;  %v2072_v8 = vadd.f32 %v2071_v32, %v1783_v3  ;;  %v1807_v43 = vadd.f32 %v4555_v42, %v4906_v23 }
 0x24c   :  { %v4671_v2 = vpop.f32.mrf.mxu0  ;;  %v2073_v27 = vpop.f32.mrf.mxu1 }
 0x24d   :  { %2996 = vmatprep.mubr.bf16.mxu0 %v2340_v41  ;;  %v2284_v49 = vmax.f32 %v2072_v8, 0.0  ;;  %v4907_v41 = vld [vmem:[#allocation6_spill] sm:$0xff] }
 0x24e   :  { %v1899_v46 = vpop.f32.mrf.mxu0  ;;  %v2074_v53 = vpop.f32.mrf.mxu1  ;;  %v1810_v27 = vadd.f32 %v4555_v42, %v4907_v41 }
 0x24f   :  { %v2075_v31 = vadd.f32 %v2074_v53, %v1786_v7 }
 0x250   :  { %v4675_v11 = vpop.f32.mrf.mxu0  ;;  %v2076_v10 = vpop.f32.mrf.mxu1 }
 0x251   :  { %v2285_v0 = vmax.f32 %v2075_v31, 0.0 }
 0x252   :  { %v1904_v54 = vpop.f32.mrf.mxu0  ;;  %v2079_v55 = vpop.f32.mrf.mxu1 }
 0x253   :  { %v2341_v17 = vpack.c.bf16 %v2285_v0, %v2284_v49  ;;  %v2080_v58 = vadd.f32 %v2079_v55, %v1791_v52  ;;  %v4908_v52 = vld [vmem:[#allocation8_spill] sm:$0xff] }
 0x254   :  { %v4679_v4 = vpop.f32.mrf.mxu0  ;;  %v2081_v24 = vpop.f32.mrf.mxu1 }
 0x255   :  { %2997 = vmatmul.mubr.bf16.gmra.mxu0 %v2341_v17  ;;  %v2286_v15 = vmax.f32 %v2080_v58, 0.0  ;;  %v1815_v17 = vadd.f32 %v4555_v42, %v4908_v52 }
 0x256   :  { %v1907_v28 = vpop.f32.mrf.mxu0  ;;  %v2082_v5 = vpop.f32.mrf.mxu1 }
 0x257   :  { %v2083_v18 = vadd.f32 %v2082_v5, %v1794_v33  ;;  %v4909_v28 = vld [vmem:[#allocation9_spill] sm:$0xff] }
 0x258   :  { %v4683_v56 = vpop.f32.mrf.mxu0  ;;  %v2084_v9 = vpop.f32.mrf.mxu1  ;;  %v1818_v5 = vadd.f32 %v4555_v42, %v4909_v28 }
 0x259   :  { %v2287_v51 = vmax.f32 %v2083_v18, 0.0 }
 0x25a   :  { %v1912_v1 = vpop.f32.mrf.mxu0  ;;  %v2087_v14 = vpop.f32.mrf.mxu1 }
 0x25b   :  { %v2342_v48 = vpack.c.bf16 %v2287_v51, %v2286_v15  ;;  %v2088_v34 = vadd.f32 %v2087_v14, %v1799_v13 }
 0x25c   :  { %v4687_v38 = vpop.f32.mrf.mxu0  ;;  %v2089_v6 = vpop.f32.mrf.mxu1 }
 0x25d   :  { %3000 = vmatprep.mubr.bf16.mxu0 %v2342_v48  ;;  %v2288_v39 = vmax.f32 %v2088_v34, 0.0 }
 0x25e   :  { %v1915_v22 = vpop.f32.mrf.mxu0  ;;  %v2090_v25 = vpop.f32.mrf.mxu1 }
 0x25f   :  { %v2091_v12 = vadd.f32 %v2090_v25, %v1802_v62  ;;  %v4910_v62 = vld [vmem:[#allocation10_spill] sm:$0xff] }
 0x260   :  { %v4691_v57 = vpop.f32.mrf.mxu0  ;;  %v2092_v47 = vpop.f32.mrf.mxu1  ;;  %v1823_v34 = vadd.f32 %v4555_v42, %v4910_v62 }
 0x261   :  { %v2289_v36 = vmax.f32 %v2091_v12, 0.0  ;;  %v4911_v47 = vld [vmem:[#allocation11_spill] sm:$0xff] }
 0x262   :  { %v1920_v61 = vpop.f32.mrf.mxu0  ;;  %v2095_v50 = vpop.f32.mrf.mxu1 }
 0x263   :  { %v2343_v45 = vpack.c.bf16 %v2289_v36, %v2288_v39  ;;  %v2096_v7 = vadd.f32 %v2095_v50, %v1807_v43  ;;  %v1826_v39 = vadd.f32 %v4555_v42, %v4911_v47 }
 0x264   :  { %v4695_v32 = vpop.f32.mrf.mxu0  ;;  %v2097_v3 = vpop.f32.mrf.mxu1 }
 0x265   :  { %3001 = vmatmul.mubr.bf16.gmra.mxu0 %v2343_v45  ;;  %v2290_v49 = vmax.f32 %v2096_v7, 0.0 }
 0x266   :  { %v1923_v8 = vpop.f32.mrf.mxu0  ;;  %v2098_v46 = vpop.f32.mrf.mxu1 }
 0x267   :  { %v2099_v53 = vadd.f32 %v2098_v46, %v1810_v27  ;;  %v4912_v8 = vld [vmem:[#allocation12_spill] sm:$0xff] }
 0x268   :  { %v4699_v31 = vpop.f32.mrf.mxu0  ;;  %v2100_v10 = vpop.f32.mrf.mxu1  ;;  %v1831_v46 = vadd.f32 %v4555_v42, %v4912_v8  ;;  %v1850_v8 = vadd.f32 %v4555_v42, %v4587_v30  ;;  %v1858_v30 = vadd.f32 %v4555_v42, %v4603_v63  ;;  %v1866_v63 = vadd.f32 %v4555_v42, %v4619_v35 }
 0x269   :  { %v2291_v0 = vmax.f32 %v2099_v53, 0.0 }
 0x26a   :  { %v1928_v54 = vpop.f32.mrf.mxu0  ;;  %v2103_v55 = vpop.f32.mrf.mxu1 }
 0x26b   :  { %v2344_v24 = vpack.c.bf16 %v2291_v0, %v2290_v49  ;;  %v2104_v18 = vadd.f32 %v2103_v55, %v1815_v17  ;;  %v4913_v0 = vld [vmem:[#allocation13_spill] sm:$0xff] }
 0x26c   :  { %v4703_v33 = vpop.f32.mrf.mxu0  ;;  %v2105_v58 = vpop.f32.mrf.mxu1  ;;  %v1834_v54 = vadd.f32 %v4555_v42, %v4913_v0 }
 0x26d   :  { %3004 = vmatprep.mubr.bf16.mxu0 %v2344_v24  ;;  %v2292_v13 = vmax.f32 %v2104_v18, 0.0 }
 0x26e   :  { %v1931_v9 = vpop.f32.mrf.mxu0  ;;  %v2106_v15 = vpop.f32.mrf.mxu1 }
 0x26f   :  { %v2107_v51 = vadd.f32 %v2106_v15, %v1818_v5 }
 0x270   :  { %v4707_v1 = vpop.f32.mrf.mxu0  ;;  %v2108_v14 = vpop.f32.mrf.mxu1 }
 0x271   :  { %v2293_v48 = vmax.f32 %v2107_v51, 0.0  ;;  %v4914_v51 = vld [vmem:[#allocation14_spill] sm:$0xff] }
 0x272   :  { %v1936_v6 = vpop.f32.mrf.mxu0  ;;  %v2111_v37 = vpop.f32.mrf.mxu1  ;;  %v1839_v14 = vadd.f32 %v4555_v42, %v4914_v51 }
 0x273   :  { %v2345_v22 = vpack.c.bf16 %v2293_v48, %v2292_v13  ;;  %v2112_v36 = vadd.f32 %v2111_v37, %v1823_v34  ;;  %v4915_v37 = vld [vmem:[#allocation15_spill] sm:$0xff] }
 0x274   :  { %v4711_v25 = vpop.f32.mrf.mxu0  ;;  %v2113_v12 = vpop.f32.mrf.mxu1  ;;  %v1842_v62 = vadd.f32 %v4555_v42, %v4915_v37 }
 0x275   :  { %3005 = vmatmul.mubr.bf16.gmra.mxu0 %v2345_v22  ;;  %v2294_v3 = vmax.f32 %v2112_v36, 0.0 }
 0x276   :  { %v1939_v61 = vpop.f32.mrf.mxu0  ;;  %v2114_v50 = vpop.f32.mrf.mxu1 }
 0x277   :  { %v2115_v23 = vadd.f32 %v2114_v50, %v1826_v39 }
 0x278   :  { %v4715_v43 = vpop.f32.mrf.mxu0  ;;  %v2116_v45 = vpop.f32.mrf.mxu1 }
 0x279   :  { %v2295_v41 = vmax.f32 %v2115_v23, 0.0 }
 0x27a   :  { %v1944_v27 = vpop.f32.mrf.mxu0  ;;  %v2119_v7 = vpop.f32.mrf.mxu1 }
 0x27b   :  { %v2346_v53 = vpack.c.bf16 %v2295_v41, %v2294_v3  ;;  %v2120_v55 = vadd.f32 %v2119_v7, %v1831_v46  ;;  %v1847_v3 = vadd.f32 %v4555_v42, %v4577_v44  ;;  %v1855_v44 = vadd.f32 %v4555_v42, %v4593_v16 }
 0x27c   :  { %v4719_v10 = vpop.f32.mrf.mxu0  ;;  %v2121_v49 = vpop.f32.mrf.mxu1  ;;  %v1863_v16 = vadd.f32 %v4555_v42, %v4609_v19 }
 0x27d   :  { %3008 = vmatprep.mubr.bf16.mxu0 %v2346_v53  ;;  %v2296_v5 = vmax.f32 %v2120_v55, 0.0 }
 0x27e   :  { %v1947_v52 = vpop.f32.mrf.mxu0  ;;  %v2122_v17 = vpop.f32.mrf.mxu1 }
 0x27f   :  { %v2123_v24 = vadd.f32 %v2122_v17, %v1834_v54 }
 0x280   :  { %v4723_v58 = vpop.f32.mrf.mxu0  ;;  %v2124_v28 = vpop.f32.mrf.mxu1 }
 0x281   :  { %v2297_v18 = vmax.f32 %v2123_v24, 0.0 }
 0x282   :  { %v1952_v9 = vpop.f32.mrf.mxu0  ;;  %v2127_v15 = vpop.f32.mrf.mxu1 }
 0x283   :  { %v2347_v13 = vpack.c.bf16 %v2297_v18, %v2296_v5  ;;  %v2128_v34 = vadd.f32 %v2127_v15, %v1839_v14 }
 0x284   :  { %v4727_v48 = vpop.f32.mrf.mxu0  ;;  %v2129_v6 = vpop.f32.mrf.mxu1 }
 0x285   :  { %3009 = vmatmul.mubr.bf16.gmra.mxu0 %v2347_v13  ;;  %v2298_v61 = vmax.f32 %v2128_v34, 0.0 }
 0x286   :  { %v1955_v22 = vpop.f32.mrf.mxu0  ;;  %v2130_v12 = vpop.f32.mrf.mxu1 }
 0x287   :  { %v2131_v47 = vadd.f32 %v2130_v12, %v1842_v62 }
 0x288   :  { %v4731_v39 = vpop.f32.mrf.mxu0  ;;  %v2132_v36 = vpop.f32.mrf.mxu1 }
 0x289   :  { %v2299_v50 = vmax.f32 %v2131_v47, 0.0 }
 0x28a   :  { %v1960_v23 = vpop.f32.mrf.mxu0  ;;  %v2135_v45 = vpop.f32.mrf.mxu1 }
 0x28b   :  { %v2348_v41 = vpack.c.bf16 %v2299_v50, %v2298_v61  ;;  %v2136_v46 = vadd.f32 %v2135_v45, %v1847_v3 }
 0x28c   :  { %v4735_v27 = vpop.f32.mrf.mxu0  ;;  %v2137_v7 = vpop.f32.mrf.mxu1 }
 0x28d   :  { %3012 = vmatprep.mubr.bf16.mxu0 %v2348_v41  ;;  %v2300_v52 = vmax.f32 %v2136_v46, 0.0 }
 0x28e   :  { %v1963_v53 = vpop.f32.mrf.mxu0  ;;  %v2138_v49 = vpop.f32.mrf.mxu1 }
 0x28f   :  { %v2139_v0 = vadd.f32 %v2138_v49, %v1850_v8  ;;  %v1871_v53 = vadd.f32 %v4555_v42, %v4625_v29  ;;  %v1882_v29 = vadd.f32 %v4555_v42, %v4651_v59 }
 0x290   :  { %v4739_v54 = vpop.f32.mrf.mxu0  ;;  %v2140_v55 = vpop.f32.mrf.mxu1 }
 0x291   :  { %v2301_v17 = vmax.f32 %v2139_v0, 0.0  ;;  %v1874_v0 = vadd.f32 %v4555_v42, %v4635_v60 }
 0x292   :  { %v1968_v24 = vpop.f32.mrf.mxu0  ;;  %v2143_v28 = vpop.f32.mrf.mxu1 }
 0x293   :  { %v2349_v5 = vpack.c.bf16 %v2301_v17, %v2300_v52  ;;  %v2144_v15 = vadd.f32 %v2143_v28, %v1855_v44 }
 0x294   :  { %v4743_v18 = vpop.f32.mrf.mxu0  ;;  %v2145_v9 = vpop.f32.mrf.mxu1 }
 0x295   :  { %3013 = vmatmul.mubr.bf16.gmra.mxu0 %v2349_v5  ;;  %v2302_v62 = vmax.f32 %v2144_v15, 0.0  ;;  %v1879_v5 = vadd.f32 %v4555_v42, %v4641_v40  ;;  %v1890_v40 = vadd.f32 %v4555_v42, %v4663_v21 }
 0x296   :  { %v1971_v51 = vpop.f32.mrf.mxu0  ;;  %v2146_v14 = vpop.f32.mrf.mxu1 }
 0x297   :  { %v2147_v13 = vadd.f32 %v2146_v14, %v1858_v30 }
 0x298   :  { %v4747_v6 = vpop.f32.mrf.mxu0  ;;  %v2148_v37 = vpop.f32.mrf.mxu1 }
 0x299   :  { %v2303_v34 = vmax.f32 %v2147_v13, 0.0 }
 0x29a   :  { %v1976_v22 = vpop.f32.mrf.mxu0  ;;  %v2151_v12 = vpop.f32.mrf.mxu1 }
 0x29b   :  { %v2350_v47 = vpack.c.bf16 %v2303_v34, %v2302_v62  ;;  %v2152_v50 = vadd.f32 %v2151_v12, %v1863_v16  ;;  %v1887_v34 = vadd.f32 %v4555_v42, %v4657_v26  ;;  %v1898_v26 = vadd.f32 %v4555_v42, %v4671_v2 }
 0x29c   :  { %v4751_v36 = vpop.f32.mrf.mxu0  ;;  %v2153_v61 = vpop.f32.mrf.mxu1 }
 0x29d   :  { %3016 = vmatprep.mubr.bf16.mxu0 %v2350_v47  ;;  %v2304_v7 = vmax.f32 %v2152_v50, 0.0 }
 0x29e   :  { %v1979_v23 = vpop.f32.mrf.mxu0  ;;  %v2154_v45 = vpop.f32.mrf.mxu1 }
 0x29f   :  { %v2155_v3 = vadd.f32 %v2154_v45, %v1866_v63  ;;  %v1895_v45 = vadd.f32 %v4555_v42, %v4667_v20  ;;  %v1906_v20 = vadd.f32 %v4555_v42, %v4679_v4 }
 0x2a0   :  { %v2156_v41 = vpop.f32.mrf.mxu1 }
 0x2a1   :  { %v2305_v8 = vmax.f32 %v2155_v3, 0.0 }
 0x2a2   :  { %v2159_v46 = vpop.f32.mrf.mxu1 }
 0x2a3   :  { %v2351_v19 = vpack.c.bf16 %v2305_v8, %v2304_v7  ;;  %v2160_v55 = vadd.f32 %v2159_v46, %v1871_v53 }
 0x2a4   :  { %v2161_v49 = vpop.f32.mrf.mxu1 }
 0x2a5   :  { %3017 = vmatmul.mubr.bf16.gmra.mxu0 %v2351_v19  ;;  %v2306_v24 = vmax.f32 %v2160_v55, 0.0 }
 0x2a6   :  { %v2162_v35 = vpop.f32.mrf.mxu1 }
 0x2a7   :  { %v2163_v52 = vadd.f32 %v2162_v35, %v1874_v0  ;;  %v1903_v0 = vadd.f32 %v4555_v42, %v4675_v11  ;;  %v1914_v11 = vadd.f32 %v4555_v42, %v4687_v38 }
 0x2a8   :  { %v2164_v17 = vpop.f32.mrf.mxu1 }
 0x2a9   :  { %v2307_v28 = vmax.f32 %v2163_v52, 0.0 }
 0x2aa   :  { %v2167_v44 = vpop.f32.mrf.mxu1 }
 0x2ab   :  { %v2352_v9 = vpack.c.bf16 %v2307_v28, %v2306_v24  ;;  %v2168_v15 = vadd.f32 %v2167_v44, %v1879_v5 }
 0x2ac   :  { %v2169_v30 = vpop.f32.mrf.mxu1 }
 0x2ad   :  { %3020 = vmatprep.mubr.bf16.mxu0 %v2352_v9  ;;  %v2308_v13 = vmax.f32 %v2168_v15, 0.0  ;;  %v1911_v9 = vadd.f32 %v4555_v42, %v4683_v56  ;;  %v1922_v56 = vadd.f32 %v4555_v42, %v4695_v32 }
 0x2ae   :  { %v2170_v51 = vpop.f32.mrf.mxu1 }
 0x2af   :  { %v2171_v60 = vadd.f32 %v2170_v51, %v1882_v29 }
 0x2b0   :  { %v2172_v14 = vpop.f32.mrf.mxu1 }
 0x2b1   :  { %v2309_v37 = vmax.f32 %v2171_v60, 0.0 }
 0x2b2   :  { %v2175_v62 = vpop.f32.mrf.mxu1 }
 0x2b3   :  { %v2353_v22 = vpack.c.bf16 %v2309_v37, %v2308_v13  ;;  %v2176_v16 = vadd.f32 %v2175_v62, %v1887_v34  ;;  %v1919_v62 = vadd.f32 %v4555_v42, %v4691_v57  ;;  %v1930_v57 = vadd.f32 %v4555_v42, %v4703_v33 }
 0x2b4   :  { %v2177_v12 = vpop.f32.mrf.mxu1  ;;  %v1938_v33 = vadd.f32 %v4555_v42, %v4711_v25  ;;  %v1943_v25 = vadd.f32 %v4555_v42, %v4715_v43  ;;  %v1951_v43 = vadd.f32 %v4555_v42, %v4723_v58 }
 0x2b5   :  { %3021 = vmatmul.mubr.bf16.gmra.mxu0 %v2353_v22  ;;  %v2310_v63 = vmax.f32 %v2176_v16, 0.0 }
 0x2b6   :  { %v2178_v47 = vpop.f32.mrf.mxu1 }
 0x2b7   :  { %v2179_v59 = vadd.f32 %v2178_v47, %v1890_v40 }
 0x2b8   :  { %v2180_v61 = vpop.f32.mrf.mxu1 }
 0x2b9   :  { %v2311_v50 = vmax.f32 %v2179_v59, 0.0 }
 0x2ba   :  { %v2183_v23 = vpop.f32.mrf.mxu1 }
 0x2bb   :  { %v2354_v3 = vpack.c.bf16 %v2311_v50, %v2310_v63  ;;  %v2184_v7 = vadd.f32 %v2183_v23, %v1895_v45  ;;  %v1927_v63 = vadd.f32 %v4555_v42, %v4699_v31  ;;  %v4792_v31 = vld [vmem:[%s4886_s6] ss:$0 sm:$0xff] }
 0x2bc   :  { %v2185_v41 = vpop.f32.mrf.mxu1 }
 0x2bd   :  { %3024 = vmatprep.mubr.bf16.mxu0 %v2354_v3  ;;  %v2312_v53 = vmax.f32 %v2184_v7, 0.0 }
 0x2be   :  { %v2186_v8 = vpop.f32.mrf.mxu1 }
 0x2bf   :  { %v2187_v21 = vadd.f32 %v2186_v8, %v1898_v26 }
 0x2c0   :  { %v2188_v46 = vpop.f32.mrf.mxu1 }
 0x2c1   :  { %v2313_v19 = vmax.f32 %v2187_v21, 0.0  ;;  %v1935_v21 = vadd.f32 %v4555_v42, %v4707_v1 }
 0x2c2   :  { %v2191_v49 = vpop.f32.mrf.mxu1 }
 0x2c3   :  { %v2355_v55 = vpack.c.bf16 %v2313_v19, %v2312_v53  ;;  %v2192_v52 = vadd.f32 %v2191_v49, %v1903_v0 }
 0x2c4   :  { %v2193_v35 = vpop.f32.mrf.mxu1 }
 0x2c5   :  { %3025 = vmatmul.mubr.bf16.gmra.mxu0 %v2355_v55  ;;  %v2314_v28 = vmax.f32 %v2192_v52, 0.0 }
 0x2c6   :  { %v2194_v17 = vpop.f32.mrf.mxu1 }
 0x2c7   :  { %v2195_v2 = vadd.f32 %v2194_v17, %v1906_v20 }
 0x2c8   :  { %v2196_v24 = vpop.f32.mrf.mxu1 }
 0x2c9   :  { %v2315_v44 = vmax.f32 %v2195_v2, 0.0 }
 0x2ca   :  { %v2199_v5 = vpop.f32.mrf.mxu1 }
 0x2cb   :  { %v2356_v30 = vpack.c.bf16 %v2315_v44, %v2314_v28  ;;  %v2200_v15 = vadd.f32 %v2199_v5, %v1911_v9 }
 0x2cc   :  { %v2201_v29 = vpop.f32.mrf.mxu1 }
 0x2cd   :  { %3028 = vmatprep.mubr.bf16.mxu0 %v2356_v30  ;;  %v2316_v14 = vmax.f32 %v2200_v15, 0.0 }
 0x2ce   :  { %v2202_v51 = vpop.f32.mrf.mxu1 }
 0x2cf   :  { %v2203_v4 = vadd.f32 %v2202_v51, %v1914_v11  ;;  %v1946_v11 = vadd.f32 %v4555_v42, %v4719_v10 }
 0x2d0   :  { %v2204_v60 = vpop.f32.mrf.mxu1 }
 0x2d1   :  { %v2317_v13 = vmax.f32 %v2203_v4, 0.0 }
 0x2d2   :  { %v2207_v37 = vpop.f32.mrf.mxu1 }
 0x2d3   :  { %v2357_v34 = vpack.c.bf16 %v2317_v13, %v2316_v14  ;;  %v2208_v12 = vadd.f32 %v2207_v37, %v1919_v62 }
 0x2d4   :  { %v2209_v22 = vpop.f32.mrf.mxu1 }
 0x2d5   :  { %3029 = vmatmul.mubr.bf16.gmra.mxu0 %v2357_v34  ;;  %v2318_v47 = vmax.f32 %v2208_v12, 0.0  ;;  %v1954_v22 = vadd.f32 %v4555_v42, %v4727_v48  ;;  %v3124_v42 = vld [vmem:[%s4884_s4] ss:$0 sm:$0xff]  ;;  %s3148_s4 = smov [#allocation2]  }
 0x2d6   :  { %v2210_v40 = vpop.f32.mrf.mxu1  ;;  %v1959_v48 = vadd.f32 %v3124_v42, %v4731_v39  ;;  %s2795_s29 = sshll.u32 %s3148_s4, 4  ;;  %s2796_s29 = int_to_ptr.vmem [resolvable:$true] %s2795_s29 }
 0x2d7   :  { %v2211_v38 = vadd.f32 %v2210_v40, %v1922_v56  ;;  %s3125_s30 = scalar_lea.vmem %s2796_s29, 8192  ;;  %p3130_p1 = scmp.lt.s32.totalorder %s2796_s29, %s2796_s29 }
 0x2d8   :  { %v2212_v16 = vpop.f32.mrf.mxu1  ;;  %p3126_p0 = scmp.ne.s32.totalorder %s2796_s29, %s3125_s30  ;;  %p3131_p2 = scmp.lt.s32.totalorder %s3125_s30, %s3125_s30 }
 0x2d9   :  { %v2319_v59 = vmax.f32 %v2211_v38, 0.0 }
 0x2da   :  { %v2215_v61 = vpop.f32.mrf.mxu1  ;;  %p3132_p3 = por %p3131_p2, %p3130_p1 }
 0x2db   :  { %v2358_v50 = vpack.c.bf16 %v2319_v59, %v2318_v47  ;;  %v2216_v45 = vadd.f32 %v2215_v61, %v1927_v63 }
 0x2dc   :  { %v2217_v23 = vpop.f32.mrf.mxu1  ;;  %p3133_p4 = pnand %p3132_p3, %p3126_p0 }
 0x2dd   :  { %3032 = vmatprep.mubr.bf16.mxu0 %v2358_v50  ;;  %v2320_v26 = vmax.f32 %v2216_v45, 0.0 }
 0x2de   :  { %v2218_v3 = vpop.f32.mrf.mxu1 }
 0x2df   :  { %v2219_v32 = vadd.f32 %v2218_v3, %v1930_v57 }
 0x2e0   :  { %v2220_v41 = vpop.f32.mrf.mxu1 }
 0x2e1   :  { %v2321_v7 = vmax.f32 %v2219_v32, 0.0  ;;  %v1962_v41 = vadd.f32 %v3124_v42, %v4735_v27 }
 0x2e2   :  { %v2223_v8 = vpop.f32.mrf.mxu1 }
 0x2e3   :  { %v2359_v46 = vpack.c.bf16 %v2321_v7, %v2320_v26  ;;  %v2224_v19 = vadd.f32 %v2223_v8, %v1935_v21 }
 0x2e4   :  { %v2225_v53 = vpop.f32.mrf.mxu1 }
 0x2e5   :  { %v2986_v49 = vpop.f32.mrf.mxu0  ;;  %3033 = vmatmul.mubr.bf16.gmra.mxu0 %v2359_v46  ;;  %v2322_v17 = vmax.f32 %v2224_v19, 0.0  ;;  %v1967_v19 = vadd.f32 %v3124_v42, %v4739_v54 }
 0x2e6   :  { %v2480_v0 = vadd.f32 %v2986_v49, %v4792_v31  ;;  %v2226_v55 = vpop.f32.mrf.mxu1 }
 0x2e7   :  { %v2227_v35 = vadd.f32 %v2226_v55, %v1938_v33  ;;  %v2471_v20 = vpop.f32.mrf.mxu0 }
 0x2e8   :  { %2728 = vst [vmem:[#allocation2 + $0x10] sm:$0xff] %v2480_v0  ;;  %v2472_v1 = vadd.f32 %v4792_v31, %v2471_v20  ;;  %v2228_v52 = vpop.f32.mrf.mxu1  ;;  %v1970_v0 = vadd.f32 %v3124_v42, %v4743_v18  ;;  %v1975_v18 = vadd.f32 %v3124_v42, %v4747_v6 }
 0x2e9   :  { %v2323_v2 = vmax.f32 %v2227_v35, 0.0  ;;  %v2987_v24 = vpop.f32.mrf.mxu0 }
 0x2ea   :  { %2726 = vst [vmem:[#allocation2] sm:$0xff] %v2472_v1  ;;  %v2483_v28 = vadd.f32 %v2987_v24, %v4792_v31  ;;  %v2231_v44 = vpop.f32.mrf.mxu1 }
 0x2eb   :  { %v2360_v5 = vpack.c.bf16 %v2323_v2, %v2322_v17  ;;  %v2474_v9 = vpop.f32.mrf.mxu0  ;;  %v2232_v15 = vadd.f32 %v2231_v44, %v1943_v25 }
 0x2ec   :  { %2729 = vst [vmem:[#allocation2 + $0x18] sm:$0xff] %v2483_v28  ;;  %v2475_v30 = vadd.f32 %v4792_v31, %v2474_v9  ;;  %v2233_v29 = vpop.f32.mrf.mxu1 }
 0x2ed   :  { %3036 = vmatprep.mubr.bf16.mxu0 %v2360_v5  ;;  %v2324_v14 = vmax.f32 %v2232_v15, 0.0 }
 0x2ee   :  { %2727 = vst [vmem:[#allocation2 + $0x8] sm:$0xff] %v2475_v30  ;;  %v2234_v51 = vpop.f32.mrf.mxu1 }
 0x2ef   :  { %v2235_v4 = vadd.f32 %v2234_v51, %v1946_v11  ;;  %v1978_v11 = vadd.f32 %v3124_v42, %v4751_v36 }
 0x2f0   :  { %v2236_v60 = vpop.f32.mrf.mxu1 }
 0x2f1   :  { %v2325_v13 = vmax.f32 %v2235_v4, 0.0 }
 0x2f2   :  { %v2239_v37 = vpop.f32.mrf.mxu1 }
 0x2f3   :  { %v2361_v62 = vpack.c.bf16 %v2325_v13, %v2324_v14  ;;  %v2240_v56 = vadd.f32 %v2239_v37, %v1951_v43 }
 0x2f4   :  { %v2241_v34 = vpop.f32.mrf.mxu1 }
 0x2f5   :  { %v2990_v12 = vpop.f32.mrf.mxu0  ;;  %3037 = vmatmul.mubr.bf16.gmra.mxu0 %v2361_v62  ;;  %v2326_v61 = vmax.f32 %v2240_v56, 0.0 }
 0x2f6   :  { %v2496_v10 = vadd.f32 %v2990_v12, %v4792_v31  ;;  %v2242_v40 = vpop.f32.mrf.mxu1 }
 0x2f7   :  { %v2243_v38 = vadd.f32 %v2242_v40, %v1954_v22  ;;  %v2487_v16 = vpop.f32.mrf.mxu0 }
 0x2f8   :  { %2732 = vst [vmem:[#allocation2 + $0x30] sm:$0xff] %v2496_v10  ;;  %v2488_v47 = vadd.f32 %v4792_v31, %v2487_v16  ;;  %v2244_v59 = vpop.f32.mrf.mxu1 }
 0x2f9   :  { %v2327_v63 = vmax.f32 %v2243_v38, 0.0  ;;  %v2991_v58 = vpop.f32.mrf.mxu0 }
 0x2fa   :  { %2730 = vst [vmem:[#allocation2 + $0x20] sm:$0xff] %v2488_v47  ;;  %v2499_v50 = vadd.f32 %v2991_v58, %v4792_v31  ;;  %v2247_v23 = vpop.f32.mrf.mxu1 }
 0x2fb   :  { %v2362_v57 = vpack.c.bf16 %v2327_v63, %v2326_v61  ;;  %v2490_v45 = vpop.f32.mrf.mxu0  ;;  %v2248_v26 = vadd.f32 %v2247_v23, %v1959_v48 }
 0x2fc   :  { %2733 = vst [vmem:[#allocation2 + $0x38] sm:$0xff] %v2499_v50  ;;  %v2491_v3 = vadd.f32 %v4792_v31, %v2490_v45  ;;  %v2249_v32 = vpop.f32.mrf.mxu1 }
 0x2fd   :  { %3040 = vmatprep.mubr.bf16.mxu0 %v2362_v57  ;;  %v2328_v46 = vmax.f32 %v2248_v26, 0.0 }
 0x2fe   :  { %2731 = vst [vmem:[#allocation2 + $0x28] sm:$0xff] %v2491_v3  ;;  %v2250_v7 = vpop.f32.mrf.mxu1 }
 0x2ff   :  { %v2251_v8 = vadd.f32 %v2250_v7, %v1962_v41 }
 0x300   :  { %v2252_v21 = vpop.f32.mrf.mxu1 }
 0x301   :  { %v2329_v53 = vmax.f32 %v2251_v8, 0.0 }
 0x302   :  { %v2255_v33 = vpop.f32.mrf.mxu1 }
 0x303   :  { %v2363_v39 = vpack.c.bf16 %v2329_v53, %v2328_v46  ;;  %v2256_v55 = vadd.f32 %v2255_v33, %v1967_v19 }
 0x304   :  { %v2257_v49 = vpop.f32.mrf.mxu1 }
 0x305   :  { %v2994_v35 = vpop.f32.mrf.mxu0  ;;  %3041 = vmatmul.mubr.bf16.gmra.mxu0 %v2363_v39  ;;  %v2330_v24 = vmax.f32 %v2256_v55, 0.0 }
 0x306   :  { %v2512_v27 = vadd.f32 %v2994_v35, %v4792_v31  ;;  %v2258_v20 = vpop.f32.mrf.mxu1 }
 0x307   :  { %v2259_v1 = vadd.f32 %v2258_v20, %v1970_v0  ;;  %v2503_v52 = vpop.f32.mrf.mxu0 }
 0x308   :  { %2736 = vst [vmem:[#allocation2 + $0x50] sm:$0xff] %v2512_v27  ;;  %v2504_v17 = vadd.f32 %v4792_v31, %v2503_v52  ;;  %v2260_v2 = vpop.f32.mrf.mxu1 }
 0x309   :  { %v2331_v28 = vmax.f32 %v2259_v1, 0.0  ;;  %v2995_v44 = vpop.f32.mrf.mxu0 }
 0x30a   :  { %2734 = vst [vmem:[#allocation2 + $0x40] sm:$0xff] %v2504_v17  ;;  %v2515_v54 = vadd.f32 %v2995_v44, %v4792_v31  ;;  %v2263_v25 = vpop.f32.mrf.mxu1 }
 0x30b   :  { %v2364_v5 = vpack.c.bf16 %v2331_v28, %v2330_v24  ;;  %v2506_v9 = vpop.f32.mrf.mxu0  ;;  %v2264_v15 = vadd.f32 %v2263_v25, %v1975_v18 }
 0x30c   :  { %2737 = vst [vmem:[#allocation2 + $0x58] sm:$0xff] %v2515_v54  ;;  %v2507_v30 = vadd.f32 %v4792_v31, %v2506_v9  ;;  %v2265_v29 = vpop.f32.mrf.mxu1 }
 0x30d   :  { %3044 = vmatprep.mubr.bf16.mxu0 %v2364_v5  ;;  %v2332_v14 = vmax.f32 %v2264_v15, 0.0 }
 0x30e   :  { %2735 = vst [vmem:[#allocation2 + $0x48] sm:$0xff] %v2507_v30  ;;  %v2266_v51 = vpop.f32.mrf.mxu1 }
 0x30f   :  { %v2267_v4 = vadd.f32 %v2266_v51, %v1978_v11 }
 0x310   :  { %v2268_v60 = vpop.f32.mrf.mxu1 }
 0x311   :  { %v2333_v13 = vmax.f32 %v2267_v4, 0.0 }
 0x313   :  { %v2365_v37 = vpack.c.bf16 %v2333_v13, %v2332_v14 }
 0x315   :  { %v2998_v43 = vpop.f32.mrf.mxu0  ;;  %3045 = vmatmul.mubr.bf16.gmra.mxu0 %v2365_v37 }
 0x316   :  { %v2528_v6 = vadd.f32 %v2998_v43, %v4792_v31 }
 0x317   :  { %v2519_v62 = vpop.f32.mrf.mxu0 }
 0x318   :  { %2740 = vst [vmem:[#allocation2 + $0x70] sm:$0xff] %v2528_v6  ;;  %v2520_v34 = vadd.f32 %v4792_v31, %v2519_v62 }
 0x319   :  { %v2999_v22 = vpop.f32.mrf.mxu0 }
 0x31a   :  { %2738 = vst [vmem:[#allocation2 + $0x60] sm:$0xff] %v2520_v34  ;;  %v2531_v36 = vadd.f32 %v2999_v22, %v4792_v31 }
 0x31b   :  { %v2522_v56 = vpop.f32.mrf.mxu0 }
 0x31c   :  { %2741 = vst [vmem:[#allocation2 + $0x78] sm:$0xff] %v2531_v36  ;;  %v2523_v12 = vadd.f32 %v4792_v31, %v2522_v56 }
 0x31e   :  { %2739 = vst [vmem:[#allocation2 + $0x68] sm:$0xff] %v2523_v12 }
 0x325   :  { %v3002_v10 = vpop.f32.mrf.mxu0 }
 0x326   :  { %v2544_v40 = vadd.f32 %v3002_v10, %v4792_v31 }
 0x327   :  { %v2535_v38 = vpop.f32.mrf.mxu0 }
 0x328   :  { %2744 = vst [vmem:[#allocation2 + $0x90] sm:$0xff] %v2544_v40  ;;  %v2536_v16 = vadd.f32 %v4792_v31, %v2535_v38 }
 0x329   :  { %v3003_v47 = vpop.f32.mrf.mxu0 }
 0x32a   :  { %2742 = vst [vmem:[#allocation2 + $0x80] sm:$0xff] %v2536_v16  ;;  %v2547_v59 = vadd.f32 %v3003_v47, %v4792_v31 }
 0x32b   :  { %v2538_v61 = vpop.f32.mrf.mxu0 }
 0x32c   :  { %2745 = vst [vmem:[#allocation2 + $0x98] sm:$0xff] %v2547_v59  ;;  %v2539_v63 = vadd.f32 %v4792_v31, %v2538_v61 }
 0x32e   :  { %2743 = vst [vmem:[#allocation2 + $0x88] sm:$0xff] %v2539_v63 }
 0x335   :  { %v3006_v58 = vpop.f32.mrf.mxu0 }
 0x336   :  { %v2560_v50 = vadd.f32 %v3006_v58, %v4792_v31 }
 0x337   :  { %v2551_v23 = vpop.f32.mrf.mxu0 }
 0x338   :  { %2748 = vst [vmem:[#allocation2 + $0xb0] sm:$0xff] %v2560_v50  ;;  %v2552_v42 = vadd.f32 %v4792_v31, %v2551_v23 }
 0x339   :  { %v3007_v48 = vpop.f32.mrf.mxu0 }
 0x33a   :  { %2746 = vst [vmem:[#allocation2 + $0xa0] sm:$0xff] %v2552_v42  ;;  %v2563_v57 = vadd.f32 %v3007_v48, %v4792_v31 }
 0x33b   :  { %v2554_v45 = vpop.f32.mrf.mxu0 }
 0x33c   :  { %2749 = vst [vmem:[#allocation2 + $0xb8] sm:$0xff] %v2563_v57  ;;  %v2555_v3 = vadd.f32 %v4792_v31, %v2554_v45 }
 0x33e   :  { %2747 = vst [vmem:[#allocation2 + $0xa8] sm:$0xff] %v2555_v3 }
 0x345   :  { %v3010_v32 = vpop.f32.mrf.mxu0 }
 0x346   :  { %v2576_v41 = vadd.f32 %v3010_v32, %v4792_v31 }
 0x347   :  { %v2567_v26 = vpop.f32.mrf.mxu0 }
 0x348   :  { %2752 = vst [vmem:[#allocation2 + $0xd0] sm:$0xff] %v2576_v41  ;;  %v2568_v7 = vadd.f32 %v4792_v31, %v2567_v26 }
 0x349   :  { %v3011_v8 = vpop.f32.mrf.mxu0 }
 0x34a   :  { %2750 = vst [vmem:[#allocation2 + $0xc0] sm:$0xff] %v2568_v7  ;;  %v2579_v21 = vadd.f32 %v3011_v8, %v4792_v31 }
 0x34b   :  { %v2570_v46 = vpop.f32.mrf.mxu0 }
 0x34c   :  { %2753 = vst [vmem:[#allocation2 + $0xd8] sm:$0xff] %v2579_v21  ;;  %v2571_v53 = vadd.f32 %v4792_v31, %v2570_v46 }
 0x34e   :  { %2751 = vst [vmem:[#allocation2 + $0xc8] sm:$0xff] %v2571_v53 }
 0x355   :  { %v3014_v33 = vpop.f32.mrf.mxu0 }
 0x356   :  { %v2592_v19 = vadd.f32 %v3014_v33, %v4792_v31 }
 0x357   :  { %v2583_v39 = vpop.f32.mrf.mxu0 }
 0x358   :  { %2756 = vst [vmem:[#allocation2 + $0xf0] sm:$0xff] %v2592_v19  ;;  %v2584_v49 = vadd.f32 %v4792_v31, %v2583_v39 }
 0x359   :  { %v3015_v0 = vpop.f32.mrf.mxu0 }
 0x35a   :  { %2754 = vst [vmem:[#allocation2 + $0xe0] sm:$0xff] %v2584_v49  ;;  %v2595_v55 = vadd.f32 %v3015_v0, %v4792_v31 }
 0x35b   :  { %v2586_v35 = vpop.f32.mrf.mxu0 }
 0x35c   :  { %2757 = vst [vmem:[#allocation2 + $0xf8] sm:$0xff] %v2595_v55  ;;  %v2587_v27 = vadd.f32 %v4792_v31, %v2586_v35 }
 0x35e   :  { %2755 = vst [vmem:[#allocation2 + $0xe8] sm:$0xff] %v2587_v27 }
 0x365   :  { %v3018_v20 = vpop.f32.mrf.mxu0 }
 0x366   :  { %v2608_v1 = vadd.f32 %v3018_v20, %v4792_v31 }
 0x367   :  { %v2599_v52 = vpop.f32.mrf.mxu0 }
 0x368   :  { %2760 = vst [vmem:[#allocation2 + $0x110] sm:$0xff] %v2608_v1  ;;  %v2600_v17 = vadd.f32 %v4792_v31, %v2599_v52 }
 0x369   :  { %v3019_v2 = vpop.f32.mrf.mxu0 }
 0x36a   :  { %2758 = vst [vmem:[#allocation2 + $0x100] sm:$0xff] %v2600_v17  ;;  %v2611_v24 = vadd.f32 %v3019_v2, %v4792_v31 }
 0x36b   :  { %v2602_v28 = vpop.f32.mrf.mxu0 }
 0x36c   :  { %2761 = vst [vmem:[#allocation2 + $0x118] sm:$0xff] %v2611_v24  ;;  %v2603_v44 = vadd.f32 %v4792_v31, %v2602_v28 }
 0x36e   :  { %2759 = vst [vmem:[#allocation2 + $0x108] sm:$0xff] %v2603_v44 }
 0x375   :  { %v3022_v54 = vpop.f32.mrf.mxu0 }
 0x376   :  { %v2624_v25 = vadd.f32 %v3022_v54, %v4792_v31 }
 0x377   :  { %v2615_v18 = vpop.f32.mrf.mxu0 }
 0x378   :  { %2764 = vst [vmem:[#allocation2 + $0x130] sm:$0xff] %v2624_v25  ;;  %v2616_v5 = vadd.f32 %v4792_v31, %v2615_v18 }
 0x379   :  { %v3023_v9 = vpop.f32.mrf.mxu0 }
 0x37a   :  { %2762 = vst [vmem:[#allocation2 + $0x120] sm:$0xff] %v2616_v5  ;;  %v2627_v30 = vadd.f32 %v3023_v9, %v4792_v31 }
 0x37b   :  { %v2618_v29 = vpop.f32.mrf.mxu0 }
 0x37c   :  { %2765 = vst [vmem:[#allocation2 + $0x138] sm:$0xff] %v2627_v30  ;;  %v2619_v11 = vadd.f32 %v4792_v31, %v2618_v29 }
 0x37e   :  { %2763 = vst [vmem:[#allocation2 + $0x128] sm:$0xff] %v2619_v11 }
 0x385   :  { %v3026_v15 = vpop.f32.mrf.mxu0 }
 0x386   :  { %v2640_v51 = vadd.f32 %v3026_v15, %v4792_v31 }
 0x387   :  { %v2631_v4 = vpop.f32.mrf.mxu0 }
 0x388   :  { %2768 = vst [vmem:[#allocation2 + $0x150] sm:$0xff] %v2640_v51  ;;  %v2632_v60 = vadd.f32 %v4792_v31, %v2631_v4 }
 0x389   :  { %v3027_v14 = vpop.f32.mrf.mxu0 }
 0x38a   :  { %2766 = vst [vmem:[#allocation2 + $0x140] sm:$0xff] %v2632_v60  ;;  %v2643_v13 = vadd.f32 %v3027_v14, %v4792_v31 }
 0x38b   :  { %v2634_v37 = vpop.f32.mrf.mxu0 }
 0x38c   :  { %2769 = vst [vmem:[#allocation2 + $0x158] sm:$0xff] %v2643_v13  ;;  %v2635_v43 = vadd.f32 %v4792_v31, %v2634_v37 }
 0x38e   :  { %2767 = vst [vmem:[#allocation2 + $0x148] sm:$0xff] %v2635_v43 }
 0x395   :  { %v3030_v6 = vpop.f32.mrf.mxu0 }
 0x396   :  { %v2656_v62 = vadd.f32 %v3030_v6, %v4792_v31 }
 0x397   :  { %v2647_v34 = vpop.f32.mrf.mxu0 }
 0x398   :  { %2772 = vst [vmem:[#allocation2 + $0x170] sm:$0xff] %v2656_v62  ;;  %v2648_v22 = vadd.f32 %v4792_v31, %v2647_v34 }
 0x399   :  { %v3031_v36 = vpop.f32.mrf.mxu0 }
 0x39a   :  { %2770 = vst [vmem:[#allocation2 + $0x160] sm:$0xff] %v2648_v22  ;;  %v2659_v56 = vadd.f32 %v3031_v36, %v4792_v31 }
 0x39b   :  { %v2650_v12 = vpop.f32.mrf.mxu0 }
 0x39c   :  { %2773 = vst [vmem:[#allocation2 + $0x178] sm:$0xff] %v2659_v56  ;;  %v2651_v10 = vadd.f32 %v4792_v31, %v2650_v12 }
 0x39e   :  { %2771 = vst [vmem:[#allocation2 + $0x168] sm:$0xff] %v2651_v10 }
 0x3a5   :  { %v3034_v40 = vpop.f32.mrf.mxu0 }
 0x3a6   :  { %v2672_v38 = vadd.f32 %v3034_v40, %v4792_v31 }
 0x3a7   :  { %v2663_v16 = vpop.f32.mrf.mxu0 }
 0x3a8   :  { %2776 = vst [vmem:[#allocation2 + $0x190] sm:$0xff] %v2672_v38  ;;  %v2664_v47 = vadd.f32 %v4792_v31, %v2663_v16 }
 0x3a9   :  { %v3035_v59 = vpop.f32.mrf.mxu0 }
 0x3aa   :  { %2774 = vst [vmem:[#allocation2 + $0x180] sm:$0xff] %v2664_v47  ;;  %v2675_v61 = vadd.f32 %v3035_v59, %v4792_v31 }
 0x3ab   :  { %v2666_v63 = vpop.f32.mrf.mxu0 }
 0x3ac   :  { %2777 = vst [vmem:[#allocation2 + $0x198] sm:$0xff] %v2675_v61  ;;  %v2667_v58 = vadd.f32 %v4792_v31, %v2666_v63 }
 0x3ae   :  { %2775 = vst [vmem:[#allocation2 + $0x188] sm:$0xff] %v2667_v58 }
 0x3b5   :  { %v3038_v50 = vpop.f32.mrf.mxu0 }
 0x3b6   :  { %v2688_v23 = vadd.f32 %v3038_v50, %v4792_v31 }
 0x3b7   :  { %v2679_v42 = vpop.f32.mrf.mxu0 }
 0x3b8   :  { %2780 = vst [vmem:[#allocation2 + $0x1b0] sm:$0xff] %v2688_v23  ;;  %v2680_v48 = vadd.f32 %v4792_v31, %v2679_v42 }
 0x3b9   :  { %v3039_v57 = vpop.f32.mrf.mxu0 }
 0x3ba   :  { %2778 = vst [vmem:[#allocation2 + $0x1a0] sm:$0xff] %v2680_v48  ;;  %v2691_v45 = vadd.f32 %v3039_v57, %v4792_v31 }
 0x3bb   :  { %v2682_v3 = vpop.f32.mrf.mxu0 }
 0x3bc   :  { %2781 = vst [vmem:[#allocation2 + $0x1b8] sm:$0xff] %v2691_v45  ;;  %v2683_v32 = vadd.f32 %v4792_v31, %v2682_v3 }
 0x3be   :  { %2779 = vst [vmem:[#allocation2 + $0x1a8] sm:$0xff] %v2683_v32 }
 0x3c5   :  { %v3042_v41 = vpop.f32.mrf.mxu0 }
 0x3c6   :  { %v2704_v26 = vadd.f32 %v3042_v41, %v4792_v31 }
 0x3c7   :  { %v2695_v7 = vpop.f32.mrf.mxu0 }
 0x3c8   :  { %2784 = vst [vmem:[#allocation2 + $0x1d0] sm:$0xff] %v2704_v26  ;;  %v2696_v8 = vadd.f32 %v4792_v31, %v2695_v7 }
 0x3c9   :  { %v3043_v21 = vpop.f32.mrf.mxu0 }
 0x3ca   :  { %2782 = vst [vmem:[#allocation2 + $0x1c0] sm:$0xff] %v2696_v8  ;;  %v2707_v46 = vadd.f32 %v3043_v21, %v4792_v31 }
 0x3cb   :  { %v2698_v53 = vpop.f32.mrf.mxu0 }
 0x3cc   :  { %2785 = vst [vmem:[#allocation2 + $0x1d8] sm:$0xff] %v2707_v46  ;;  %v2699_v33 = vadd.f32 %v4792_v31, %v2698_v53 }
 0x3ce   :  { %2783 = vst [vmem:[#allocation2 + $0x1c8] sm:$0xff] %v2699_v33 }
 0x3d5   :  { %v3046_v19 = vpop.f32.mrf.mxu0 }
 0x3d6   :  { %v2720_v39 = vadd.f32 %v3046_v19, %v4792_v31 }
 0x3d7   :  { %v2711_v49 = vpop.f32.mrf.mxu0 }
 0x3d8   :  { %2788 = vst [vmem:[#allocation2 + $0x1f0] sm:$0xff] %v2720_v39  ;;  %v2712_v0 = vadd.f32 %v4792_v31, %v2711_v49 }
 0x3d9   :  { %v3047_v55 = vpop.f32.mrf.mxu0 }
 0x3da   :  { %2786 = vst [vmem:[#allocation2 + $0x1e0] sm:$0xff] %v2712_v0  ;;  %v2723_v35 = vadd.f32 %v3047_v55, %v4792_v31 }
 0x3db   :  { %v2714_v27 = vpop.f32.mrf.mxu0 }
 0x3dc   :  { %2789 = vst [vmem:[#allocation2 + $0x1f8] sm:$0xff] %v2723_v35  ;;  %v2715_v20 = vadd.f32 %v4792_v31, %v2714_v27 }
 0x3de   :  { %2787 = vst [vmem:[#allocation2 + $0x1e8] sm:$0xff] %v2715_v20 }
 0x3df   :  { %3136 = shalt.err (!%p3133_p4)
}
 0x3e0   :  { %s3149_s8 = smov 128   ;;  %s3150_s9 = smov 8  }
 0x3e1   :  { %2801 = dma.vmem_to_hbm [thread:$0]  %s2796_s29, 8192, %s4887_s7, [#allocation3], %s3149_s8, %s3149_s8, %s3150_s9  }
 0x3e2   :  { %3145 = dma.done.wait [#allocation3], 8192  }
 0x3e3   :  { %3146 = vsyncadd [#allocation3], 4294959104 }
 0x3e4   :  { %2805 = vsyncpa [#allocation3], 1 }

</bundles_post_ra>
